<compile_context>
chip_gen: v7x
topology: tpu7x:2x2x1
jax: 0.10.0
libtpu: 0.0.40
codegen_flags: <defaults>
</compile_context>

<pallas_src>
import functools

import jax
import jax.numpy as jnp
from jax.experimental import pallas as pl
from jax.experimental.pallas import tpu as pltpu


# ----------------------------------------------------------------------------
# Pallas kernels
# ----------------------------------------------------------------------------
def _graph_constructor_kernel(e1_ref, e2_ref, w1_ref, b1_ref, w2_ref, b2_ref,
                              o_ref, *, layers, alpha, scale_set):
    """All graph-constructor layers fused; n1/n2 carried across layers in vregs.

    e1/e2 : (N, Nd) node embeddings
    w1/w2 : (L, Nd, Nd) per-layer linear weights ; b1/b2 : (L, 1, Nd)
    o_ref : (L, N, N)   adj0 = relu(tanh(alpha * (n1 n2^T - n2 n1^T)))
    """
    n1 = e1_ref[...]
    n2 = e2_ref[...]
    for i in range(layers):
        n1 = jnp.tanh(alpha * (
            jnp.dot(n1 * scale_set[i], w1_ref[i],
                    preferred_element_type=jnp.float32) + b1_ref[i]))
        n2 = jnp.tanh(alpha * (
            jnp.dot(n2 * scale_set[i], w2_ref[i],
                    preferred_element_type=jnp.float32) + b2_ref[i]))
        # one MXU matmul; the skew-symmetric partner is its transpose (XLU).
        a = jax.lax.dot_general(n1, n2, (((1,), (1,)), ((), ())),
                                preferred_element_type=jnp.float32)
        o_ref[i, :, :] = jnp.maximum(jnp.tanh(alpha * (a - a.T)), 0.0)


def _magnn_batch_kernel(*refs, layers, gdep, propalpha):
    """Whole per-batch MAGNN feature path in one kernel (grid = (B,)).

    All stages operate on an (N, F) flat tile (F = length * channels, channel
    minor); temporal convs and mixprop MLPs are pre-folded into flat
    (F_in, F_out) operators so every stage is a single MXU matmul.
    """
    dot = lambda a, b: jnp.dot(a, b, preferred_element_type=jnp.float32)

    it = iter(refs[:-1])
    x_ref = next(it)                      # (1, N, T*Cin)
    a1_ref = next(it)                     # (L, N, N) row-normalized adj   (gconv1)
    a2_ref = next(it)                     # (L, N, N) row-normalized adj^T (gconv2)
    start_op = next(it)                   # (T*Cin, T*Cc)
    start_b = next(it)                    # (1, T*Cc)
    conv_ops = [next(it) for _ in range(layers)]    # (F_{i-1}, L_i*Cc)
    conv_bs = [next(it) for _ in range(layers)]     # (1, L_i*Cc)
    g1_ops = [next(it) for _ in range(layers)]      # (gdep+1, L_i*Cc, L_i*Gc)
    g2_ops = [next(it) for _ in range(layers)]
    g_bs = [next(it) for _ in range(layers)]        # (1, L_i*Gc)
    sconv_ws = [next(it) for _ in range(layers)]    # (L_i*Gc, Sc)
    sconv_bs = [next(it) for _ in range(layers)]    # (1, Sc)
    s0_w = next(it)                       # (T*Cin, Sc)
    s0_b = next(it)                       # (1, Sc)
    d1_w = next(it)                       # (Sc*(L+1), L+1)
    d2_w = next(it)                       # (L+1, L+1)
    e1_w = next(it)                       # (Sc, Ec)
    e1_b = next(it)                       # (1, Ec)
    e2_w = next(it)                       # (Ec, out_dim)
    e2_b = next(it)                       # (1, out_dim)
    o_ref = refs[-1]                      # (1, N, out_dim)

    x = x_ref[0]                                             # (N, T*Cin)

    # ---- multi_scale_block: start 1x1 conv + temporal convs -----------------
    cur = dot(x, start_op[...]) + start_b[...]               # (N, T*Cc)
    scales = []
    for i in range(layers):
        cur = dot(cur, conv_ops[i][...]) + conv_bs[i][...]   # (N, L_i*Cc)
        scales.append(cur)

    # ---- scale0 conv (dropout = identity at inference) ----------------------
    outs = [dot(x, s0_w[...]) + s0_b[...]]                   # (N, Sc)

    # ---- mixprop gconv1 + gconv2 (merged per layer) + scale convs -----------
    for i in range(layers):
        xi = scales[i]
        a1 = a1_ref[i]
        a2 = a2_ref[i]
        h1 = xi
        h2 = xi
        acc = dot(h1, g1_ops[i][0]) + dot(h2, g2_ops[i][0])
        for d in range(1, gdep + 1):
            h1 = propalpha * xi + (1.0 - propalpha) * dot(a1, h1)
            h2 = propalpha * xi + (1.0 - propalpha) * dot(a2, h2)
            acc = acc + dot(h1, g1_ops[i][d]) + dot(h2, g2_ops[i][d])
        gout = acc + g_bs[i][...]                            # (N, L_i*Gc)
        outs.append(dot(gout, sconv_ws[i][...]) + sconv_bs[i][...])   # (N, Sc)

    # ---- gated fusion (squeeze over nodes + d1/d2 dense, all in-kernel) -----
    n_nodes, sc = outs[0].shape
    n_out = layers + 1
    d1 = d1_w[...]
    hid = dot(jnp.mean(outs[0], axis=0, keepdims=True), d1[0:sc, :])
    for k in range(1, n_out):
        mk = jnp.mean(outs[k], axis=0, keepdims=True)        # (1, Sc)
        hid = hid + dot(mk, d1[k * sc:(k + 1) * sc, :])
    hid = jnp.maximum(hid, 0.0)
    gate = jax.nn.sigmoid(dot(hid, d2_w[...]))               # (1, L+1)
    # TODO(synk): reference gated_fusion assumed to take the MEAN over scales.
    gate_n = jnp.broadcast_to(gate, (n_nodes, n_out))
    fused = outs[0] * gate_n[:, 0:1]
    for k in range(1, n_out):
        fused = fused + outs[k] * gate_n[:, k:k + 1]
    fused = fused * (1.0 / n_out)

    # ---- output head ---------------------------------------------------------
    h = jnp.maximum(fused, 0.0)
    h = jnp.maximum(dot(h, e1_w[...]) + e1_b[...], 0.0)
    o_ref[0, :, :] = dot(h, e2_w[...]) + e2_b[...]


# ----------------------------------------------------------------------------
# BlockSpec helpers / JAX glue (tiny, hoisted out of the kernels)
# ----------------------------------------------------------------------------
def _const_spec(arr):
    """Whole-array block, same block for every grid step."""
    zeros = (0,) * arr.ndim
    return pl.BlockSpec(tuple(arr.shape), lambda *args: zeros)


def graph_constructor(packed, cfg, scale_set):
    L, N = cfg["layers"], cfg["num_nodes"]
    ins = (packed["emb1"], packed["emb2"], packed["gc_w1"], packed["gc_b1"],
           packed["gc_w2"], packed["gc_b2"])
    kernel = functools.partial(
        _graph_constructor_kernel, layers=L, alpha=float(cfg["tanhalpha"]),
        scale_set=tuple(float(s) for s in scale_set))
    return pl.pallas_call(
        kernel,
        out_shape=jax.ShapeDtypeStruct((L, N, N), jnp.float32),
        in_specs=[_const_spec(a) for a in ins],
        out_specs=pl.BlockSpec((L, N, N), lambda *args: (0, 0, 0)),
    )(*ins)


def topk_mask(adj0, k):
    # TODO(synk): top-k tie-breaking may differ from torch.topk/scatter_ for
    # exactly-equal entries; selection stays in JAX glue (lax.top_k).
    _, idx = jax.lax.top_k(adj0, k)                               # (..., N, k)
    mask = jnp.sum(jax.nn.one_hot(idx, adj0.shape[-1], dtype=adj0.dtype), axis=-2)
    return adj0 * jnp.minimum(mask, 1.0)


def _row_normalize(a):
    a = a + jnp.eye(a.shape[-1], dtype=a.dtype)
    return a / jnp.sum(a, axis=-1, keepdims=True)


# ----------------------------------------------------------------------------
# Parameter packing: fold convs / mixprop MLPs into flat (F_in, F_out) operators
# ----------------------------------------------------------------------------
def _kron_eye(n, w):
    return jnp.kron(jnp.eye(n, dtype=jnp.float32), w.astype(jnp.float32))


def _temporal_conv_operator(w, kernel, cin, cout, t_in, stride, out_len):
    """Conv2d((1,k), stride (1,s)) as a flat (t_in*cin, out_len*cout) matrix."""
    w3 = w.astype(jnp.float32).reshape(kernel, cin, cout)
    op = jnp.zeros((t_in, cin, out_len, cout), jnp.float32)
    t_idx = jnp.arange(out_len)
    for j in range(kernel):
        op = op.at[t_idx * stride + j, :, t_idx, :].add(w3[j])
    return op.reshape(t_in * cin, out_len * cout)


def pack_params(params, cfg):
    f32 = jnp.float32
    T, Cin = cfg["seq_length"], cfg["in_dim"]
    Cc, Gc = cfg["conv_channels"], cfg["gnn_channels"]
    L, gdep = cfg["layers"], cfg["gcn_depth"]
    ks, ls = cfg["kernel_set"], cfg["length_set"]

    p = {}
    # graph constructor (kernel 1)
    p["emb1"] = params["emb1"].astype(f32)
    p["emb2"] = params["emb2"].astype(f32)
    p["gc_w1"] = jnp.stack(params["gc_w1"]).astype(f32)                 # (L,Nd,Nd)
    p["gc_b1"] = jnp.stack(params["gc_b1"]).astype(f32)[:, None, :]     # (L,1,Nd)
    p["gc_w2"] = jnp.stack(params["gc_w2"]).astype(f32)
    p["gc_b2"] = jnp.stack(params["gc_b2"]).astype(f32)[:, None, :]

    # start 1x1 conv as a flat operator over the (t, c) flat feature axis
    p["start_op"] = _kron_eye(T, params["start_w"])                     # (T*Cin, T*Cc)
    p["start_b"] = jnp.tile(params["start_b"].astype(f32), T)[None, :]

    # temporal convs (kernel kernel_set[i], stride 1 then 2), folded operators
    in_lens = [T] + ls[:-1]
    strides = [1] + [2] * (L - 1)
    p["conv_op"], p["conv_b"] = [], []
    for i in range(L):
        p["conv_op"].append(_temporal_conv_operator(
            params["scale_w"][i], ks[i], Cc, Cc, in_lens[i], strides[i], ls[i]))
        p["conv_b"].append(jnp.tile(params["scale_b"][i].astype(f32), ls[i])[None, :])

    # mixprop MLPs: per-hop slice kron'd with identity over the length axis
    p["g1_op"], p["g2_op"], p["g_b"] = [], [], []
    for i in range(L):
        g1 = params["g1_w"][i].astype(f32)
        g2 = params["g2_w"][i].astype(f32)
        p["g1_op"].append(jnp.stack(
            [_kron_eye(ls[i], g1[d * Cc:(d + 1) * Cc, :]) for d in range(gdep + 1)]))
        p["g2_op"].append(jnp.stack(
            [_kron_eye(ls[i], g2[d * Cc:(d + 1) * Cc, :]) for d in range(gdep + 1)]))
        p["g_b"].append(jnp.tile(params["g1_b"][i].astype(f32) +
                                 params["g2_b"][i].astype(f32), ls[i])[None, :])

    # scale-specific convs (full-length kernel -> plain flat matmul)
    p["sconv_w"] = [params["sconv_w"][i].astype(f32) for i in range(L)]
    p["sconv_b"] = [params["sconv_b"][i].astype(f32)[None, :] for i in range(L)]

    # scale0, gated fusion, output head
    p["scale0_w"] = params["scale0_w"].astype(f32)
    p["scale0_b"] = params["scale0_b"].astype(f32)[None, :]
    p["d1_w"] = params["d1_w"].astype(f32)
    p["d2_w"] = params["d2_w"].astype(f32)
    p["end1_w"] = params["end1_w"].astype(f32)
    p["end1_b"] = params["end1_b"].astype(f32)[None, :]
    p["end2_w"] = params["end2_w"].astype(f32)
    p["end2_b"] = params["end2_b"].astype(f32)[None, :]
    return p


# ----------------------------------------------------------------------------
# Full magnn forward (2 pallas_calls total)
# ----------------------------------------------------------------------------
def magnn_forward(packed, x_nchw, cfg):
    B, Cin, N, T = x_nchw.shape
    assert T == cfg["seq_length"]
    L = cfg["layers"]
    out_dim = cfg["out_dim"]

    # channels-minor flat layout (B, N, T*Cin)
    x_flat = jnp.transpose(x_nchw, (0, 2, 3, 1)).reshape(B, N, T * Cin)
    x_flat = x_flat.astype(jnp.float32)

    # ---- kernel 1: fused graph constructor; top-k + row-norm hoisted to glue --
    scale_set = [1.0, 0.8, 0.6, 0.5]
    adj0 = graph_constructor(packed, cfg, scale_set)             # (L, N, N)
    adj = topk_mask(adj0, cfg["subgraph_size"])                  # returned (torch parity)
    a1 = _row_normalize(adj)                                     # gconv1 direction
    a2 = _row_normalize(jnp.swapaxes(adj, -1, -2))               # gconv2 direction

    # ---- kernel 2: fused per-batch feature path -------------------------------
    ins = [x_flat, a1, a2, packed["start_op"], packed["start_b"]]
    ins += list(packed["conv_op"]) + list(packed["conv_b"])
    ins += list(packed["g1_op"]) + list(packed["g2_op"]) + list(packed["g_b"])
    ins += list(packed["sconv_w"]) + list(packed["sconv_b"])
    ins += [packed["scale0_w"], packed["scale0_b"], packed["d1_w"], packed["d2_w"],
            packed["end1_w"], packed["end1_b"], packed["end2_w"], packed["end2_b"]]

    in_specs = [pl.BlockSpec((1, N, T * Cin), lambda b: (b, 0, 0))]
    in_specs += [_const_spec(a) for a in ins[1:]]

    kernel = functools.partial(_magnn_batch_kernel, layers=L,
                               gdep=cfg["gcn_depth"],
                               propalpha=float(cfg["propalpha"]))
    y_flat = pl.pallas_call(
        kernel,
        out_shape=jax.ShapeDtypeStruct((B, N, out_dim), jnp.float32),
        grid=(B,),
        in_specs=in_specs,
        out_specs=pl.BlockSpec((1, N, out_dim), lambda b: (b, 0, 0)),
        compiler_params=pltpu.CompilerParams(dimension_semantics=("parallel",)),
    )(*ins)

    y = jnp.transpose(y_flat, (0, 2, 1))[:, :, :, None]          # (B, out_dim, N, 1)
    return y, adj


# ----------------------------------------------------------------------------
# Deterministic parameter init (synthetic)
# ----------------------------------------------------------------------------
def init_params(key, cfg):
    keys = iter(jax.random.split(key, 64))

    def nrm(shape, scale=0.1):
        return scale * jax.random.normal(next(keys), shape, dtype=jnp.float32)

    Cc, Gc, Sc = cfg["conv_channels"], cfg["gnn_channels"], cfg["scale_channels"]
    Ec, Nd, N = cfg["end_channels"], cfg["node_dim"], cfg["num_nodes"]
    T, Cin, L = cfg["seq_length"], cfg["in_dim"], cfg["layers"]
    gdep, L1 = cfg["gcn_depth"], cfg["layers"] + 1
    ks, ls = cfg["kernel_set"], cfg["length_set"]

    p = {}
    p["start_w"], p["start_b"] = nrm((Cin, Cc)), nrm((Cc,))
    p["scale_w"] = [nrm((ks[i] * Cc, Cc)) for i in range(L)]
    p["scale_b"] = [nrm((Cc,)) for _ in range(L)]
    p["scale0_w"], p["scale0_b"] = nrm((T * Cin, Sc)), nrm((Sc,))
    p["emb1"], p["emb2"] = nrm((N, Nd), 1.0), nrm((N, Nd), 1.0)
    p["gc_w1"] = [nrm((Nd, Nd)) for _ in range(L)]
    p["gc_b1"] = [nrm((Nd,)) for _ in range(L)]
    p["gc_w2"] = [nrm((Nd, Nd)) for _ in range(L)]
    p["gc_b2"] = [nrm((Nd,)) for _ in range(L)]
    p["g1_w"] = [nrm(((gdep + 1) * Cc, Gc)) for _ in range(L)]
    p["g1_b"] = [nrm((Gc,)) for _ in range(L)]
    p["g2_w"] = [nrm(((gdep + 1) * Cc, Gc)) for _ in range(L)]
    p["g2_b"] = [nrm((Gc,)) for _ in range(L)]
    p["sconv_w"] = [nrm((ls[i] * Gc, Sc)) for i in range(L)]
    p["sconv_b"] = [nrm((Sc,)) for _ in range(L)]
    p["d1_w"], p["d2_w"] = nrm((Sc * L1, L1)), nrm((L1, L1))
    p["end1_w"], p["end1_b"] = nrm((Sc, Ec)), nrm((Ec,))
    p["end2_w"], p["end2_b"] = nrm((Ec, cfg["out_dim"])), nrm((cfg["out_dim"],))
    return p


# ----------------------------------------------------------------------------
if __name__ == "__main__":
    cfg = dict(
        gcn_depth=2, num_nodes=8, dropout=0.3, subgraph_size=4, node_dim=16,
        conv_channels=8, gnn_channels=8, scale_channels=8, end_channels=16,
        seq_length=32, in_dim=1, out_dim=12, layers=3, propalpha=0.05,
        tanhalpha=3.0, single_step=True,
    )
    cfg["kernel_set"] = [7, 6, 3, 2]  # single_step=True kernel set
    length_set = [cfg["seq_length"] - cfg["kernel_set"][0] + 1]
    for i in range(1, cfg["layers"]):
        length_set.append(int((length_set[i - 1] - cfg["kernel_set"][i]) / 2))
    cfg["length_set"] = length_set  # [26, 10, 3]

    params = init_params(jax.random.PRNGKey(1), cfg)
    packed = pack_params(params, cfg)   # params pre-cast/packed to f32 once

    key = jax.random.PRNGKey(0)
    B = 2
    x = jax.random.normal(
        key, (B, cfg["in_dim"], cfg["num_nodes"], cfg["seq_length"]), jnp.float32
    )

    fwd = jax.jit(lambda p, xx: magnn_forward(p, xx, cfg))
    y, adj = fwd(packed, x)
    jax.block_until_ready((y, adj))

    assert y.shape == (B, cfg["out_dim"], cfg["num_nodes"], 1)
    assert adj.shape == (cfg["layers"], cfg["num_nodes"], cfg["num_nodes"])
    assert bool(jnp.all(jnp.isfinite(y)))
    print("KERNEL_OK")
</pallas_src>

<mosaic_0001>
module attributes {stable_mosaic.version = 11 : i64} {
  func.func @_graph_constructor_kernel(%arg0: memref<8x16xf32, #tpu.memory_space<vmem>>, %arg1: memref<8x16xf32, #tpu.memory_space<vmem>>, %arg2: memref<3x16x16xf32, #tpu.memory_space<vmem>>, %arg3: memref<3x1x16xf32, #tpu.memory_space<vmem>>, %arg4: memref<3x16x16xf32, #tpu.memory_space<vmem>>, %arg5: memref<3x1x16xf32, #tpu.memory_space<vmem>>, %arg6: memref<3x8x8xf32, #tpu.memory_space<vmem>>) attributes {dimension_semantics = [], scalar_prefetch = 0 : i64, scratch_operands = 0 : i64, tpu.core_type = #tpu.core_type<tc>} {
    %c0 = arith.constant 0 : index
    %c0_0 = arith.constant 0 : index
    %0 = vector.load %arg0[%c0, %c0_0] : memref<8x16xf32, #tpu.memory_space<vmem>>, vector<8x16xf32>
    %c0_1 = arith.constant 0 : index
    %c0_2 = arith.constant 0 : index
    %1 = vector.load %arg1[%c0_1, %c0_2] : memref<8x16xf32, #tpu.memory_space<vmem>>, vector<8x16xf32>
    %cst = arith.constant 1.000000e+00 : f32
    %2 = vector.broadcast %cst : f32 to vector<8x16xf32>
    %3 = arith.mulf %0, %2 : vector<8x16xf32>
    %c0_3 = arith.constant 0 : index
    %c0_4 = arith.constant 0 : index
    %c0_5 = arith.constant 0 : index
    %4 = vector.load %arg2[%c0_3, %c0_4, %c0_5] : memref<3x16x16xf32, #tpu.memory_space<vmem>>, vector<1x16x16xf32>
    %5 = vector.shape_cast %4 : vector<1x16x16xf32> to vector<16x16xf32>
    %cst_6 = arith.constant dense<0.000000e+00> : vector<8x16xf32>
    %6 = tpu.matmul %3, %5, %cst_6 {dimension_numbers = #tpu.dot_dimension_numbers<[1], [0], [0], [1], [0, 0, 1, 1], [], []>} : vector<8x16xf32>, vector<16x16xf32>, vector<8x16xf32> -> vector<8x16xf32>
    %c0_7 = arith.constant 0 : index
    %c0_8 = arith.constant 0 : index
    %c0_9 = arith.constant 0 : index
    %7 = vector.load %arg3[%c0_7, %c0_8, %c0_9] : memref<3x1x16xf32, #tpu.memory_space<vmem>>, vector<1x1x16xf32>
    %8 = vector.shape_cast %7 : vector<1x1x16xf32> to vector<1x16xf32>
    %9 = vector.broadcast %8 : vector<1x16xf32> to vector<8x16xf32>
    %10 = arith.addf %6, %9 : vector<8x16xf32>
    %cst_10 = arith.constant 3.000000e+00 : f32
    %11 = vector.broadcast %cst_10 : f32 to vector<8x16xf32>
    %12 = arith.mulf %11, %10 : vector<8x16xf32>
    %13 = math.tanh %12 : vector<8x16xf32>
    %cst_11 = arith.constant 1.000000e+00 : f32
    %14 = vector.broadcast %cst_11 : f32 to vector<8x16xf32>
    %15 = arith.mulf %1, %14 : vector<8x16xf32>
    %c0_12 = arith.constant 0 : index
    %c0_13 = arith.constant 0 : index
    %c0_14 = arith.constant 0 : index
    %16 = vector.load %arg4[%c0_12, %c0_13, %c0_14] : memref<3x16x16xf32, #tpu.memory_space<vmem>>, vector<1x16x16xf32>
    %17 = vector.shape_cast %16 : vector<1x16x16xf32> to vector<16x16xf32>
    %cst_15 = arith.constant dense<0.000000e+00> : vector<8x16xf32>
    %18 = tpu.matmul %15, %17, %cst_15 {dimension_numbers = #tpu.dot_dimension_numbers<[1], [0], [0], [1], [0, 0, 1, 1], [], []>} : vector<8x16xf32>, vector<16x16xf32>, vector<8x16xf32> -> vector<8x16xf32>
    %c0_16 = arith.constant 0 : index
    %c0_17 = arith.constant 0 : index
    %c0_18 = arith.constant 0 : index
    %19 = vector.load %arg5[%c0_16, %c0_17, %c0_18] : memref<3x1x16xf32, #tpu.memory_space<vmem>>, vector<1x1x16xf32>
    %20 = vector.shape_cast %19 : vector<1x1x16xf32> to vector<1x16xf32>
    %21 = vector.broadcast %20 : vector<1x16xf32> to vector<8x16xf32>
    %22 = arith.addf %18, %21 : vector<8x16xf32>
    %cst_19 = arith.constant 3.000000e+00 : f32
    %23 = vector.broadcast %cst_19 : f32 to vector<8x16xf32>
    %24 = arith.mulf %23, %22 : vector<8x16xf32>
    %25 = math.tanh %24 : vector<8x16xf32>
    %cst_20 = arith.constant dense<0.000000e+00> : vector<8x8xf32>
    %26 = tpu.matmul %13, %25, %cst_20 {dimension_numbers = #tpu.dot_dimension_numbers<[1], [1], [0], [0], [0, 0, 1, 0], [], []>} : vector<8x16xf32>, vector<8x16xf32>, vector<8x8xf32> -> vector<8x8xf32>
    %27 = tpu.transpose %26, [1, 0] : vector<8x8xf32> -> vector<8x8xf32>
    %28 = arith.subf %26, %27 : vector<8x8xf32>
    %cst_21 = arith.constant 3.000000e+00 : f32
    %29 = vector.broadcast %cst_21 : f32 to vector<8x8xf32>
    %30 = arith.mulf %29, %28 : vector<8x8xf32>
    %31 = math.tanh %30 : vector<8x8xf32>
    %cst_22 = arith.constant 0.000000e+00 : f32
    %32 = vector.broadcast %cst_22 : f32 to vector<8x8xf32>
    %33 = arith.maximumf %31, %32 : vector<8x8xf32>
    %c0_23 = arith.constant 0 : index
    %c0_24 = arith.constant 0 : index
    %c0_25 = arith.constant 0 : index
    %34 = vector.load %arg6[%c0_23, %c0_24, %c0_25] : memref<3x8x8xf32, #tpu.memory_space<vmem>>, vector<1x8x8xf32>
    %35 = vector.shape_cast %34 : vector<1x8x8xf32> to vector<8x8xf32>
    %36 = vector.shape_cast %33 : vector<8x8xf32> to vector<1x8x8xf32>
    tpu.vector_store %arg6[%c0_23, %c0_24, %c0_25], %36 {strides = array<i32>} : memref<3x8x8xf32, #tpu.memory_space<vmem>>, vector<1x8x8xf32>,
    %cst_26 = arith.constant 8.000000e-01 : f32
    %37 = vector.broadcast %cst_26 : f32 to vector<8x16xf32>
    %38 = arith.mulf %13, %37 : vector<8x16xf32>
    %c1 = arith.constant 1 : index
    %c0_27 = arith.constant 0 : index
    %c0_28 = arith.constant 0 : index
    %39 = vector.load %arg2[%c1, %c0_27, %c0_28] : memref<3x16x16xf32, #tpu.memory_space<vmem>>, vector<1x16x16xf32>
    %40 = vector.shape_cast %39 : vector<1x16x16xf32> to vector<16x16xf32>
    %cst_29 = arith.constant dense<0.000000e+00> : vector<8x16xf32>
    %41 = tpu.matmul %38, %40, %cst_29 {dimension_numbers = #tpu.dot_dimension_numbers<[1], [0], [0], [1], [0, 0, 1, 1], [], []>} : vector<8x16xf32>, vector<16x16xf32>, vector<8x16xf32> -> vector<8x16xf32>
    %c1_30 = arith.constant 1 : index
    %c0_31 = arith.constant 0 : index
    %c0_32 = arith.constant 0 : index
    %42 = vector.load %arg3[%c1_30, %c0_31, %c0_32] : memref<3x1x16xf32, #tpu.memory_space<vmem>>, vector<1x1x16xf32>
    %43 = vector.shape_cast %42 : vector<1x1x16xf32> to vector<1x16xf32>
    %44 = vector.broadcast %43 : vector<1x16xf32> to vector<8x16xf32>
    %45 = arith.addf %41, %44 : vector<8x16xf32>
    %cst_33 = arith.constant 3.000000e+00 : f32
    %46 = vector.broadcast %cst_33 : f32 to vector<8x16xf32>
    %47 = arith.mulf %46, %45 : vector<8x16xf32>
    %48 = math.tanh %47 : vector<8x16xf32>
    %cst_34 = arith.constant 8.000000e-01 : f32
    %49 = vector.broadcast %cst_34 : f32 to vector<8x16xf32>
    %50 = arith.mulf %25, %49 : vector<8x16xf32>
    %c1_35 = arith.constant 1 : index
    %c0_36 = arith.constant 0 : index
    %c0_37 = arith.constant 0 : index
    %51 = vector.load %arg4[%c1_35, %c0_36, %c0_37] : memref<3x16x16xf32, #tpu.memory_space<vmem>>, vector<1x16x16xf32>
    %52 = vector.shape_cast %51 : vector<1x16x16xf32> to vector<16x16xf32>
    %cst_38 = arith.constant dense<0.000000e+00> : vector<8x16xf32>
    %53 = tpu.matmul %50, %52, %cst_38 {dimension_numbers = #tpu.dot_dimension_numbers<[1], [0], [0], [1], [0, 0, 1, 1], [], []>} : vector<8x16xf32>, vector<16x16xf32>, vector<8x16xf32> -> vector<8x16xf32>
    %c1_39 = arith.constant 1 : index
    %c0_40 = arith.constant 0 : index
    %c0_41 = arith.constant 0 : index
    %54 = vector.load %arg5[%c1_39, %c0_40, %c0_41] : memref<3x1x16xf32, #tpu.memory_space<vmem>>, vector<1x1x16xf32>
    %55 = vector.shape_cast %54 : vector<1x1x16xf32> to vector<1x16xf32>
    %56 = vector.broadcast %55 : vector<1x16xf32> to vector<8x16xf32>
    %57 = arith.addf %53, %56 : vector<8x16xf32>
    %cst_42 = arith.constant 3.000000e+00 : f32
    %58 = vector.broadcast %cst_42 : f32 to vector<8x16xf32>
    %59 = arith.mulf %58, %57 : vector<8x16xf32>
    %60 = math.tanh %59 : vector<8x16xf32>
    %cst_43 = arith.constant dense<0.000000e+00> : vector<8x8xf32>
    %61 = tpu.matmul %48, %60, %cst_43 {dimension_numbers = #tpu.dot_dimension_numbers<[1], [1], [0], [0], [0, 0, 1, 0], [], []>} : vector<8x16xf32>, vector<8x16xf32>, vector<8x8xf32> -> vector<8x8xf32>
    %62 = tpu.transpose %61, [1, 0] : vector<8x8xf32> -> vector<8x8xf32>
    %63 = arith.subf %61, %62 : vector<8x8xf32>
    %cst_44 = arith.constant 3.000000e+00 : f32
    %64 = vector.broadcast %cst_44 : f32 to vector<8x8xf32>
    %65 = arith.mulf %64, %63 : vector<8x8xf32>
    %66 = math.tanh %65 : vector<8x8xf32>
    %cst_45 = arith.constant 0.000000e+00 : f32
    %67 = vector.broadcast %cst_45 : f32 to vector<8x8xf32>
    %68 = arith.maximumf %66, %67 : vector<8x8xf32>
    %c1_46 = arith.constant 1 : index
    %c0_47 = arith.constant 0 : index
    %c0_48 = arith.constant 0 : index
    %69 = vector.load %arg6[%c1_46, %c0_47, %c0_48] : memref<3x8x8xf32, #tpu.memory_space<vmem>>, vector<1x8x8xf32>
    %70 = vector.shape_cast %69 : vector<1x8x8xf32> to vector<8x8xf32>
    %71 = vector.shape_cast %68 : vector<8x8xf32> to vector<1x8x8xf32>
    tpu.vector_store %arg6[%c1_46, %c0_47, %c0_48], %71 {strides = array<i32>} : memref<3x8x8xf32, #tpu.memory_space<vmem>>, vector<1x8x8xf32>,
    %cst_49 = arith.constant 6.000000e-01 : f32
    %72 = vector.broadcast %cst_49 : f32 to vector<8x16xf32>
    %73 = arith.mulf %48, %72 : vector<8x16xf32>
    %c2 = arith.constant 2 : index
    %c0_50 = arith.constant 0 : index
    %c0_51 = arith.constant 0 : index
    %74 = vector.load %arg2[%c2, %c0_50, %c0_51] : memref<3x16x16xf32, #tpu.memory_space<vmem>>, vector<1x16x16xf32>
    %75 = vector.shape_cast %74 : vector<1x16x16xf32> to vector<16x16xf32>
    %cst_52 = arith.constant dense<0.000000e+00> : vector<8x16xf32>
    %76 = tpu.matmul %73, %75, %cst_52 {dimension_numbers = #tpu.dot_dimension_numbers<[1], [0], [0], [1], [0, 0, 1, 1], [], []>} : vector<8x16xf32>, vector<16x16xf32>, vector<8x16xf32> -> vector<8x16xf32>
    %c2_53 = arith.constant 2 : index
    %c0_54 = arith.constant 0 : index
    %c0_55 = arith.constant 0 : index
    %77 = vector.load %arg3[%c2_53, %c0_54, %c0_55] : memref<3x1x16xf32, #tpu.memory_space<vmem>>, vector<1x1x16xf32>
    %78 = vector.shape_cast %77 : vector<1x1x16xf32> to vector<1x16xf32>
    %79 = vector.broadcast %78 : vector<1x16xf32> to vector<8x16xf32>
    %80 = arith.addf %76, %79 : vector<8x16xf32>
    %cst_56 = arith.constant 3.000000e+00 : f32
    %81 = vector.broadcast %cst_56 : f32 to vector<8x16xf32>
    %82 = arith.mulf %81, %80 : vector<8x16xf32>
    %83 = math.tanh %82 : vector<8x16xf32>
    %cst_57 = arith.constant 6.000000e-01 : f32
    %84 = vector.broadcast %cst_57 : f32 to vector<8x16xf32>
    %85 = arith.mulf %60, %84 : vector<8x16xf32>
    %c2_58 = arith.constant 2 : index
    %c0_59 = arith.constant 0 : index
    %c0_60 = arith.constant 0 : index
    %86 = vector.load %arg4[%c2_58, %c0_59, %c0_60] : memref<3x16x16xf32, #tpu.memory_space<vmem>>, vector<1x16x16xf32>
    %87 = vector.shape_cast %86 : vector<1x16x16xf32> to vector<16x16xf32>
    %cst_61 = arith.constant dense<0.000000e+00> : vector<8x16xf32>
    %88 = tpu.matmul %85, %87, %cst_61 {dimension_numbers = #tpu.dot_dimension_numbers<[1], [0], [0], [1], [0, 0, 1, 1], [], []>} : vector<8x16xf32>, vector<16x16xf32>, vector<8x16xf32> -> vector<8x16xf32>
    %c2_62 = arith.constant 2 : index
    %c0_63 = arith.constant 0 : index
    %c0_64 = arith.constant 0 : index
    %89 = vector.load %arg5[%c2_62, %c0_63, %c0_64] : memref<3x1x16xf32, #tpu.memory_space<vmem>>, vector<1x1x16xf32>
    %90 = vector.shape_cast %89 : vector<1x1x16xf32> to vector<1x16xf32>
    %91 = vector.broadcast %90 : vector<1x16xf32> to vector<8x16xf32>
    %92 = arith.addf %88, %91 : vector<8x16xf32>
    %cst_65 = arith.constant 3.000000e+00 : f32
    %93 = vector.broadcast %cst_65 : f32 to vector<8x16xf32>
    %94 = arith.mulf %93, %92 : vector<8x16xf32>
    %95 = math.tanh %94 : vector<8x16xf32>
    %cst_66 = arith.constant dense<0.000000e+00> : vector<8x8xf32>
    %96 = tpu.matmul %83, %95, %cst_66 {dimension_numbers = #tpu.dot_dimension_numbers<[1], [1], [0], [0], [0, 0, 1, 0], [], []>} : vector<8x16xf32>, vector<8x16xf32>, vector<8x8xf32> -> vector<8x8xf32>
    %97 = tpu.transpose %96, [1, 0] : vector<8x8xf32> -> vector<8x8xf32>
    %98 = arith.subf %96, %97 : vector<8x8xf32>
    %cst_67 = arith.constant 3.000000e+00 : f32
    %99 = vector.broadcast %cst_67 : f32 to vector<8x8xf32>
    %100 = arith.mulf %99, %98 : vector<8x8xf32>
    %101 = math.tanh %100 : vector<8x8xf32>
    %cst_68 = arith.constant 0.000000e+00 : f32
    %102 = vector.broadcast %cst_68 : f32 to vector<8x8xf32>
    %103 = arith.maximumf %101, %102 : vector<8x8xf32>
    %c2_69 = arith.constant 2 : index
    %c0_70 = arith.constant 0 : index
    %c0_71 = arith.constant 0 : index
    %104 = vector.load %arg6[%c2_69, %c0_70, %c0_71] : memref<3x8x8xf32, #tpu.memory_space<vmem>>, vector<1x8x8xf32>
    %105 = vector.shape_cast %104 : vector<1x8x8xf32> to vector<8x8xf32>
    %106 = vector.shape_cast %103 : vector<8x8xf32> to vector<1x8x8xf32>
    tpu.vector_store %arg6[%c2_69, %c0_70, %c0_71], %106 {strides = array<i32>} : memref<3x8x8xf32, #tpu.memory_space<vmem>>, vector<1x8x8xf32>,
    return
  }
}

module attributes {stable_mosaic.version = 11 : i64} {
  func.func @_magnn_batch_kernel(%arg0: i32, %arg1: memref<1x8x32xf32, #tpu.memory_space<vmem>>, %arg2: memref<3x8x8xf32, #tpu.memory_space<vmem>>, %arg3: memref<3x8x8xf32, #tpu.memory_space<vmem>>, %arg4: memref<32x256xf32, #tpu.memory_space<vmem>>, %arg5: memref<1x256xf32, #tpu.memory_space<vmem>>, %arg6: memref<256x208xf32, #tpu.memory_space<vmem>>, %arg7: memref<208x80xf32, #tpu.memory_space<vmem>>, %arg8: memref<80x24xf32, #tpu.memory_space<vmem>>, %arg9: memref<1x208xf32, #tpu.memory_space<vmem>>, %arg10: memref<1x80xf32, #tpu.memory_space<vmem>>, %arg11: memref<1x24xf32, #tpu.memory_space<vmem>>, %arg12: memref<3x208x208xf32, #tpu.memory_space<vmem>>, %arg13: memref<3x80x80xf32, #tpu.memory_space<vmem>>, %arg14: memref<3x24x24xf32, #tpu.memory_space<vmem>>, %arg15: memref<3x208x208xf32, #tpu.memory_space<vmem>>, %arg16: memref<3x80x80xf32, #tpu.memory_space<vmem>>, %arg17: memref<3x24x24xf32, #tpu.memory_space<vmem>>, %arg18: memref<1x208xf32, #tpu.memory_space<vmem>>, %arg19: memref<1x80xf32, #tpu.memory_space<vmem>>, %arg20: memref<1x24xf32, #tpu.memory_space<vmem>>, %arg21: memref<208x8xf32, #tpu.memory_space<vmem>>, %arg22: memref<80x8xf32, #tpu.memory_space<vmem>>, %arg23: memref<24x8xf32, #tpu.memory_space<vmem>>, %arg24: memref<1x8xf32, #tpu.memory_space<vmem>>, %arg25: memref<1x8xf32, #tpu.memory_space<vmem>>, %arg26: memref<1x8xf32, #tpu.memory_space<vmem>>, %arg27: memref<32x8xf32, #tpu.memory_space<vmem>>, %arg28: memref<1x8xf32, #tpu.memory_space<vmem>>, %arg29: memref<32x4xf32, #tpu.memory_space<vmem>>, %arg30: memref<4x4xf32, #tpu.memory_space<vmem>>, %arg31: memref<8x16xf32, #tpu.memory_space<vmem>>, %arg32: memref<1x16xf32, #tpu.memory_space<vmem>>, %arg33: memref<16x12xf32, #tpu.memory_space<vmem>>, %arg34: memref<1x12xf32, #tpu.memory_space<vmem>>, %arg35: memref<1x8x12xf32, #tpu.memory_space<vmem>>) attributes {dimension_semantics = [#tpu.dimension_semantics<parallel>], iteration_bounds = array<i64: 2>, scalar_prefetch = 0 : i64, scratch_operands = 0 : i64, tpu.core_type = #tpu.core_type<tc>, window_params = [{transform_indices = @transform_0, window_bounds = array<i64: 1, 8, 32>}, {pipeline_mode = #tpu.pipeline_mode<synchronous>, transform_indices = @transform_1, window_bounds = array<i64: 3, 8, 8>}, {pipeline_mode = #tpu.pipeline_mode<synchronous>, transform_indices = @transform_2, window_bounds = array<i64: 3, 8, 8>}, {pipeline_mode = #tpu.pipeline_mode<synchronous>, transform_indices = @transform_3, window_bounds = array<i64: 32, 256>}, {pipeline_mode = #tpu.pipeline_mode<synchronous>, transform_indices = @transform_4, window_bounds = array<i64: 1, 256>}, {pipeline_mode = #tpu.pipeline_mode<synchronous>, transform_indices = @transform_5, window_bounds = array<i64: 256, 208>}, {pipeline_mode = #tpu.pipeline_mode<synchronous>, transform_indices = @transform_6, window_bounds = array<i64: 208, 80>}, {pipeline_mode = #tpu.pipeline_mode<synchronous>, transform_indices = @transform_7, window_bounds = array<i64: 80, 24>}, {pipeline_mode = #tpu.pipeline_mode<synchronous>, transform_indices = @transform_8, window_bounds = array<i64: 1, 208>}, {pipeline_mode = #tpu.pipeline_mode<synchronous>, transform_indices = @transform_9, window_bounds = array<i64: 1, 80>}, {pipeline_mode = #tpu.pipeline_mode<synchronous>, transform_indices = @transform_10, window_bounds = array<i64: 1, 24>}, {pipeline_mode = #tpu.pipeline_mode<synchronous>, transform_indices = @transform_11, window_bounds = array<i64: 3, 208, 208>}, {pipeline_mode = #tpu.pipeline_mode<synchronous>, transform_indices = @transform_12, window_bounds = array<i64: 3, 80, 80>}, {pipeline_mode = #tpu.pipeline_mode<synchronous>, transform_indices = @transform_13, window_bounds = array<i64: 3, 24, 24>}, {pipeline_mode = #tpu.pipeline_mode<synchronous>, transform_indices = @transform_14, window_bounds = array<i64: 3, 208, 208>}, {pipeline_mode = #tpu.pipeline_mode<synchronous>, transform_indices = @transform_15, window_bounds = array<i64: 3, 80, 80>}, {pipeline_mode = #tpu.pipeline_mode<synchronous>, transform_indices = @transform_16, window_bounds = array<i64: 3, 24, 24>}, {pipeline_mode = #tpu.pipeline_mode<synchronous>, transform_indices = @transform_17, window_bounds = array<i64: 1, 208>}, {pipeline_mode = #tpu.pipeline_mode<synchronous>, transform_indices = @transform_18, window_bounds = array<i64: 1, 80>}, {pipeline_mode = #tpu.pipeline_mode<synchronous>, transform_indices = @transform_19, window_bounds = array<i64: 1, 24>}, {pipeline_mode = #tpu.pipeline_mode<synchronous>, transform_indices = @transform_20, window_bounds = array<i64: 208, 8>}, {pipeline_mode = #tpu.pipeline_mode<synchronous>, transform_indices = @transform_21, window_bounds = array<i64: 80, 8>}, {pipeline_mode = #tpu.pipeline_mode<synchronous>, transform_indices = @transform_22, window_bounds = array<i64: 24, 8>}, {pipeline_mode = #tpu.pipeline_mode<synchronous>, transform_indices = @transform_23, window_bounds = array<i64: 1, 8>}, {pipeline_mode = #tpu.pipeline_mode<synchronous>, transform_indices = @transform_24, window_bounds = array<i64: 1, 8>}, {pipeline_mode = #tpu.pipeline_mode<synchronous>, transform_indices = @transform_25, window_bounds = array<i64: 1, 8>}, {pipeline_mode = #tpu.pipeline_mode<synchronous>, transform_indices = @transform_26, window_bounds = array<i64: 32, 8>}, {pipeline_mode = #tpu.pipeline_mode<synchronous>, transform_indices = @transform_27, window_bounds = array<i64: 1, 8>}, {pipeline_mode = #tpu.pipeline_mode<synchronous>, transform_indices = @transform_28, window_bounds = array<i64: 32, 4>}, {pipeline_mode = #tpu.pipeline_mode<synchronous>, transform_indices = @transform_29, window_bounds = array<i64: 4, 4>}, {pipeline_mode = #tpu.pipeline_mode<synchronous>, transform_indices = @transform_30, window_bounds = array<i64: 8, 16>}, {pipeline_mode = #tpu.pipeline_mode<synchronous>, transform_indices = @transform_31, window_bounds = array<i64: 1, 16>}, {pipeline_mode = #tpu.pipeline_mode<synchronous>, transform_indices = @transform_32, window_bounds = array<i64: 16, 12>}, {pipeline_mode = #tpu.pipeline_mode<synchronous>, transform_indices = @transform_33, window_bounds = array<i64: 1, 12>}, {transform_indices = @transform_34, window_bounds = array<i64: 1, 8, 12>}]} {
    %c0 = arith.constant 0 : index
    %c0_0 = arith.constant 0 : index
    %c0_1 = arith.constant 0 : index
    %0 = vector.load %arg1[%c0, %c0_0, %c0_1] : memref<1x8x32xf32, #tpu.memory_space<vmem>>, vector<1x8x32xf32>
    %1 = vector.shape_cast %0 : vector<1x8x32xf32> to vector<8x32xf32>
    %c0_2 = arith.constant 0 : index
    %c0_3 = arith.constant 0 : index
    %2 = vector.load %arg4[%c0_2, %c0_3] : memref<32x256xf32, #tpu.memory_space<vmem>>, vector<32x256xf32>
    %cst = arith.constant dense<0.000000e+00> : vector<8x256xf32>
    %3 = tpu.matmul %1, %2, %cst {dimension_numbers = #tpu.dot_dimension_numbers<[1], [0], [0], [1], [0, 0, 1, 1], [], []>} : vector<8x32xf32>, vector<32x256xf32>, vector<8x256xf32> -> vector<8x256xf32>
    %c0_4 = arith.constant 0 : index
    %c0_5 = arith.constant 0 : index
    %4 = vector.load %arg5[%c0_4, %c0_5] : memref<1x256xf32, #tpu.memory_space<vmem>>, vector<1x256xf32>
    %5 = vector.broadcast %4 : vector<1x256xf32> to vector<8x256xf32>
    %6 = arith.addf %3, %5 : vector<8x256xf32>
    %c0_6 = arith.constant 0 : index
    %c0_7 = arith.constant 0 : index
    %7 = vector.load %arg6[%c0_6, %c0_7] : memref<256x208xf32, #tpu.memory_space<vmem>>, vector<256x208xf32>
    %cst_8 = arith.constant dense<0.000000e+00> : vector<8x208xf32>
    %8 = tpu.matmul %6, %7, %cst_8 {dimension_numbers = #tpu.dot_dimension_numbers<[1], [0], [0], [1], [0, 0, 1, 1], [], []>} : vector<8x256xf32>, vector<256x208xf32>, vector<8x208xf32> -> vector<8x208xf32>
    %c0_9 = arith.constant 0 : index
    %c0_10 = arith.constant 0 : index
    %9 = vector.load %arg9[%c0_9, %c0_10] : memref<1x208xf32, #tpu.memory_space<vmem>>, vector<1x208xf32>
    %10 = vector.broadcast %9 : vector<1x208xf32> to vector<8x208xf32>
    %11 = arith.addf %8, %10 : vector<8x208xf32>
    %c0_11 = arith.constant 0 : index
    %c0_12 = arith.constant 0 : index
    %12 = vector.load %arg7[%c0_11, %c0_12] : memref<208x80xf32, #tpu.memory_space<vmem>>, vector<208x80xf32>
    %cst_13 = arith.constant dense<0.000000e+00> : vector<8x80xf32>
    %13 = tpu.matmul %11, %12, %cst_13 {dimension_numbers = #tpu.dot_dimension_numbers<[1], [0], [0], [1], [0, 0, 1, 1], [], []>} : vector<8x208xf32>, vector<208x80xf32>, vector<8x80xf32> -> vector<8x80xf32>
    %c0_14 = arith.constant 0 : index
    %c0_15 = arith.constant 0 : index
    %14 = vector.load %arg10[%c0_14, %c0_15] : memref<1x80xf32, #tpu.memory_space<vmem>>, vector<1x80xf32>
    %15 = vector.broadcast %14 : vector<1x80xf32> to vector<8x80xf32>
    %16 = arith.addf %13, %15 : vector<8x80xf32>
    %c0_16 = arith.constant 0 : index
    %c0_17 = arith.constant 0 : index
    %17 = vector.load %arg8[%c0_16, %c0_17] : memref<80x24xf32, #tpu.memory_space<vmem>>, vector<80x24xf32>
    %cst_18 = arith.constant dense<0.000000e+00> : vector<8x24xf32>
    %18 = tpu.matmul %16, %17, %cst_18 {dimension_numbers = #tpu.dot_dimension_numbers<[1], [0], [0], [1], [0, 0, 1, 1], [], []>} : vector<8x80xf32>, vector<80x24xf32>, vector<8x24xf32> -> vector<8x24xf32>
    %c0_19 = arith.constant 0 : index
    %c0_20 = arith.constant 0 : index
    %19 = vector.load %arg11[%c0_19, %c0_20] : memref<1x24xf32, #tpu.memory_space<vmem>>, vector<1x24xf32>
    %20 = vector.broadcast %19 : vector<1x24xf32> to vector<8x24xf32>
    %21 = arith.addf %18, %20 : vector<8x24xf32>
    %c0_21 = arith.constant 0 : index
    %c0_22 = arith.constant 0 : index
    %22 = vector.load %arg27[%c0_21, %c0_22] : memref<32x8xf32, #tpu.memory_space<vmem>>, vector<32x8xf32>
    %cst_23 = arith.constant dense<0.000000e+00> : vector<8x8xf32>
    %23 = tpu.matmul %1, %22, %cst_23 {dimension_numbers = #tpu.dot_dimension_numbers<[1], [0], [0], [1], [0, 0, 1, 1], [], []>} : vector<8x32xf32>, vector<32x8xf32>, vector<8x8xf32> -> vector<8x8xf32>
    %c0_24 = arith.constant 0 : index
    %c0_25 = arith.constant 0 : index
    %24 = vector.load %arg28[%c0_24, %c0_25] : memref<1x8xf32, #tpu.memory_space<vmem>>, vector<1x8xf32>
    %25 = vector.broadcast %24 : vector<1x8xf32> to vector<8x8xf32>
    %26 = arith.addf %23, %25 : vector<8x8xf32>
    %c0_26 = arith.constant 0 : index
    %c0_27 = arith.constant 0 : index
    %c0_28 = arith.constant 0 : index
    %27 = vector.load %arg2[%c0_26, %c0_27, %c0_28] : memref<3x8x8xf32, #tpu.memory_space<vmem>>, vector<1x8x8xf32>
    %28 = vector.shape_cast %27 : vector<1x8x8xf32> to vector<8x8xf32>
    %c0_29 = arith.constant 0 : index
    %c0_30 = arith.constant 0 : index
    %c0_31 = arith.constant 0 : index
    %29 = vector.load %arg3[%c0_29, %c0_30, %c0_31] : memref<3x8x8xf32, #tpu.memory_space<vmem>>, vector<1x8x8xf32>
    %30 = vector.shape_cast %29 : vector<1x8x8xf32> to vector<8x8xf32>
    %c0_32 = arith.constant 0 : index
    %c0_33 = arith.constant 0 : index
    %c0_34 = arith.constant 0 : index
    %31 = vector.load %arg12[%c0_32, %c0_33, %c0_34] : memref<3x208x208xf32, #tpu.memory_space<vmem>>, vector<1x208x208xf32>
    %32 = vector.shape_cast %31 : vector<1x208x208xf32> to vector<208x208xf32>
    %cst_35 = arith.constant dense<0.000000e+00> : vector<8x208xf32>
    %33 = tpu.matmul %11, %32, %cst_35 {dimension_numbers = #tpu.dot_dimension_numbers<[1], [0], [0], [1], [0, 0, 1, 1], [], []>} : vector<8x208xf32>, vector<208x208xf32>, vector<8x208xf32> -> vector<8x208xf32>
    %c0_36 = arith.constant 0 : index
    %c0_37 = arith.constant 0 : index
    %c0_38 = arith.constant 0 : index
    %34 = vector.load %arg15[%c0_36, %c0_37, %c0_38] : memref<3x208x208xf32, #tpu.memory_space<vmem>>, vector<1x208x208xf32>
    %35 = vector.shape_cast %34 : vector<1x208x208xf32> to vector<208x208xf32>
    %cst_39 = arith.constant dense<0.000000e+00> : vector<8x208xf32>
    %36 = tpu.matmul %11, %35, %cst_39 {dimension_numbers = #tpu.dot_dimension_numbers<[1], [0], [0], [1], [0, 0, 1, 1], [], []>} : vector<8x208xf32>, vector<208x208xf32>, vector<8x208xf32> -> vector<8x208xf32>
    %37 = arith.addf %33, %36 : vector<8x208xf32>
    %cst_40 = arith.constant 5.000000e-02 : f32
    %38 = vector.broadcast %cst_40 : f32 to vector<8x208xf32>
    %39 = arith.mulf %38, %11 : vector<8x208xf32>
    %cst_41 = arith.constant dense<0.000000e+00> : vector<8x208xf32>
    %40 = tpu.matmul %28, %11, %cst_41 {dimension_numbers = #tpu.dot_dimension_numbers<[1], [0], [0], [1], [0, 0, 1, 1], [], []>} : vector<8x8xf32>, vector<8x208xf32>, vector<8x208xf32> -> vector<8x208xf32>
    %cst_42 = arith.constant 0.949999988 : f32
    %41 = vector.broadcast %cst_42 : f32 to vector<8x208xf32>
    %42 = arith.mulf %41, %40 : vector<8x208xf32>
    %43 = arith.addf %39, %42 : vector<8x208xf32>
    %cst_43 = arith.constant 5.000000e-02 : f32
    %44 = vector.broadcast %cst_43 : f32 to vector<8x208xf32>
    %45 = arith.mulf %44, %11 : vector<8x208xf32>
    %cst_44 = arith.constant dense<0.000000e+00> : vector<8x208xf32>
    %46 = tpu.matmul %30, %11, %cst_44 {dimension_numbers = #tpu.dot_dimension_numbers<[1], [0], [0], [1], [0, 0, 1, 1], [], []>} : vector<8x8xf32>, vector<8x208xf32>, vector<8x208xf32> -> vector<8x208xf32>
    %cst_45 = arith.constant 0.949999988 : f32
    %47 = vector.broadcast %cst_45 : f32 to vector<8x208xf32>
    %48 = arith.mulf %47, %46 : vector<8x208xf32>
    %49 = arith.addf %45, %48 : vector<8x208xf32>
    %c1 = arith.constant 1 : index
    %c0_46 = arith.constant 0 : index
    %c0_47 = arith.constant 0 : index
    %50 = vector.load %arg12[%c1, %c0_46, %c0_47] : memref<3x208x208xf32, #tpu.memory_space<vmem>>, vector<1x208x208xf32>
    %51 = vector.shape_cast %50 : vector<1x208x208xf32> to vector<208x208xf32>
    %cst_48 = arith.constant dense<0.000000e+00> : vector<8x208xf32>
    %52 = tpu.matmul %43, %51, %cst_48 {dimension_numbers = #tpu.dot_dimension_numbers<[1], [0], [0], [1], [0, 0, 1, 1], [], []>} : vector<8x208xf32>, vector<208x208xf32>, vector<8x208xf32> -> vector<8x208xf32>
    %53 = arith.addf %37, %52 : vector<8x208xf32>
    %c1_49 = arith.constant 1 : index
    %c0_50 = arith.constant 0 : index
    %c0_51 = arith.constant 0 : index
    %54 = vector.load %arg15[%c1_49, %c0_50, %c0_51] : memref<3x208x208xf32, #tpu.memory_space<vmem>>, vector<1x208x208xf32>
    %55 = vector.shape_cast %54 : vector<1x208x208xf32> to vector<208x208xf32>
    %cst_52 = arith.constant dense<0.000000e+00> : vector<8x208xf32>
    %56 = tpu.matmul %49, %55, %cst_52 {dimension_numbers = #tpu.dot_dimension_numbers<[1], [0], [0], [1], [0, 0, 1, 1], [], []>} : vector<8x208xf32>, vector<208x208xf32>, vector<8x208xf32> -> vector<8x208xf32>
    %57 = arith.addf %53, %56 : vector<8x208xf32>
    %cst_53 = arith.constant 5.000000e-02 : f32
    %58 = vector.broadcast %cst_53 : f32 to vector<8x208xf32>
    %59 = arith.mulf %58, %11 : vector<8x208xf32>
    %cst_54 = arith.constant dense<0.000000e+00> : vector<8x208xf32>
    %60 = tpu.matmul %28, %43, %cst_54 {dimension_numbers = #tpu.dot_dimension_numbers<[1], [0], [0], [1], [0, 0, 1, 1], [], []>} : vector<8x8xf32>, vector<8x208xf32>, vector<8x208xf32> -> vector<8x208xf32>
    %cst_55 = arith.constant 0.949999988 : f32
    %61 = vector.broadcast %cst_55 : f32 to vector<8x208xf32>
    %62 = arith.mulf %61, %60 : vector<8x208xf32>
    %63 = arith.addf %59, %62 : vector<8x208xf32>
    %cst_56 = arith.constant 5.000000e-02 : f32
    %64 = vector.broadcast %cst_56 : f32 to vector<8x208xf32>
    %65 = arith.mulf %64, %11 : vector<8x208xf32>
    %cst_57 = arith.constant dense<0.000000e+00> : vector<8x208xf32>
    %66 = tpu.matmul %30, %49, %cst_57 {dimension_numbers = #tpu.dot_dimension_numbers<[1], [0], [0], [1], [0, 0, 1, 1], [], []>} : vector<8x8xf32>, vector<8x208xf32>, vector<8x208xf32> -> vector<8x208xf32>
    %cst_58 = arith.constant 0.949999988 : f32
    %67 = vector.broadcast %cst_58 : f32 to vector<8x208xf32>
    %68 = arith.mulf %67, %66 : vector<8x208xf32>
    %69 = arith.addf %65, %68 : vector<8x208xf32>
    %c2 = arith.constant 2 : index
    %c0_59 = arith.constant 0 : index
    %c0_60 = arith.constant 0 : index
    %70 = vector.load %arg12[%c2, %c0_59, %c0_60] : memref<3x208x208xf32, #tpu.memory_space<vmem>>, vector<1x208x208xf32>
    %71 = vector.shape_cast %70 : vector<1x208x208xf32> to vector<208x208xf32>
    %cst_61 = arith.constant dense<0.000000e+00> : vector<8x208xf32>
    %72 = tpu.matmul %63, %71, %cst_61 {dimension_numbers = #tpu.dot_dimension_numbers<[1], [0], [0], [1], [0, 0, 1, 1], [], []>} : vector<8x208xf32>, vector<208x208xf32>, vector<8x208xf32> -> vector<8x208xf32>
    %73 = arith.addf %57, %72 : vector<8x208xf32>
    %c2_62 = arith.constant 2 : index
    %c0_63 = arith.constant 0 : index
    %c0_64 = arith.constant 0 : index
    %74 = vector.load %arg15[%c2_62, %c0_63, %c0_64] : memref<3x208x208xf32, #tpu.memory_space<vmem>>, vector<1x208x208xf32>
    %75 = vector.shape_cast %74 : vector<1x208x208xf32> to vector<208x208xf32>
    %cst_65 = arith.constant dense<0.000000e+00> : vector<8x208xf32>
    %76 = tpu.matmul %69, %75, %cst_65 {dimension_numbers = #tpu.dot_dimension_numbers<[1], [0], [0], [1], [0, 0, 1, 1], [], []>} : vector<8x208xf32>, vector<208x208xf32>, vector<8x208xf32> -> vector<8x208xf32>
    %77 = arith.addf %73, %76 : vector<8x208xf32>
    %c0_66 = arith.constant 0 : index
    %c0_67 = arith.constant 0 : index
    %78 = vector.load %arg18[%c0_66, %c0_67] : memref<1x208xf32, #tpu.memory_space<vmem>>, vector<1x208xf32>
    %79 = vector.broadcast %78 : vector<1x208xf32> to vector<8x208xf32>
    %80 = arith.addf %77, %79 : vector<8x208xf32>
    %c0_68 = arith.constant 0 : index
    %c0_69 = arith.constant 0 : index
    %81 = vector.load %arg21[%c0_68, %c0_69] : memref<208x8xf32, #tpu.memory_space<vmem>>, vector<208x8xf32>
    %cst_70 = arith.constant dense<0.000000e+00> : vector<8x8xf32>
    %82 = tpu.matmul %80, %81, %cst_70 {dimension_numbers = #tpu.dot_dimension_numbers<[1], [0], [0], [1], [0, 0, 1, 1], [], []>} : vector<8x208xf32>, vector<208x8xf32>, vector<8x8xf32> -> vector<8x8xf32>
    %c0_71 = arith.constant 0 : index
    %c0_72 = arith.constant 0 : index
    %83 = vector.load %arg24[%c0_71, %c0_72] : memref<1x8xf32, #tpu.memory_space<vmem>>, vector<1x8xf32>
    %84 = vector.broadcast %83 : vector<1x8xf32> to vector<8x8xf32>
    %85 = arith.addf %82, %84 : vector<8x8xf32>
    %c1_73 = arith.constant 1 : index
    %c0_74 = arith.constant 0 : index
    %c0_75 = arith.constant 0 : index
    %86 = vector.load %arg2[%c1_73, %c0_74, %c0_75] : memref<3x8x8xf32, #tpu.memory_space<vmem>>, vector<1x8x8xf32>
    %87 = vector.shape_cast %86 : vector<1x8x8xf32> to vector<8x8xf32>
    %c1_76 = arith.constant 1 : index
    %c0_77 = arith.constant 0 : index
    %c0_78 = arith.constant 0 : index
    %88 = vector.load %arg3[%c1_76, %c0_77, %c0_78] : memref<3x8x8xf32, #tpu.memory_space<vmem>>, vector<1x8x8xf32>
    %89 = vector.shape_cast %88 : vector<1x8x8xf32> to vector<8x8xf32>
    %c0_79 = arith.constant 0 : index
    %c0_80 = arith.constant 0 : index
    %c0_81 = arith.constant 0 : index
    %90 = vector.load %arg13[%c0_79, %c0_80, %c0_81] : memref<3x80x80xf32, #tpu.memory_space<vmem>>, vector<1x80x80xf32>
    %91 = vector.shape_cast %90 : vector<1x80x80xf32> to vector<80x80xf32>
    %cst_82 = arith.constant dense<0.000000e+00> : vector<8x80xf32>
    %92 = tpu.matmul %16, %91, %cst_82 {dimension_numbers = #tpu.dot_dimension_numbers<[1], [0], [0], [1], [0, 0, 1, 1], [], []>} : vector<8x80xf32>, vector<80x80xf32>, vector<8x80xf32> -> vector<8x80xf32>
    %c0_83 = arith.constant 0 : index
    %c0_84 = arith.constant 0 : index
    %c0_85 = arith.constant 0 : index
    %93 = vector.load %arg16[%c0_83, %c0_84, %c0_85] : memref<3x80x80xf32, #tpu.memory_space<vmem>>, vector<1x80x80xf32>
    %94 = vector.shape_cast %93 : vector<1x80x80xf32> to vector<80x80xf32>
    %cst_86 = arith.constant dense<0.000000e+00> : vector<8x80xf32>
    %95 = tpu.matmul %16, %94, %cst_86 {dimension_numbers = #tpu.dot_dimension_numbers<[1], [0], [0], [1], [0, 0, 1, 1], [], []>} : vector<8x80xf32>, vector<80x80xf32>, vector<8x80xf32> -> vector<8x80xf32>
    %96 = arith.addf %92, %95 : vector<8x80xf32>
    %cst_87 = arith.constant 5.000000e-02 : f32
    %97 = vector.broadcast %cst_87 : f32 to vector<8x80xf32>
    %98 = arith.mulf %97, %16 : vector<8x80xf32>
    %cst_88 = arith.constant dense<0.000000e+00> : vector<8x80xf32>
    %99 = tpu.matmul %87, %16, %cst_88 {dimension_numbers = #tpu.dot_dimension_numbers<[1], [0], [0], [1], [0, 0, 1, 1], [], []>} : vector<8x8xf32>, vector<8x80xf32>, vector<8x80xf32> -> vector<8x80xf32>
    %cst_89 = arith.constant 0.949999988 : f32
    %100 = vector.broadcast %cst_89 : f32 to vector<8x80xf32>
    %101 = arith.mulf %100, %99 : vector<8x80xf32>
    %102 = arith.addf %98, %101 : vector<8x80xf32>
    %cst_90 = arith.constant 5.000000e-02 : f32
    %103 = vector.broadcast %cst_90 : f32 to vector<8x80xf32>
    %104 = arith.mulf %103, %16 : vector<8x80xf32>
    %cst_91 = arith.constant dense<0.000000e+00> : vector<8x80xf32>
    %105 = tpu.matmul %89, %16, %cst_91 {dimension_numbers = #tpu.dot_dimension_numbers<[1], [0], [0], [1], [0, 0, 1, 1], [], []>} : vector<8x8xf32>, vector<8x80xf32>, vector<8x80xf32> -> vector<8x80xf32>
    %cst_92 = arith.constant 0.949999988 : f32
    %106 = vector.broadcast %cst_92 : f32 to vector<8x80xf32>
    %107 = arith.mulf %106, %105 : vector<8x80xf32>
    %108 = arith.addf %104, %107 : vector<8x80xf32>
    %c1_93 = arith.constant 1 : index
    %c0_94 = arith.constant 0 : index
    %c0_95 = arith.constant 0 : index
    %109 = vector.load %arg13[%c1_93, %c0_94, %c0_95] : memref<3x80x80xf32, #tpu.memory_space<vmem>>, vector<1x80x80xf32>
    %110 = vector.shape_cast %109 : vector<1x80x80xf32> to vector<80x80xf32>
    %cst_96 = arith.constant dense<0.000000e+00> : vector<8x80xf32>
    %111 = tpu.matmul %102, %110, %cst_96 {dimension_numbers = #tpu.dot_dimension_numbers<[1], [0], [0], [1], [0, 0, 1, 1], [], []>} : vector<8x80xf32>, vector<80x80xf32>, vector<8x80xf32> -> vector<8x80xf32>
    %112 = arith.addf %96, %111 : vector<8x80xf32>
    %c1_97 = arith.constant 1 : index
    %c0_98 = arith.constant 0 : index
    %c0_99 = arith.constant 0 : index
    %113 = vector.load %arg16[%c1_97, %c0_98, %c0_99] : memref<3x80x80xf32, #tpu.memory_space<vmem>>, vector<1x80x80xf32>
    %114 = vector.shape_cast %113 : vector<1x80x80xf32> to vector<80x80xf32>
    %cst_100 = arith.constant dense<0.000000e+00> : vector<8x80xf32>
    %115 = tpu.matmul %108, %114, %cst_100 {dimension_numbers = #tpu.dot_dimension_numbers<[1], [0], [0], [1], [0, 0, 1, 1], [], []>} : vector<8x80xf32>, vector<80x80xf32>, vector<8x80xf32> -> vector<8x80xf32>
    %116 = arith.addf %112, %115 : vector<8x80xf32>
    %cst_101 = arith.constant 5.000000e-02 : f32
    %117 = vector.broadcast %cst_101 : f32 to vector<8x80xf32>
    %118 = arith.mulf %117, %16 : vector<8x80xf32>
    %cst_102 = arith.constant dense<0.000000e+00> : vector<8x80xf32>
    %119 = tpu.matmul %87, %102, %cst_102 {dimension_numbers = #tpu.dot_dimension_numbers<[1], [0], [0], [1], [0, 0, 1, 1], [], []>} : vector<8x8xf32>, vector<8x80xf32>, vector<8x80xf32> -> vector<8x80xf32>
    %cst_103 = arith.constant 0.949999988 : f32
    %120 = vector.broadcast %cst_103 : f32 to vector<8x80xf32>
    %121 = arith.mulf %120, %119 : vector<8x80xf32>
    %122 = arith.addf %118, %121 : vector<8x80xf32>
    %cst_104 = arith.constant 5.000000e-02 : f32
    %123 = vector.broadcast %cst_104 : f32 to vector<8x80xf32>
    %124 = arith.mulf %123, %16 : vector<8x80xf32>
    %cst_105 = arith.constant dense<0.000000e+00> : vector<8x80xf32>
    %125 = tpu.matmul %89, %108, %cst_105 {dimension_numbers = #tpu.dot_dimension_numbers<[1], [0], [0], [1], [0, 0, 1, 1], [], []>} : vector<8x8xf32>, vector<8x80xf32>, vector<8x80xf32> -> vector<8x80xf32>
    %cst_106 = arith.constant 0.949999988 : f32
    %126 = vector.broadcast %cst_106 : f32 to vector<8x80xf32>
    %127 = arith.mulf %126, %125 : vector<8x80xf32>
    %128 = arith.addf %124, %127 : vector<8x80xf32>
    %c2_107 = arith.constant 2 : index
    %c0_108 = arith.constant 0 : index
    %c0_109 = arith.constant 0 : index
    %129 = vector.load %arg13[%c2_107, %c0_108, %c0_109] : memref<3x80x80xf32, #tpu.memory_space<vmem>>, vector<1x80x80xf32>
    %130 = vector.shape_cast %129 : vector<1x80x80xf32> to vector<80x80xf32>
    %cst_110 = arith.constant dense<0.000000e+00> : vector<8x80xf32>
    %131 = tpu.matmul %122, %130, %cst_110 {dimension_numbers = #tpu.dot_dimension_numbers<[1], [0], [0], [1], [0, 0, 1, 1], [], []>} : vector<8x80xf32>, vector<80x80xf32>, vector<8x80xf32> -> vector<8x80xf32>
    %132 = arith.addf %116, %131 : vector<8x80xf32>
    %c2_111 = arith.constant 2 : index
    %c0_112 = arith.constant 0 : index
    %c0_113 = arith.constant 0 : index
    %133 = vector.load %arg16[%c2_111, %c0_112, %c0_113] : memref<3x80x80xf32, #tpu.memory_space<vmem>>, vector<1x80x80xf32>
    %134 = vector.shape_cast %133 : vector<1x80x80xf32> to vector<80x80xf32>
    %cst_114 = arith.constant dense<0.000000e+00> : vector<8x80xf32>
    %135 = tpu.matmul %128, %134, %cst_114 {dimension_numbers = #tpu.dot_dimension_numbers<[1], [0], [0], [1], [0, 0, 1, 1], [], []>} : vector<8x80xf32>, vector<80x80xf32>, vector<8x80xf32> -> vector<8x80xf32>
    %136 = arith.addf %132, %135 : vector<8x80xf32>
    %c0_115 = arith.constant 0 : index
    %c0_116 = arith.constant 0 : index
    %137 = vector.load %arg19[%c0_115, %c0_116] : memref<1x80xf32, #tpu.memory_space<vmem>>, vector<1x80xf32>
    %138 = vector.broadcast %137 : vector<1x80xf32> to vector<8x80xf32>
    %139 = arith.addf %136, %138 : vector<8x80xf32>
    %c0_117 = arith.constant 0 : index
    %c0_118 = arith.constant 0 : index
    %140 = vector.load %arg22[%c0_117, %c0_118] : memref<80x8xf32, #tpu.memory_space<vmem>>, vector<80x8xf32>
    %cst_119 = arith.constant dense<0.000000e+00> : vector<8x8xf32>
    %141 = tpu.matmul %139, %140, %cst_119 {dimension_numbers = #tpu.dot_dimension_numbers<[1], [0], [0], [1], [0, 0, 1, 1], [], []>} : vector<8x80xf32>, vector<80x8xf32>, vector<8x8xf32> -> vector<8x8xf32>
    %c0_120 = arith.constant 0 : index
    %c0_121 = arith.constant 0 : index
    %142 = vector.load %arg25[%c0_120, %c0_121] : memref<1x8xf32, #tpu.memory_space<vmem>>, vector<1x8xf32>
    %143 = vector.broadcast %142 : vector<1x8xf32> to vector<8x8xf32>
    %144 = arith.addf %141, %143 : vector<8x8xf32>
    %c2_122 = arith.constant 2 : index
    %c0_123 = arith.constant 0 : index
    %c0_124 = arith.constant 0 : index
    %145 = vector.load %arg2[%c2_122, %c0_123, %c0_124] : memref<3x8x8xf32, #tpu.memory_space<vmem>>, vector<1x8x8xf32>
    %146 = vector.shape_cast %145 : vector<1x8x8xf32> to vector<8x8xf32>
    %c2_125 = arith.constant 2 : index
    %c0_126 = arith.constant 0 : index
    %c0_127 = arith.constant 0 : index
    %147 = vector.load %arg3[%c2_125, %c0_126, %c0_127] : memref<3x8x8xf32, #tpu.memory_space<vmem>>, vector<1x8x8xf32>
    %148 = vector.shape_cast %147 : vector<1x8x8xf32> to vector<8x8xf32>
    %c0_128 = arith.constant 0 : index
    %c0_129 = arith.constant 0 : index
    %c0_130 = arith.constant 0 : index
    %149 = vector.load %arg14[%c0_128, %c0_129, %c0_130] : memref<3x24x24xf32, #tpu.memory_space<vmem>>, vector<1x24x24xf32>
    %150 = vector.shape_cast %149 : vector<1x24x24xf32> to vector<24x24xf32>
    %cst_131 = arith.constant dense<0.000000e+00> : vector<8x24xf32>
    %151 = tpu.matmul %21, %150, %cst_131 {dimension_numbers = #tpu.dot_dimension_numbers<[1], [0], [0], [1], [0, 0, 1, 1], [], []>} : vector<8x24xf32>, vector<24x24xf32>, vector<8x24xf32> -> vector<8x24xf32>
    %c0_132 = arith.constant 0 : index
    %c0_133 = arith.constant 0 : index
    %c0_134 = arith.constant 0 : index
    %152 = vector.load %arg17[%c0_132, %c0_133, %c0_134] : memref<3x24x24xf32, #tpu.memory_space<vmem>>, vector<1x24x24xf32>
    %153 = vector.shape_cast %152 : vector<1x24x24xf32> to vector<24x24xf32>
    %cst_135 = arith.constant dense<0.000000e+00> : vector<8x24xf32>
    %154 = tpu.matmul %21, %153, %cst_135 {dimension_numbers = #tpu.dot_dimension_numbers<[1], [0], [0], [1], [0, 0, 1, 1], [], []>} : vector<8x24xf32>, vector<24x24xf32>, vector<8x24xf32> -> vector<8x24xf32>
    %155 = arith.addf %151, %154 : vector<8x24xf32>
    %cst_136 = arith.constant 5.000000e-02 : f32
    %156 = vector.broadcast %cst_136 : f32 to vector<8x24xf32>
    %157 = arith.mulf %156, %21 : vector<8x24xf32>
    %cst_137 = arith.constant dense<0.000000e+00> : vector<8x24xf32>
    %158 = tpu.matmul %146, %21, %cst_137 {dimension_numbers = #tpu.dot_dimension_numbers<[1], [0], [0], [1], [0, 0, 1, 1], [], []>} : vector<8x8xf32>, vector<8x24xf32>, vector<8x24xf32> -> vector<8x24xf32>
    %cst_138 = arith.constant 0.949999988 : f32
    %159 = vector.broadcast %cst_138 : f32 to vector<8x24xf32>
    %160 = arith.mulf %159, %158 : vector<8x24xf32>
    %161 = arith.addf %157, %160 : vector<8x24xf32>
    %cst_139 = arith.constant 5.000000e-02 : f32
    %162 = vector.broadcast %cst_139 : f32 to vector<8x24xf32>
    %163 = arith.mulf %162, %21 : vector<8x24xf32>
    %cst_140 = arith.constant dense<0.000000e+00> : vector<8x24xf32>
    %164 = tpu.matmul %148, %21, %cst_140 {dimension_numbers = #tpu.dot_dimension_numbers<[1], [0], [0], [1], [0, 0, 1, 1], [], []>} : vector<8x8xf32>, vector<8x24xf32>, vector<8x24xf32> -> vector<8x24xf32>
    %cst_141 = arith.constant 0.949999988 : f32
    %165 = vector.broadcast %cst_141 : f32 to vector<8x24xf32>
    %166 = arith.mulf %165, %164 : vector<8x24xf32>
    %167 = arith.addf %163, %166 : vector<8x24xf32>
    %c1_142 = arith.constant 1 : index
    %c0_143 = arith.constant 0 : index
    %c0_144 = arith.constant 0 : index
    %168 = vector.load %arg14[%c1_142, %c0_143, %c0_144] : memref<3x24x24xf32, #tpu.memory_space<vmem>>, vector<1x24x24xf32>
    %169 = vector.shape_cast %168 : vector<1x24x24xf32> to vector<24x24xf32>
    %cst_145 = arith.constant dense<0.000000e+00> : vector<8x24xf32>
    %170 = tpu.matmul %161, %169, %cst_145 {dimension_numbers = #tpu.dot_dimension_numbers<[1], [0], [0], [1], [0, 0, 1, 1], [], []>} : vector<8x24xf32>, vector<24x24xf32>, vector<8x24xf32> -> vector<8x24xf32>
    %171 = arith.addf %155, %170 : vector<8x24xf32>
    %c1_146 = arith.constant 1 : index
    %c0_147 = arith.constant 0 : index
    %c0_148 = arith.constant 0 : index
    %172 = vector.load %arg17[%c1_146, %c0_147, %c0_148] : memref<3x24x24xf32, #tpu.memory_space<vmem>>, vector<1x24x24xf32>
    %173 = vector.shape_cast %172 : vector<1x24x24xf32> to vector<24x24xf32>
    %cst_149 = arith.constant dense<0.000000e+00> : vector<8x24xf32>
    %174 = tpu.matmul %167, %173, %cst_149 {dimension_numbers = #tpu.dot_dimension_numbers<[1], [0], [0], [1], [0, 0, 1, 1], [], []>} : vector<8x24xf32>, vector<24x24xf32>, vector<8x24xf32> -> vector<8x24xf32>
    %175 = arith.addf %171, %174 : vector<8x24xf32>
    %cst_150 = arith.constant 5.000000e-02 : f32
    %176 = vector.broadcast %cst_150 : f32 to vector<8x24xf32>
    %177 = arith.mulf %176, %21 : vector<8x24xf32>
    %cst_151 = arith.constant dense<0.000000e+00> : vector<8x24xf32>
    %178 = tpu.matmul %146, %161, %cst_151 {dimension_numbers = #tpu.dot_dimension_numbers<[1], [0], [0], [1], [0, 0, 1, 1], [], []>} : vector<8x8xf32>, vector<8x24xf32>, vector<8x24xf32> -> vector<8x24xf32>
    %cst_152 = arith.constant 0.949999988 : f32
    %179 = vector.broadcast %cst_152 : f32 to vector<8x24xf32>
    %180 = arith.mulf %179, %178 : vector<8x24xf32>
    %181 = arith.addf %177, %180 : vector<8x24xf32>
    %cst_153 = arith.constant 5.000000e-02 : f32
    %182 = vector.broadcast %cst_153 : f32 to vector<8x24xf32>
    %183 = arith.mulf %182, %21 : vector<8x24xf32>
    %cst_154 = arith.constant dense<0.000000e+00> : vector<8x24xf32>
    %184 = tpu.matmul %148, %167, %cst_154 {dimension_numbers = #tpu.dot_dimension_numbers<[1], [0], [0], [1], [0, 0, 1, 1], [], []>} : vector<8x8xf32>, vector<8x24xf32>, vector<8x24xf32> -> vector<8x24xf32>
    %cst_155 = arith.constant 0.949999988 : f32
    %185 = vector.broadcast %cst_155 : f32 to vector<8x24xf32>
    %186 = arith.mulf %185, %184 : vector<8x24xf32>
    %187 = arith.addf %183, %186 : vector<8x24xf32>
    %c2_156 = arith.constant 2 : index
    %c0_157 = arith.constant 0 : index
    %c0_158 = arith.constant 0 : index
    %188 = vector.load %arg14[%c2_156, %c0_157, %c0_158] : memref<3x24x24xf32, #tpu.memory_space<vmem>>, vector<1x24x24xf32>
    %189 = vector.shape_cast %188 : vector<1x24x24xf32> to vector<24x24xf32>
    %cst_159 = arith.constant dense<0.000000e+00> : vector<8x24xf32>
    %190 = tpu.matmul %181, %189, %cst_159 {dimension_numbers = #tpu.dot_dimension_numbers<[1], [0], [0], [1], [0, 0, 1, 1], [], []>} : vector<8x24xf32>, vector<24x24xf32>, vector<8x24xf32> -> vector<8x24xf32>
    %191 = arith.addf %175, %190 : vector<8x24xf32>
    %c2_160 = arith.constant 2 : index
    %c0_161 = arith.constant 0 : index
    %c0_162 = arith.constant 0 : index
    %192 = vector.load %arg17[%c2_160, %c0_161, %c0_162] : memref<3x24x24xf32, #tpu.memory_space<vmem>>, vector<1x24x24xf32>
    %193 = vector.shape_cast %192 : vector<1x24x24xf32> to vector<24x24xf32>
    %cst_163 = arith.constant dense<0.000000e+00> : vector<8x24xf32>
    %194 = tpu.matmul %187, %193, %cst_163 {dimension_numbers = #tpu.dot_dimension_numbers<[1], [0], [0], [1], [0, 0, 1, 1], [], []>} : vector<8x24xf32>, vector<24x24xf32>, vector<8x24xf32> -> vector<8x24xf32>
    %195 = arith.addf %191, %194 : vector<8x24xf32>
    %c0_164 = arith.constant 0 : index
    %c0_165 = arith.constant 0 : index
    %196 = vector.load %arg20[%c0_164, %c0_165] : memref<1x24xf32, #tpu.memory_space<vmem>>, vector<1x24xf32>
    %197 = vector.broadcast %196 : vector<1x24xf32> to vector<8x24xf32>
    %198 = arith.addf %195, %197 : vector<8x24xf32>
    %c0_166 = arith.constant 0 : index
    %c0_167 = arith.constant 0 : index
    %199 = vector.load %arg23[%c0_166, %c0_167] : memref<24x8xf32, #tpu.memory_space<vmem>>, vector<24x8xf32>
    %cst_168 = arith.constant dense<0.000000e+00> : vector<8x8xf32>
    %200 = tpu.matmul %198, %199, %cst_168 {dimension_numbers = #tpu.dot_dimension_numbers<[1], [0], [0], [1], [0, 0, 1, 1], [], []>} : vector<8x24xf32>, vector<24x8xf32>, vector<8x8xf32> -> vector<8x8xf32>
    %c0_169 = arith.constant 0 : index
    %c0_170 = arith.constant 0 : index
    %201 = vector.load %arg26[%c0_169, %c0_170] : memref<1x8xf32, #tpu.memory_space<vmem>>, vector<1x8xf32>
    %202 = vector.broadcast %201 : vector<1x8xf32> to vector<8x8xf32>
    %203 = arith.addf %200, %202 : vector<8x8xf32>
    %c0_171 = arith.constant 0 : index
    %c0_172 = arith.constant 0 : index
    %204 = vector.load %arg29[%c0_171, %c0_172] : memref<32x4xf32, #tpu.memory_space<vmem>>, vector<32x4xf32>
    %cst_173 = arith.constant dense<0.000000e+00> : vector<8xf32>
    %205 = vector.multi_reduction <add>, %26, %cst_173 [0] : vector<8x8xf32> to vector<8xf32>
    %206 = vector.shape_cast %205 : vector<8xf32> to vector<1x8xf32>
    %cst_174 = arith.constant 8.000000e+00 : f32
    %207 = vector.broadcast %cst_174 : f32 to vector<1x8xf32>
    %208 = arith.divf %206, %207 : vector<1x8xf32>
    %209 = vector.extract_strided_slice %204 {offsets = [0, 0], sizes = [8, 4], strides = [1, 1]} : vector<32x4xf32> to vector<8x4xf32>
    %cst_175 = arith.constant dense<0.000000e+00> : vector<1x4xf32>
    %210 = tpu.matmul %208, %209, %cst_175 {dimension_numbers = #tpu.dot_dimension_numbers<[1], [0], [0], [1], [0, 0, 1, 1], [], []>} : vector<1x8xf32>, vector<8x4xf32>, vector<1x4xf32> -> vector<1x4xf32>
    %cst_176 = arith.constant dense<0.000000e+00> : vector<8xf32>
    %211 = vector.multi_reduction <add>, %85, %cst_176 [0] : vector<8x8xf32> to vector<8xf32>
    %212 = vector.shape_cast %211 : vector<8xf32> to vector<1x8xf32>
    %cst_177 = arith.constant 8.000000e+00 : f32
    %213 = vector.broadcast %cst_177 : f32 to vector<1x8xf32>
    %214 = arith.divf %212, %213 : vector<1x8xf32>
    %215 = vector.extract_strided_slice %204 {offsets = [8, 0], sizes = [8, 4], strides = [1, 1]} : vector<32x4xf32> to vector<8x4xf32>
    %cst_178 = arith.constant dense<0.000000e+00> : vector<1x4xf32>
    %216 = tpu.matmul %214, %215, %cst_178 {dimension_numbers = #tpu.dot_dimension_numbers<[1], [0], [0], [1], [0, 0, 1, 1], [], []>} : vector<1x8xf32>, vector<8x4xf32>, vector<1x4xf32> -> vector<1x4xf32>
    %217 = arith.addf %210, %216 : vector<1x4xf32>
    %cst_179 = arith.constant dense<0.000000e+00> : vector<8xf32>
    %218 = vector.multi_reduction <add>, %144, %cst_179 [0] : vector<8x8xf32> to vector<8xf32>
    %219 = vector.shape_cast %218 : vector<8xf32> to vector<1x8xf32>
    %cst_180 = arith.constant 8.000000e+00 : f32
    %220 = vector.broadcast %cst_180 : f32 to vector<1x8xf32>
    %221 = arith.divf %219, %220 : vector<1x8xf32>
    %222 = vector.extract_strided_slice %204 {offsets = [16, 0], sizes = [8, 4], strides = [1, 1]} : vector<32x4xf32> to vector<8x4xf32>
    %cst_181 = arith.constant dense<0.000000e+00> : vector<1x4xf32>
    %223 = tpu.matmul %221, %222, %cst_181 {dimension_numbers = #tpu.dot_dimension_numbers<[1], [0], [0], [1], [0, 0, 1, 1], [], []>} : vector<1x8xf32>, vector<8x4xf32>, vector<1x4xf32> -> vector<1x4xf32>
    %224 = arith.addf %217, %223 : vector<1x4xf32>
    %cst_182 = arith.constant dense<0.000000e+00> : vector<8xf32>
    %225 = vector.multi_reduction <add>, %203, %cst_182 [0] : vector<8x8xf32> to vector<8xf32>
    %226 = vector.shape_cast %225 : vector<8xf32> to vector<1x8xf32>
    %cst_183 = arith.constant 8.000000e+00 : f32
    %227 = vector.broadcast %cst_183 : f32 to vector<1x8xf32>
    %228 = arith.divf %226, %227 : vector<1x8xf32>
    %229 = vector.extract_strided_slice %204 {offsets = [24, 0], sizes = [8, 4], strides = [1, 1]} : vector<32x4xf32> to vector<8x4xf32>
    %cst_184 = arith.constant dense<0.000000e+00> : vector<1x4xf32>
    %230 = tpu.matmul %228, %229, %cst_184 {dimension_numbers = #tpu.dot_dimension_numbers<[1], [0], [0], [1], [0, 0, 1, 1], [], []>} : vector<1x8xf32>, vector<8x4xf32>, vector<1x4xf32> -> vector<1x4xf32>
    %231 = arith.addf %224, %230 : vector<1x4xf32>
    %cst_185 = arith.constant 0.000000e+00 : f32
    %232 = vector.broadcast %cst_185 : f32 to vector<1x4xf32>
    %233 = arith.maximumf %231, %232 : vector<1x4xf32>
    %c0_186 = arith.constant 0 : index
    %c0_187 = arith.constant 0 : index
    %234 = vector.load %arg30[%c0_186, %c0_187] : memref<4x4xf32, #tpu.memory_space<vmem>>, vector<4x4xf32>
    %cst_188 = arith.constant dense<0.000000e+00> : vector<1x4xf32>
    %235 = tpu.matmul %233, %234, %cst_188 {dimension_numbers = #tpu.dot_dimension_numbers<[1], [0], [0], [1], [0, 0, 1, 1], [], []>} : vector<1x4xf32>, vector<4x4xf32>, vector<1x4xf32> -> vector<1x4xf32>
    %236 = arith.negf %235 : vector<1x4xf32>
    %237 = math.exp %236 : vector<1x4xf32>
    %cst_189 = arith.constant 1.000000e+00 : f32
    %238 = vector.broadcast %cst_189 : f32 to vector<1x4xf32>
    %239 = arith.addf %238, %237 : vector<1x4xf32>
    %240 = arith.divf %238, %239 : vector<1x4xf32>
    %241 = vector.shape_cast %240 : vector<1x4xf32> to vector<1x4xf32>
    %242 = vector.broadcast %241 : vector<1x4xf32> to vector<8x4xf32>
    %243 = vector.extract_strided_slice %242 {offsets = [0, 0], sizes = [8, 1], strides = [1, 1]} : vector<8x4xf32> to vector<8x1xf32>
    %244 = vector.broadcast %243 : vector<8x1xf32> to vector<8x8xf32>
    %245 = arith.mulf %26, %244 : vector<8x8xf32>
    %246 = vector.extract_strided_slice %242 {offsets = [0, 1], sizes = [8, 1], strides = [1, 1]} : vector<8x4xf32> to vector<8x1xf32>
    %247 = vector.broadcast %246 : vector<8x1xf32> to vector<8x8xf32>
    %248 = arith.mulf %85, %247 : vector<8x8xf32>
    %249 = arith.addf %245, %248 : vector<8x8xf32>
    %250 = vector.extract_strided_slice %242 {offsets = [0, 2], sizes = [8, 1], strides = [1, 1]} : vector<8x4xf32> to vector<8x1xf32>
    %251 = vector.broadcast %250 : vector<8x1xf32> to vector<8x8xf32>
    %252 = arith.mulf %144, %251 : vector<8x8xf32>
    %253 = arith.addf %249, %252 : vector<8x8xf32>
    %254 = vector.extract_strided_slice %242 {offsets = [0, 3], sizes = [8, 1], strides = [1, 1]} : vector<8x4xf32> to vector<8x1xf32>
    %255 = vector.broadcast %254 : vector<8x1xf32> to vector<8x8xf32>
    %256 = arith.mulf %203, %255 : vector<8x8xf32>
    %257 = arith.addf %253, %256 : vector<8x8xf32>
    %cst_190 = arith.constant 2.500000e-01 : f32
    %258 = vector.broadcast %cst_190 : f32 to vector<8x8xf32>
    %259 = arith.mulf %257, %258 : vector<8x8xf32>
    %cst_191 = arith.constant 0.000000e+00 : f32
    %260 = vector.broadcast %cst_191 : f32 to vector<8x8xf32>
    %261 = arith.maximumf %259, %260 : vector<8x8xf32>
    %c0_192 = arith.constant 0 : index
    %c0_193 = arith.constant 0 : index
    %262 = vector.load %arg31[%c0_192, %c0_193] : memref<8x16xf32, #tpu.memory_space<vmem>>, vector<8x16xf32>
    %cst_194 = arith.constant dense<0.000000e+00> : vector<8x16xf32>
    %263 = tpu.matmul %261, %262, %cst_194 {dimension_numbers = #tpu.dot_dimension_numbers<[1], [0], [0], [1], [0, 0, 1, 1], [], []>} : vector<8x8xf32>, vector<8x16xf32>, vector<8x16xf32> -> vector<8x16xf32>
    %c0_195 = arith.constant 0 : index
    %c0_196 = arith.constant 0 : index
    %264 = vector.load %arg32[%c0_195, %c0_196] : memref<1x16xf32, #tpu.memory_space<vmem>>, vector<1x16xf32>
    %265 = vector.broadcast %264 : vector<1x16xf32> to vector<8x16xf32>
    %266 = arith.addf %263, %265 : vector<8x16xf32>
    %cst_197 = arith.constant 0.000000e+00 : f32
    %267 = vector.broadcast %cst_197 : f32 to vector<8x16xf32>
    %268 = arith.maximumf %266, %267 : vector<8x16xf32>
    %c0_198 = arith.constant 0 : index
    %c0_199 = arith.constant 0 : index
    %269 = vector.load %arg33[%c0_198, %c0_199] : memref<16x12xf32, #tpu.memory_space<vmem>>, vector<16x12xf32>
    %cst_200 = arith.constant dense<0.000000e+00> : vector<8x12xf32>
    %270 = tpu.matmul %268, %269, %cst_200 {dimension_numbers = #tpu.dot_dimension_numbers<[1], [0], [0], [1], [0, 0, 1, 1], [], []>} : vector<8x16xf32>, vector<16x12xf32>, vector<8x12xf32> -> vector<8x12xf32>
    %c0_201 = arith.constant 0 : index
    %c0_202 = arith.constant 0 : index
    %271 = vector.load %arg34[%c0_201, %c0_202] : memref<1x12xf32, #tpu.memory_space<vmem>>, vector<1x12xf32>
    %272 = vector.broadcast %271 : vector<1x12xf32> to vector<8x12xf32>
    %273 = arith.addf %270, %272 : vector<8x12xf32>
    %c0_203 = arith.constant 0 : index
    %c0_204 = arith.constant 0 : index
    %c0_205 = arith.constant 0 : index
    %274 = vector.load %arg35[%c0_203, %c0_204, %c0_205] : memref<1x8x12xf32, #tpu.memory_space<vmem>>, vector<1x8x12xf32>
    %275 = vector.shape_cast %274 : vector<1x8x12xf32> to vector<8x12xf32>
    %276 = vector.shape_cast %273 : vector<8x12xf32> to vector<1x8x12xf32>
    tpu.vector_store %arg35[%c0_203, %c0_204, %c0_205], %276 {strides = array<i32>} : memref<1x8x12xf32, #tpu.memory_space<vmem>>, vector<1x8x12xf32>,
    return
  }
  func.func @transform_0(%arg0: i32) -> (i32, i32, i32) {
    %c0_i32 = arith.constant 0 : i32
    %c0_i32_0 = arith.constant 0 : i32
    %c0_i32_1 = arith.constant 0 : i32
    return %arg0, %c0_i32, %c0_i32_0 : i32, i32, i32
  }
  func.func @transform_1(%arg0: i32) -> (i32, i32, i32) {
    %c0_i32 = arith.constant 0 : i32
    %c0_i32_0 = arith.constant 0 : i32
    %c0_i32_1 = arith.constant 0 : i32
    %c0_i32_2 = arith.constant 0 : i32
    return %c0_i32, %c0_i32_0, %c0_i32_1 : i32, i32, i32
  }
  func.func @transform_2(%arg0: i32) -> (i32, i32, i32) {
    %c0_i32 = arith.constant 0 : i32
    %c0_i32_0 = arith.constant 0 : i32
    %c0_i32_1 = arith.constant 0 : i32
    %c0_i32_2 = arith.constant 0 : i32
    return %c0_i32, %c0_i32_0, %c0_i32_1 : i32, i32, i32
  }
  func.func @transform_3(%arg0: i32) -> (i32, i32) {
    %c0_i32 = arith.constant 0 : i32
    %c0_i32_0 = arith.constant 0 : i32
    %c0_i32_1 = arith.constant 0 : i32
    return %c0_i32, %c0_i32_0 : i32, i32
  }
  func.func @transform_4(%arg0: i32) -> (i32, i32) {
    %c0_i32 = arith.constant 0 : i32
    %c0_i32_0 = arith.constant 0 : i32
    %c0_i32_1 = arith.constant 0 : i32
    return %c0_i32, %c0_i32_0 : i32, i32
  }
  func.func @transform_5(%arg0: i32) -> (i32, i32) {
    %c0_i32 = arith.constant 0 : i32
    %c0_i32_0 = arith.constant 0 : i32
    %c0_i32_1 = arith.constant 0 : i32
    return %c0_i32, %c0_i32_0 : i32, i32
  }
  func.func @transform_6(%arg0: i32) -> (i32, i32) {
    %c0_i32 = arith.constant 0 : i32
    %c0_i32_0 = arith.constant 0 : i32
    %c0_i32_1 = arith.constant 0 : i32
    return %c0_i32, %c0_i32_0 : i32, i32
  }
  func.func @transform_7(%arg0: i32) -> (i32, i32) {
    %c0_i32 = arith.constant 0 : i32
    %c0_i32_0 = arith.constant 0 : i32
    %c0_i32_1 = arith.constant 0 : i32
    return %c0_i32, %c0_i32_0 : i32, i32
  }
  func.func @transform_8(%arg0: i32) -> (i32, i32) {
    %c0_i32 = arith.constant 0 : i32
    %c0_i32_0 = arith.constant 0 : i32
    %c0_i32_1 = arith.constant 0 : i32
    return %c0_i32, %c0_i32_0 : i32, i32
  }
  func.func @transform_9(%arg0: i32) -> (i32, i32) {
    %c0_i32 = arith.constant 0 : i32
    %c0_i32_0 = arith.constant 0 : i32
    %c0_i32_1 = arith.constant 0 : i32
    return %c0_i32, %c0_i32_0 : i32, i32
  }
  func.func @transform_10(%arg0: i32) -> (i32, i32) {
    %c0_i32 = arith.constant 0 : i32
    %c0_i32_0 = arith.constant 0 : i32
    %c0_i32_1 = arith.constant 0 : i32
    return %c0_i32, %c0_i32_0 : i32, i32
  }
  func.func @transform_11(%arg0: i32) -> (i32, i32, i32) {
    %c0_i32 = arith.constant 0 : i32
    %c0_i32_0 = arith.constant 0 : i32
    %c0_i32_1 = arith.constant 0 : i32
    %c0_i32_2 = arith.constant 0 : i32
    return %c0_i32, %c0_i32_0, %c0_i32_1 : i32, i32, i32
  }
  func.func @transform_12(%arg0: i32) -> (i32, i32, i32) {
    %c0_i32 = arith.constant 0 : i32
    %c0_i32_0 = arith.constant 0 : i32
    %c0_i32_1 = arith.constant 0 : i32
    %c0_i32_2 = arith.constant 0 : i32
    return %c0_i32, %c0_i32_0, %c0_i32_1 : i32, i32, i32
  }
  func.func @transform_13(%arg0: i32) -> (i32, i32, i32) {
    %c0_i32 = arith.constant 0 : i32
    %c0_i32_0 = arith.constant 0 : i32
    %c0_i32_1 = arith.constant 0 : i32
    %c0_i32_2 = arith.constant 0 : i32
    return %c0_i32, %c0_i32_0, %c0_i32_1 : i32, i32, i32
  }
  func.func @transform_14(%arg0: i32) -> (i32, i32, i32) {
    %c0_i32 = arith.constant 0 : i32
    %c0_i32_0 = arith.constant 0 : i32
    %c0_i32_1 = arith.constant 0 : i32
    %c0_i32_2 = arith.constant 0 : i32
    return %c0_i32, %c0_i32_0, %c0_i32_1 : i32, i32, i32
  }
  func.func @transform_15(%arg0: i32) -> (i32, i32, i32) {
    %c0_i32 = arith.constant 0 : i32
    %c0_i32_0 = arith.constant 0 : i32
    %c0_i32_1 = arith.constant 0 : i32
    %c0_i32_2 = arith.constant 0 : i32
    return %c0_i32, %c0_i32_0, %c0_i32_1 : i32, i32, i32
  }
  func.func @transform_16(%arg0: i32) -> (i32, i32, i32) {
    %c0_i32 = arith.constant 0 : i32
    %c0_i32_0 = arith.constant 0 : i32
    %c0_i32_1 = arith.constant 0 : i32
    %c0_i32_2 = arith.constant 0 : i32
    return %c0_i32, %c0_i32_0, %c0_i32_1 : i32, i32, i32
  }
  func.func @transform_17(%arg0: i32) -> (i32, i32) {
    %c0_i32 = arith.constant 0 : i32
    %c0_i32_0 = arith.constant 0 : i32
    %c0_i32_1 = arith.constant 0 : i32
    return %c0_i32, %c0_i32_0 : i32, i32
  }
  func.func @transform_18(%arg0: i32) -> (i32, i32) {
    %c0_i32 = arith.constant 0 : i32
    %c0_i32_0 = arith.constant 0 : i32
    %c0_i32_1 = arith.constant 0 : i32
    return %c0_i32, %c0_i32_0 : i32, i32
  }
  func.func @transform_19(%arg0: i32) -> (i32, i32) {
    %c0_i32 = arith.constant 0 : i32
    %c0_i32_0 = arith.constant 0 : i32
    %c0_i32_1 = arith.constant 0 : i32
    return %c0_i32, %c0_i32_0 : i32, i32
  }
  func.func @transform_20(%arg0: i32) -> (i32, i32) {
    %c0_i32 = arith.constant 0 : i32
    %c0_i32_0 = arith.constant 0 : i32
    %c0_i32_1 = arith.constant 0 : i32
    return %c0_i32, %c0_i32_0 : i32, i32
  }
  func.func @transform_21(%arg0: i32) -> (i32, i32) {
    %c0_i32 = arith.constant 0 : i32
    %c0_i32_0 = arith.constant 0 : i32
    %c0_i32_1 = arith.constant 0 : i32
    return %c0_i32, %c0_i32_0 : i32, i32
  }
  func.func @transform_22(%arg0: i32) -> (i32, i32) {
    %c0_i32 = arith.constant 0 : i32
    %c0_i32_0 = arith.constant 0 : i32
    %c0_i32_1 = arith.constant 0 : i32
    return %c0_i32, %c0_i32_0 : i32, i32
  }
  func.func @transform_23(%arg0: i32) -> (i32, i32) {
    %c0_i32 = arith.constant 0 : i32
    %c0_i32_0 = arith.constant 0 : i32
    %c0_i32_1 = arith.constant 0 : i32
    return %c0_i32, %c0_i32_0 : i32, i32
  }
  func.func @transform_24(%arg0: i32) -> (i32, i32) {
    %c0_i32 = arith.constant 0 : i32
    %c0_i32_0 = arith.constant 0 : i32
    %c0_i32_1 = arith.constant 0 : i32
    return %c0_i32, %c0_i32_0 : i32, i32
  }
  func.func @transform_25(%arg0: i32) -> (i32, i32) {
    %c0_i32 = arith.constant 0 : i32
    %c0_i32_0 = arith.constant 0 : i32
    %c0_i32_1 = arith.constant 0 : i32
    return %c0_i32, %c0_i32_0 : i32, i32
  }
  func.func @transform_26(%arg0: i32) -> (i32, i32) {
    %c0_i32 = arith.constant 0 : i32
    %c0_i32_0 = arith.constant 0 : i32
    %c0_i32_1 = arith.constant 0 : i32
    return %c0_i32, %c0_i32_0 : i32, i32
  }
  func.func @transform_27(%arg0: i32) -> (i32, i32) {
    %c0_i32 = arith.constant 0 : i32
    %c0_i32_0 = arith.constant 0 : i32
    %c0_i32_1 = arith.constant 0 : i32
    return %c0_i32, %c0_i32_0 : i32, i32
  }
  func.func @transform_28(%arg0: i32) -> (i32, i32) {
    %c0_i32 = arith.constant 0 : i32
    %c0_i32_0 = arith.constant 0 : i32
    %c0_i32_1 = arith.constant 0 : i32
    return %c0_i32, %c0_i32_0 : i32, i32
  }
  func.func @transform_29(%arg0: i32) -> (i32, i32) {
    %c0_i32 = arith.constant 0 : i32
    %c0_i32_0 = arith.constant 0 : i32
    %c0_i32_1 = arith.constant 0 : i32
    return %c0_i32, %c0_i32_0 : i32, i32
  }
  func.func @transform_30(%arg0: i32) -> (i32, i32) {
    %c0_i32 = arith.constant 0 : i32
    %c0_i32_0 = arith.constant 0 : i32
    %c0_i32_1 = arith.constant 0 : i32
    return %c0_i32, %c0_i32_0 : i32, i32
  }
  func.func @transform_31(%arg0: i32) -> (i32, i32) {
    %c0_i32 = arith.constant 0 : i32
    %c0_i32_0 = arith.constant 0 : i32
    %c0_i32_1 = arith.constant 0 : i32
    return %c0_i32, %c0_i32_0 : i32, i32
  }
  func.func @transform_32(%arg0: i32) -> (i32, i32) {
    %c0_i32 = arith.constant 0 : i32
    %c0_i32_0 = arith.constant 0 : i32
    %c0_i32_1 = arith.constant 0 : i32
    return %c0_i32, %c0_i32_0 : i32, i32
  }
  func.func @transform_33(%arg0: i32) -> (i32, i32) {
    %c0_i32 = arith.constant 0 : i32
    %c0_i32_0 = arith.constant 0 : i32
    %c0_i32_1 = arith.constant 0 : i32
    return %c0_i32, %c0_i32_0 : i32, i32
  }
  func.func @transform_34(%arg0: i32) -> (i32, i32, i32) {
    %c0_i32 = arith.constant 0 : i32
    %c0_i32_0 = arith.constant 0 : i32
    %c0_i32_1 = arith.constant 0 : i32
    return %arg0, %c0_i32, %c0_i32_0 : i32, i32, i32
  }
}

</mosaic_0001>

<bundles_post_ra>
// kernel: _lambda_.2
= control target key start
LH: loop header
LB: loop body
LE: loop exit
PB: predicated region body
PF: predicated region fallthrough
CT: control target
= control target key end

     0   :  { %11 = vsyncpa [#allocation3], 0  ;;  %s1460_s0 = inlined_call_operand.hbm [shape: f32[8,16], index: 0, kind: input, shape index: {}]   ;;  %s1461_s1 = inlined_call_operand.hbm [shape: f32[8,16], index: 1, kind: input, shape index: {}]   ;;  %s1462_s2 = inlined_call_operand.hbm [shape: f32[3,16,16], index: 2, kind: input, shape index: {}]   ;;  %s1463_s3 = inlined_call_operand.hbm [shape: f32[3,1,16], index: 3, kind: input, shape index: {}]   ;;  %s1464_s4 = inlined_call_operand.hbm [shape: f32[3,16,16], index: 4, kind: input, shape index: {}]   ;;  %s1465_s5 = inlined_call_operand.hbm [shape: f32[3,1,16], index: 5, kind: input, shape index: {}]   ;;  %s1466_s6 = inlined_call_operand.vmem [shape: f32[3,8,8], index: 6, kind: output, shape index: {}]  }
   0x1   :  { %12 = vsyncpa [#allocation5], 0 }
   0x2   :  { %13 = vsyncpa [#allocation8], 0 }
   0x3   :  { %14 = vsyncpa [#allocation11], 0  ;;  %s1260_s21 = smov [#allocation4]   ;;  %s1261_s23 = smov [#allocation7]  }
   0x4   :  { %s31_s22 = sshll.u32 %s1260_s21, 4  ;;  %s52_s24 = sshll.u32 %s1261_s23, 4  ;;  %s32_s22 = int_to_ptr.vmem [resolvable:$true] %s31_s22  ;;  %s1308_s24 = int_to_ptr.vmem [resolvable:$true] %s52_s24 }
   0x5   :  { %s1120_s27 = scalar_lea.hbm %s1461_s1, 128 }
   0x6   :  { %p1121_p0 = scmp.ne.s32.totalorder %s1461_s1, %s1120_s27  ;;  %p1124_p1 = scmp.lt.u32.totalorder %s1120_s27, %s1461_s1 }
   0x8   :  { %p1126_p2 = pnand %p1124_p1, %p1121_p0 }
   0xa   :  { %1129 = shalt.err (!%p1126_p2)
}
   0xb   :  { %s1130_s8 = scalar_lea.vmem %s32_s22, 128  ;;  %p1135_p4 = scmp.lt.s32.totalorder %s32_s22, %s32_s22 }
   0xc   :  { %p1131_p3 = scmp.ne.s32.totalorder %s32_s22, %s1130_s8  ;;  %p1136_p5 = scmp.lt.s32.totalorder %s1130_s8, %s1130_s8 }
   0xe   :  { %p1137_p6 = por %p1136_p5, %p1135_p4 }
  0x10   :  { %p1138_p7 = pnand %p1137_p6, %p1131_p3 }
  0x12   :  { %1141 = shalt.err (!%p1138_p7)
}
  0x13   :  { %34 = dma.hbm_to_vmem [thread:$0]  %s1461_s1, 128, %s32_s22, [#allocation5]  }
  0x14   :  { %s1142_s13 = scalar_lea.hbm %s1463_s3, 48 }
  0x15   :  { %p1143_p8 = scmp.ne.s32.totalorder %s1463_s3, %s1142_s13  ;;  %p1146_p9 = scmp.lt.u32.totalorder %s1142_s13, %s1463_s3 }
  0x17   :  { %p1148_p10 = pnand %p1146_p9, %p1143_p8 }
  0x19   :  { %1151 = shalt.err (!%p1148_p10)
}
  0x1a   :  { %s1152_s18 = scalar_lea.vmem %s1308_s24, 48  ;;  %s1156_s1 = scalar_lea.vmem %s1308_s24, 64 }
  0x1b   :  { %p1153_p11 = scmp.ne.s32.totalorder %s1308_s24, %s1152_s18  ;;  %p1157_p12 = scmp.lt.s32.totalorder %s1308_s24, %s1308_s24 }
  0x1c   :  { %p1158_p13 = scmp.lt.s32.totalorder %s1156_s1, %s1152_s18 }
  0x1e   :  { %p1159_p0 = por %p1158_p13, %p1157_p12 }
  0x20   :  { %p1160_p1 = pnand %p1159_p0, %p1153_p11 }
  0x22   :  { %1163 = shalt.err (!%p1160_p1)
}
  0x23   :  { %s1262_s19 = smov 16   ;;  %s1263_s20 = smov 1  }
  0x24   :  { %58 = dma.hbm_to_vmem [thread:$0]  %s1463_s3, 48, %s1308_s24, [#allocation8], %s1262_s19, %s1262_s19, %s1263_s20  }
  0x25   :  { %s1264_s23 = smov [#allocation2]   ;;  %s1265_s26 = smov [#allocation6]  }
  0x26   :  { %s21_s25 = sshll.u32 %s1264_s23, 4  ;;  %s40_s27 = sshll.u32 %s1265_s26, 4  ;;  %s22_s25 = int_to_ptr.vmem [resolvable:$true] %s21_s25  ;;  %s1343_s27 = int_to_ptr.vmem [resolvable:$true] %s40_s27 }
  0x27   :  { %s1164_s30 = scalar_lea.hbm %s1460_s0, 128 }
  0x28   :  { %p1165_p2 = scmp.ne.s32.totalorder %s1460_s0, %s1164_s30  ;;  %p1168_p3 = scmp.lt.u32.totalorder %s1164_s30, %s1460_s0 }
  0x2a   :  { %p1170_p4 = pnand %p1168_p3, %p1165_p2 }
  0x2c   :  { %1173 = shalt.err (!%p1170_p4)
}
  0x2d   :  { %s1174_s3 = scalar_lea.vmem %s22_s25, 128  ;;  %p1179_p6 = scmp.lt.s32.totalorder %s22_s25, %s22_s25 }
  0x2e   :  { %p1175_p5 = scmp.ne.s32.totalorder %s22_s25, %s1174_s3  ;;  %p1180_p7 = scmp.lt.s32.totalorder %s1174_s3, %s1174_s3 }
  0x30   :  { %p1181_p8 = por %p1180_p7, %p1179_p6 }
  0x32   :  { %p1182_p9 = pnand %p1181_p8, %p1175_p5 }
  0x34   :  { %1185 = shalt.err (!%p1182_p9)
}
  0x35   :  { %24 = dma.hbm_to_vmem [thread:$0]  %s1460_s0, 128, %s22_s25, [#allocation3]  }
  0x36   :  { %s1186_s14 = scalar_lea.hbm %s1462_s2, 768 }
  0x37   :  { %p1187_p10 = scmp.ne.s32.totalorder %s1462_s2, %s1186_s14  ;;  %p1190_p11 = scmp.lt.u32.totalorder %s1186_s14, %s1462_s2 }
  0x39   :  { %p1192_p12 = pnand %p1190_p11, %p1187_p10 }
  0x3b   :  { %1195 = shalt.err (!%p1192_p12)
}
  0x3c   :  { %s1196_s1 = scalar_lea.vmem %s1343_s27, 768  ;;  %p1201_p0 = scmp.lt.s32.totalorder %s1343_s27, %s1343_s27 }
  0x3d   :  { %p1197_p13 = scmp.ne.s32.totalorder %s1343_s27, %s1196_s1  ;;  %p1202_p1 = scmp.lt.s32.totalorder %s1196_s1, %s1196_s1 }
  0x3f   :  { %p1203_p2 = por %p1202_p1, %p1201_p0 }
  0x41   :  { %p1204_p3 = pnand %p1203_p2, %p1197_p13 }
  0x43   :  { %1207 = shalt.err (!%p1204_p3)
}
  0x44   :  { %s1266_s0 = smov 128   ;;  %s1267_s21 = smov 8  }
  0x45   :  { %46 = dma.hbm_to_vmem [thread:$0]  %s1462_s2, 768, %s1343_s27, [#allocation5], %s1266_s0, %s1266_s0, %s1267_s21  }
  0x46   :  { %s1268_s25 = smov [#allocation9]   ;;  %s1269_s28 = smov [#allocation10]  }
  0x47   :  { %s64_s26 = sshll.u32 %s1268_s25, 4  ;;  %s76_s29 = sshll.u32 %s1269_s28, 4  ;;  %s65_s26 = int_to_ptr.vmem [resolvable:$true] %s64_s26  ;;  %s1374_s29 = int_to_ptr.vmem [resolvable:$true] %s76_s29 }
  0x48   :  { %s1208_s8 = scalar_lea.hbm %s1464_s4, 768 }
  0x49   :  { %p1209_p4 = scmp.ne.s32.totalorder %s1464_s4, %s1208_s8  ;;  %p1212_p5 = scmp.lt.u32.totalorder %s1208_s8, %s1464_s4 }
  0x4b   :  { %p1214_p6 = pnand %p1212_p5, %p1209_p4 }
  0x4d   :  { %1217 = shalt.err (!%p1214_p6)
}
  0x4e   :  { %s1218_s2 = scalar_lea.vmem %s65_s26, 768  ;;  %p1223_p8 = scmp.lt.s32.totalorder %s65_s26, %s65_s26 }
  0x4f   :  { %p1219_p7 = scmp.ne.s32.totalorder %s65_s26, %s1218_s2  ;;  %p1224_p9 = scmp.lt.s32.totalorder %s1218_s2, %s1218_s2 }
  0x51   :  { %p1225_p10 = por %p1224_p9, %p1223_p8 }
  0x53   :  { %p1226_p11 = pnand %p1225_p10, %p1219_p7 }
  0x55   :  { %1229 = shalt.err (!%p1226_p11)
}
  0x56   :  { %70 = dma.hbm_to_vmem [thread:$0]  %s1464_s4, 768, %s65_s26, [#allocation8], %s1266_s0, %s1266_s0, %s1267_s21  }
  0x57   :  { %s1230_s14 = scalar_lea.hbm %s1465_s5, 48 }
  0x58   :  { %p1231_p12 = scmp.ne.s32.totalorder %s1465_s5, %s1230_s14  ;;  %p1234_p13 = scmp.lt.u32.totalorder %s1230_s14, %s1465_s5 }
  0x5a   :  { %p1236_p0 = pnand %p1234_p13, %p1231_p12 }
  0x5c   :  { %1239 = shalt.err (!%p1236_p0)
}
  0x5d   :  { %s1240_s1 = scalar_lea.vmem %s1374_s29, 48  ;;  %s1244_s4 = scalar_lea.vmem %s1374_s29, 64 }
  0x5e   :  { %p1241_p1 = scmp.ne.s32.totalorder %s1374_s29, %s1240_s1  ;;  %p1245_p2 = scmp.lt.s32.totalorder %s1374_s29, %s1374_s29 }
  0x5f   :  { %p1246_p3 = scmp.lt.s32.totalorder %s1244_s4, %s1240_s1 }
  0x61   :  { %p1247_p4 = por %p1246_p3, %p1245_p2 }
  0x63   :  { %p1248_p5 = pnand %p1247_p4, %p1241_p1 }
  0x65   :  { %1251 = shalt.err (!%p1248_p5)
}
  0x66   :  { %82 = dma.hbm_to_vmem [thread:$0]  %s1465_s5, 48, %s1374_s29, [#allocation11], %s1262_s19, %s1262_s19, %s1263_s20  }
  0x67   :  { %1252 = dma.done.wait [#allocation3], 128  }
  0x68   :  { %1253 = vsyncadd [#allocation3], 4294967168 }
  0x69   :  { %1254 = dma.done.wait [#allocation5], 896  }
  0x6a   :  { %1255 = vsyncadd [#allocation5], 4294966400 }
  0x6b   :  { %1256 = dma.done.wait [#allocation8], 816  }
  0x6c   :  { %1257 = vsyncadd [#allocation8], 4294966480 }
  0x6d   :  { %1258 = dma.done.wait [#allocation11], 48  }
  0x6e   :  { %1259 = vsyncadd [#allocation11], 4294967248  ;;  %v1270_v0 = vmov 0.0|0.0   ;;  %vm1271_vm0 = vmmov 0   ;;  %v1272_v1 = vmov 0.0   ;;  %v188_v2 = vld [vmem:[#allocation9] sm:$0xff] }
  0x6f   :  { %1074 = vmatprep.subr.bf16.mxu1 %v1270_v0  ;;  %1071 = vmatprep.subr.bf16.mxu0 %v1270_v0  ;;  %v189_v3 = vld [vmem:[#allocation9 + $0x8] sm:$0xff]  ;;  %v104_v6 = vld [vmem:[#allocation6 + $0x8] sm:$0xff]  ;;  %vm112_vm1 = vcmask 130048   ;;  %v101_v9 = vld [vmem:[#allocation2] sm:$0xff]  ;;  %vm384_vm2 = vcmask 64512  }
  0x70   :  { %1025 = vmatprep.mubr.msk.f32.mxu1 %vm1271_vm0, %v1272_v1  ;;  %1018 = vmatprep.mubr.msk.f32.mxu0 %vm1271_vm0, %v1272_v1  ;;  %v103_v4 = vld [vmem:[#allocation6] sm:$0xff]  ;;  %v1075_v5 = vpack.c.bf16 %v189_v3, %v188_v2  ;;  %v102_v8 = vld [vmem:[#allocation4] sm:$0xff]  ;;  %v388_v10 = vld [vmem:[#allocation6 + $0x10] sm:$0xff] }
  0x71   :  { %v1072_v7 = vpack.c.bf16 %v104_v6, %v103_v4  ;;  %v389_v11 = vld [vmem:[#allocation6 + $0x18] sm:$0xff]  ;;  %v972_v13 = vld [vmem:[#allocation10] ss:$0 sm:$0xff]  ;;  %v970_v14 = vld [vmem:[#allocation7] ss:$0 sm:$0xff] }
  0x72   :  { %1076 = vmatpush3.bf16.msra.mxu1 %v1075_v5  ;;  %v1078_v12 = vpack.c.bf16 %v389_v11, %v388_v10  ;;  %v475_v23 = vld [vmem:[#allocation9 + $0x10] sm:$0xff]  ;;  %v476_v24 = vld [vmem:[#allocation9 + $0x18] sm:$0xff]  ;;  %v763_v47 = vld [vmem:[#allocation9 + $0x20] sm:$0xff] }
  0x73   :  { %1073 = vmatpush3.bf16.msra.mxu0 %v1072_v7  ;;  %1077 = vmatprep.subr.bf16.mxu1 %v1270_v0  ;;  %v1081_v27 = vpack.c.bf16 %v476_v24, %v475_v23  ;;  %v676_v30 = vld [vmem:[#allocation6 + $0x20] sm:$0xff]  ;;  %v677_v31 = vld [vmem:[#allocation6 + $0x28] sm:$0xff]  ;;  %v976_v33 = vld [vmem:[#allocation7 + $0x1] ss:$0 sm:$0xff] }
  0x74   :  { %1028 = vmatprep.subr.mxu0 %v1272_v1  ;;  %v1084_v32 = vpack.c.bf16 %v677_v31, %v676_v30  ;;  %v978_v39 = vld [vmem:[#allocation10 + $0x1] ss:$0 sm:$0xff]  ;;  %v764_v48 = vld [vmem:[#allocation9 + $0x28] sm:$0xff]  ;;  %v983_v60 = vld [vmem:[#allocation7 + $0x2] ss:$0 sm:$0xff] }
  0x75   :  { %1026 = vmatmul.mubr.msk.f32.vlgmr.msra.gmra.mrb[0].mxu1 %vm112_vm1, %v102_v8  ;;  %v1087_v50 = vpack.c.bf16 %v764_v48, %v763_v47  ;;  %v985_v62 = vld [vmem:[#allocation10 + $0x2] ss:$0 sm:$0xff] }
  0x76   :  { %1019 = vmatmul.mubr.msk.f32.vlgmr.msra.gmra.mrb[0].mxu0 %vm112_vm1, %v101_v9  ;;  %1037 = vmatprep.mubr.msk.f32.mxu1 %vm1271_vm0, %v1272_v1 }
  0x77   :  { %1030 = vmatprep.mubr.msk.f32.mxu0 %vm1271_vm0, %v1272_v1  ;;  %1079 = vmatpush3.bf16.msra.mxu1 %v1078_v12 }
  0x78   :  { %1047 = vmatprep.subr.mxu1 %v1272_v1 }
 0x148   :  { %v266_v15 = vpop.f32.mrb[0].mxu1 }
 0x149   :  { %v267_v16 = vadd.f32 %v972_v13, %v266_v15  ;;  %v1027_v17 = vpop.f32.mrb[1].mxu1  ;;  %v182_v18 = vpop.f32.mrb[0].mxu0 }
 0x14a   :  { %v183_v19 = vadd.f32 %v970_v14, %v182_v18  ;;  %v1020_v20 = vpop.f32.mrb[1].mxu0 }
 0x14b   :  { %v270_v21 = vmul.f32 3.0, %v267_v16 }
 0x14c   :  { %v186_v22 = vmul.f32 3.0, %v183_v19 }
 0x14d   :  { %1102 = vtanh.f32 %v270_v21 }
 0x14e   :  { %1104 = vtanh.f32 %v186_v22 }
 0x157   :  { %v1103_v25 = vpop.eup %1102 }
 0x158   :  { %v1105_v26 = vpop.eup %1104  ;;  %1029 = vmatpush3.xpose.msk.msra.mxu0 %vm112_vm1, %v1103_v25  ;;  %v473_v29 = vmul.f32 0.8, %v1103_v25 }
 0x159   :  { %1080 = vmatprep.subr.bf16.mxu0 %v1270_v0  ;;  %v386_v28 = vmul.f32 0.8, %v1105_v26 }
 0x15b   :  { %1031 = vmatmul.mubr.msk.f32.vlgmr.msra.gmra.mrb[2].mxu0 %vm112_vm1, %v1105_v26  ;;  %1038 = vmatmul.mubr.msk.f32.vlgmr.msra.gmra.mrb[2].mxu1 %vm112_vm1, %v386_v28 }
 0x15c   :  { %1082 = vmatpush3.bf16.msra.mxu0 %v1081_v27  ;;  %1044 = vmatprep.mubr.msk.f32.mxu0 %vm1271_vm0, %v1272_v1 }
 0x15d   :  { %1083 = vmatprep.subr.bf16.mxu0 %v1270_v0  ;;  %1049 = vmatprep.mubr.msk.f32.mxu1 %vm1271_vm0, %v1272_v1 }
 0x15f   :  { %1045 = vmatmul.mubr.msk.f32.vlgmr.msra.gmra.mrb[4].mxu0 %vm112_vm1, %v473_v29 }
 0x160   :  { %1056 = vmatprep.mubr.msk.f32.mxu0 %vm1271_vm0, %v1272_v1  ;;  %1085 = vmatpush3.bf16.msra.mxu0 %v1084_v32 }
 0x161   :  { %1066 = vmatprep.subr.mxu0 %v1272_v1 }
 0x22e   :  { %v344_v34 = vpop.f32.mrb[2].mxu0  ;;  %v467_v35 = vpop.f32.mrb[2].mxu1 }
 0x22f   :  { %v468_v36 = vadd.f32 %v976_v33, %v467_v35  ;;  %348 = vxpose.xlu0.b32.start.end [1/1] (short) (narrow) %v344_v34, 8  ;;  %v1032_v37 = vpop.f32.mrb[3].mxu0  ;;  %v1039_v38 = vpop.f32.mrb[3].mxu1 }
 0x231   :  { %v471_v40 = vmul.f32 3.0, %v468_v36 }
 0x232   :  { %v554_v41 = vpop.f32.mrb[4].mxu0 }
 0x233   :  { %1106 = vtanh.f32 %v471_v40  ;;  %v555_v42 = vadd.f32 %v978_v39, %v554_v41  ;;  %v1046_v43 = vpop.f32.mrb[5].mxu0 }
 0x235   :  { %v558_v44 = vmul.f32 3.0, %v555_v42 }
 0x237   :  { %1108 = vtanh.f32 %v558_v44 }
 0x23d   :  { %v1107_v45 = vpop.eup %1106 }
 0x23e   :  { %v674_v46 = vmul.f32 0.6, %v1107_v45 }
 0x240   :  { %1057 = vmatmul.mubr.msk.f32.vlgmr.msra.gmra.mrb[6].mxu0 %vm112_vm1, %v674_v46 }
 0x241   :  { %v1109_v49 = vpop.eup %1108  ;;  %1068 = vmatprep.mubr.msk.f32.mxu0 %vm1271_vm0, %v1272_v1 }
 0x242   :  { %1048 = vmatpush3.xpose.msk.msra.mxu1 %vm112_vm1, %v1109_v49  ;;  %v761_v51 = vmul.f32 0.6, %v1109_v49 }
 0x243   :  { %1086 = vmatprep.subr.bf16.mxu1 %v1270_v0 }
 0x245   :  { %1050 = vmatmul.mubr.msk.f32.vlgmr.msra.gmra.mrb[4].mxu1 %vm112_vm1, %v1107_v45 }
 0x246   :  { %1088 = vmatpush3.bf16.msra.mxu1 %v1087_v50  ;;  %1063 = vmatprep.mubr.msk.f32.mxu1 %vm1271_vm0, %v1272_v1 }
 0x249   :  { %1064 = vmatmul.mubr.msk.f32.vlgmr.msra.gmra.mrb[6].mxu1 %vm112_vm1, %v761_v51 }
 0x2af   :  { %v364_v52 = vpop.trf.xlu0 }
 0x2b0   :  { %v380_v53 = vsub.f32 %v344_v34, %v364_v52 }
 0x2b2   :  { %v381_v54 = vmul.f32 3.0, %v380_v53 }
 0x2b4   :  { %1110 = vtanh.f32 %v381_v54 }
 0x2be   :  { %v1111_v55 = vpop.eup %1110 }
 0x2bf   :  { %v383_v56 = vmax.f32 %v1111_v55, 0.0 }
 0x2c1   :  { %385 = vst.msk [vmem:[%s1466_s6] sm:$0xff] %vm384_vm2, %v383_v56 }
 0x313   :  { %v755_v57 = vpop.f32.mrb[6].mxu0 }
 0x314   :  { %v1058_v58 = vpop.f32.mrb[7].mxu0  ;;  %v756_v63 = vadd.f32 %v983_v60, %v755_v57 }
 0x316   :  { %v759_v4 = vmul.f32 3.0, %v756_v63 }
 0x318   :  { %v632_v59 = vpop.f32.mrb[4].mxu1 }
 0x319   :  { %636 = vxpose.xlu0.b32.start.end [1/1] (short) (narrow) %v632_v59, 8  ;;  %v1051_v61 = vpop.f32.mrb[5].mxu1 }
 0x31c   :  { %v842_v0 = vpop.f32.mrb[6].mxu1 }
 0x31d   :  { %v843_v1 = vadd.f32 %v985_v62, %v842_v0  ;;  %v1065_v2 = vpop.f32.mrb[7].mxu1 }
 0x31f   :  { %v846_v3 = vmul.f32 3.0, %v843_v1 }
 0x321   :  { %1112 = vtanh.f32 %v846_v3 }
 0x322   :  { %1114 = vtanh.f32 %v759_v4 }
 0x32b   :  { %v1113_v5 = vpop.eup %1112 }
 0x32c   :  { %1067 = vmatpush3.xpose.msk.msra.mxu0 %vm112_vm1, %v1113_v5  ;;  %v1115_v6 = vpop.eup %1114 }
 0x32f   :  { %1069 = vmatmul.mubr.msk.f32.vlgmr.msra.gmra.mrb[8].mxu0 %vm112_vm1, %v1115_v6 }
 0x399   :  { %v652_v7 = vpop.trf.xlu0 }
 0x39a   :  { %v668_v8 = vsub.f32 %v632_v59, %v652_v7 }
 0x39c   :  { %v669_v9 = vmul.f32 3.0, %v668_v8 }
 0x39e   :  { %1116 = vtanh.f32 %v669_v9 }
 0x3a8   :  { %v1117_v10 = vpop.eup %1116 }
 0x3a9   :  { %v671_v11 = vmax.f32 %v1117_v10, 0.0 }
 0x3ab   :  { %982 = vst.msk [vmem:[%s1466_s6 + $0x8] sm:$0xff] %vm384_vm2, %v671_v11 }
 0x402   :  { %v920_v12 = vpop.f32.mrb[8].mxu0 }
 0x403   :  { %924 = vxpose.xlu1.b32.start.end [1/1] (short) (narrow) %v920_v12, 8  ;;  %v1070_v13 = vpop.f32.mrb[9].mxu0 }
 0x483   :  { %v940_v14 = vpop.trf.xlu1 }
 0x484   :  { %v956_v15 = vsub.f32 %v920_v12, %v940_v14 }
 0x486   :  { %v957_v16 = vmul.f32 3.0, %v956_v15 }
 0x488   :  { %1118 = vtanh.f32 %v957_v16 }
 0x492   :  { %v1119_v17 = vpop.eup %1118 }
 0x493   :  { %v959_v18 = vmax.f32 %v1119_v17, 0.0 }
 0x495   :  { %989 = vst.msk [vmem:[%s1466_s6 + $0x10] sm:$0xff] %vm384_vm2, %v959_v18 }
 0x496   :  { %966 = vsyncpa [#allocation3], 1 }
 0x497   :  { %967 = vsyncpa [#allocation5], 1 }
 0x498   :  { %968 = vsyncpa [#allocation8], 1 }
 0x499   :  { %969 = vsyncpa [#allocation11], 1 }

// kernel: _lambda_.3
= control target key start
LH: loop header
LB: loop body
LE: loop exit
PB: predicated region body
PF: predicated region fallthrough
CT: control target
= control target key end

     0   :  { %s8135_s6 = smov 1   ;;  %s8136_s10 = smov 2   ;;  %s9611_s0 = inlined_call_operand.smem [shape: u32[35], index: -1, kind: input, shape index: {}] }
   0x1   :  { %s8207_s5 = sld [smem:[%s9611_s0]]   ;;  %s8137_s14 = smov 3  }
   0x2   :  { %s8212_s9 = sld [smem:[%s9611_s0 + %s8135_s6]]   ;;  %s8138_s18 = smov 4  }
   0x3   :  { %s8217_s13 = sld [smem:[%s9611_s0 + %s8136_s10]]   ;;  %s8139_s22 = smov 5  }
   0x4   :  { %s8222_s17 = sld [smem:[%s9611_s0 + %s8137_s14]]   ;;  %s8140_s26 = smov 6  }
   0x5   :  { %s8227_s21 = sld [smem:[%s9611_s0 + %s8138_s18]]   ;;  %s8141_s30 = smov 7  }
   0x6   :  { %s8232_s25 = sld [smem:[%s9611_s0 + %s8139_s22]]   ;;  %s8142_s4 = smov 8  }
   0x7   :  { %9660 = sst [smem:[#allocation48_spill]] %s8207_s5  ;;  %s8143_s10 = smov 9  }
   0x8   :  { %9661 = sst [smem:[#allocation49_spill]] %s8212_s9  ;;  %s8144_s15 = smov 10  }
   0x9   :  { %9662 = sst [smem:[#allocation50_spill]] %s8217_s13  ;;  %s8145_s20 = smov 11  }
   0xa   :  { %9663 = sst [smem:[#allocation51_spill]] %s8222_s17  ;;  %s8147_s1 = smov 13  }
   0xb   :  { %9664 = sst [smem:[#allocation52_spill]] %s8227_s21  ;;  %s8148_s7 = smov 14  }
   0xc   :  { %9665 = sst [smem:[#allocation53_spill]] %s8232_s25  ;;  %s8150_s22 = smov 16  }
   0xd   :  { %s8237_s29 = sld [smem:[%s9611_s0 + %s8140_s26]]   ;;  %s8146_s26 = smov 12  }
   0xe   :  { %s8242_s3 = sld [smem:[%s9611_s0 + %s8141_s30]]   ;;  %s8151_s28 = smov 17  }
   0xf   :  { %s8247_s8 = sld [smem:[%s9611_s0 + %s8142_s4]]  }
  0x10   :  { %s8252_s14 = sld [smem:[%s9611_s0 + %s8143_s10]]  }
  0x11   :  { %s8257_s19 = sld [smem:[%s9611_s0 + %s8144_s15]]   ;;  %s8149_s15 = smov 15  }
  0x12   :  { %s8262_s24 = sld [smem:[%s9611_s0 + %s8145_s20]]  }
  0x13   :  { %9666 = sst [smem:[#allocation54_spill]] %s8237_s29 }
  0x14   :  { %9667 = sst [smem:[#allocation55_spill]] %s8242_s3 }
  0x15   :  { %9668 = sst [smem:[#allocation56_spill]] %s8247_s8 }
  0x16   :  { %9669 = sst [smem:[#allocation57_spill]] %s8252_s14 }
  0x17   :  { %s8267_s30 = sld [smem:[%s9611_s0 + %s8146_s26]]  }
  0x18   :  { %9670 = sst [smem:[#allocation58_spill]] %s8262_s24 }
  0x19   :  { %s8272_s6 = sld [smem:[%s9611_s0 + %s8147_s1]]  }
  0x1a   :  { %s8277_s12 = sld [smem:[%s9611_s0 + %s8148_s7]]   ;;  %s8152_s7 = smov 18  }
  0x1b   :  { %s8282_s20 = sld [smem:[%s9611_s0 + %s8149_s15]]   ;;  %s8153_s15 = smov 19  }
  0x1c   :  { %s8287_s27 = sld [smem:[%s9611_s0 + %s8150_s22]]   ;;  %s8154_s22 = smov 20  }
  0x1d   :  { %s8292_s4 = sld [smem:[%s9611_s0 + %s8151_s28]]   ;;  %s8155_s28 = smov 21  }
  0x1e   :  { %s8297_s13 = sld [smem:[%s9611_s0 + %s8152_s7]]   ;;  %s8156_s7 = smov 22  }
  0x1f   :  { %9671 = sst [smem:[#allocation59_spill]] %s8272_s6 }
  0x20   :  { %9672 = sst [smem:[#allocation60_spill]] %s8277_s12 }
  0x21   :  { %s8302_s9 = sld [smem:[%s9611_s0 + %s8153_s15]]   ;;  %s8157_s15 = smov 23  }
  0x22   :  { %s8307_s3 = sld [smem:[%s9611_s0 + %s8154_s22]]   ;;  %s8158_s22 = smov 24  }
  0x23   :  { %9673 = sst [smem:[#allocation61_spill]] %s8292_s4 }
  0x24   :  { %9674 = sst [smem:[#allocation62_spill]] %s8297_s13 }
  0x25   :  { %s8312_s24 = sld [smem:[%s9611_s0 + %s8155_s28]]   ;;  %s8159_s28 = smov 25  }
  0x26   :  { %s8317_s12 = sld [smem:[%s9611_s0 + %s8156_s7]]   ;;  %s8160_s7 = smov 26  }
  0x27   :  { %9675 = sst [smem:[#allocation63_spill]] %s8302_s9 }
  0x28   :  { %9676 = sst [smem:[#allocation64_spill]] %s8307_s3 }
  0x29   :  { %s8322_s29 = sld [smem:[%s9611_s0 + %s8157_s15]]   ;;  %s8161_s15 = smov 27  }
  0x2a   :  { %s8327_s3 = sld [smem:[%s9611_s0 + %s8158_s22]]   ;;  %s8162_s22 = smov 28  }
  0x2b   :  { %9677 = sst [smem:[#allocation65_spill]] %s8312_s24 }
  0x2c   :  { %9678 = sst [smem:[#allocation66_spill]] %s8317_s12 }
  0x2d   :  { %s8332_s24 = sld [smem:[%s9611_s0 + %s8159_s28]]   ;;  %s8163_s28 = smov 29  }
  0x2e   :  { %s8337_s12 = sld [smem:[%s9611_s0 + %s8160_s7]]   ;;  %s8164_s7 = smov 30  }
  0x2f   :  { %9679 = sst [smem:[#allocation67_spill]] %s8322_s29 }
  0x30   :  { %9680 = sst [smem:[#allocation68_spill]] %s8327_s3 }
  0x31   :  { %s8342_s25 = sld [smem:[%s9611_s0 + %s8161_s15]]   ;;  %s8165_s15 = smov 31  }
  0x32   :  { %s8347_s17 = sld [smem:[%s9611_s0 + %s8162_s22]]   ;;  %s8166_s22 = smov 32  }
  0x33   :  { %9681 = sst [smem:[#allocation69_spill]] %s8332_s24 }
  0x34   :  { %9682 = sst [smem:[#allocation70_spill]] %s8337_s12 }
  0x35   :  { %s8352_s5 = sld [smem:[%s9611_s0 + %s8163_s28]]   ;;  %s8167_s28 = smov 33  }
  0x36   :  { %s8357_s12 = sld [smem:[%s9611_s0 + %s8164_s7]]   ;;  %s8168_s7 = smov 34  }
  0x37   :  { %s8362_s24 = sld [smem:[%s9611_s0 + %s8165_s15]]  }
  0x38   :  { %9683 = sst [smem:[#allocation71_spill]] %s8347_s17 }
  0x39   :  { %s8367_s17 = sld [smem:[%s9611_s0 + %s8166_s22]]  }
  0x3a   :  { %s8377_s29 = sld [smem:[%s9611_s0 + %s8168_s7]]  }
  0x3b   :  { %9684 = sst [smem:[#allocation72_spill]] %s8352_s5 }
  0x3c   :  { %9685 = sst [smem:[#allocation73_spill]] %s8357_s12 }
  0x3d   :  { %s8372_s5 = sld [smem:[%s9611_s0 + %s8167_s28]]  }
  0x40   :  { %9687 = sst [smem:[#allocation75_spill]] %s8377_s29 }
  0x43   :  { %9686 = sst [smem:[#allocation74_spill]] %s8372_s5 }
  0x44   :  { %74 = vsyncpa [#allocation3], 0 }
  0x45   :  { %76 = vsyncpa [#allocation3 + $0x1], 0 }
  0x46   :  { %77 = vsyncpa [#allocation6], 0 }
  0x47   :  { %78 = vsyncpa [#allocation9], 0 }
  0x48   :  { %79 = vsyncpa [#allocation12], 0 }
  0x49   :  { %80 = vsyncpa [#allocation15], 0 }
  0x4a   :  { %81 = vsyncpa [#allocation18], 0 }
  0x4b   :  { %82 = vsyncpa [#allocation21], 0 }
  0x4c   :  { %83 = vsyncpa [#allocation24], 0 }
  0x4d   :  { %84 = vsyncpa [#allocation27], 0 }
  0x4e   :  { %85 = vsyncpa [#allocation30], 0 }
  0x4f   :  { %86 = vsyncpa [#allocation33], 0 }
  0x50   :  { %87 = vsyncpa [#allocation4], 0 }
  0x51   :  { %89 = vsyncpa [#allocation4 + $0x1], 0  ;;  %s8379_s15 = smov 0   ;;  %s8381_s16 = smov 0  }
  0x52   :  { %s8383_s0 = smov 0   ;;  %s8385_s18 = smov 0  }
  0x53 LB: > { %s9688_s13 = sld [smem:[#allocation62_spill]]  ;;  %s9689_s12 = sld [smem:[#allocation73_spill]]  ;;  %s8125_s16 = sphi %s8381_s16, %s9754_s16   ;;  %s8121_s15 = sphi %s8379_s15, %s9753_s15   ;;  %s8133_s18 = sphi %s8385_s18, %s9756_s18   ;;  %s8129_s0 = sphi %s8383_s0, %s9755_s0  }
  0x54   : > { %s9690_s9 = sld [smem:[#allocation63_spill]]  ;;  %s9691_s8 = sld [smem:[#allocation56_spill]] }
  0x55   : > { %s9692_s6 = sld [smem:[#allocation59_spill]]  ;;  %s9693_s5 = sld [smem:[#allocation74_spill]] }
  0x56   : > { %s9694_s4 = sld [smem:[#allocation61_spill]]  ;;  %s9695_s3 = sld [smem:[#allocation68_spill]] }
  0x57   : > { %s9696_s21 = sld [smem:[#allocation52_spill]]  ;;  %s9697_s14 = sld [smem:[#allocation57_spill]] }
  0x58   : > { %s8169_s22 = smov [#allocation5]   ;;  %s8400_s26 = sadd.s32 4294967295, %s8133_s18  }
  0x59   : > { %s867_s23 = sshll.u32 %s8169_s22, 4  ;;  %p5702_p0 = scmp.ge.s32.totalorder %s8133_s18, 1  ;;  %s868_s23 = int_to_ptr.vmem [resolvable:$true] %s867_s23 }
  0x5a   : > { %p9630_p1 = scmp.eq.s32.totalorder %s8400_s26, 0  ;;  %p845_p2 = scmp.lt.s32.totalorder %s8133_s18, 3 }
  0x5b   : > { %s8170_s1 = smov [#allocation8]   ;;  %s8171_s7 = smov [#allocation11]  }
  0x5c   : > { %p8405_p3 = pnand %p5702_p0, %p845_p2  ;;  %s898_s2 = sshll.u32 %s8170_s1, 4  ;;  %s8412_s2 = int_to_ptr.vmem [resolvable:$true] %s898_s2 }
  0x5d   : > { %s922_s10 = sshll.u32 %s8171_s7, 4  ;;  %s7437_s22 = scalar_lea.hbm %s9696_s21, 32  ;;  %s8420_s10 = int_to_ptr.vmem [resolvable:$true] %s922_s10 }
  0x5e   : > { %s9698_s28 = scalar_select %p8405_p3, 1, 0 }
  0x5f   : > { %p7228_p5 = pneg %p8405_p3  ;;  %p7438_p7 = scmp.ne.s32.totalorder %s9696_s21, %s7437_s22 }
  0x60   : > { %9699 = sst [smem:[#allocation76_spill]] %s9698_s28  ;;  %p7444_p11 = scmp.lt.u32.totalorder %s7437_s22, %s9696_s21 }
  0x61   : > { %p8416_p6 = pnand %p7228_p5, %p9630_p1 }
  0x63   : > { %p8426_p8 = pneg %p8416_p6 }
  0x65   : > { %p7440_p9 = pnand %p8426_p8, %p7438_p7 }
  0x67   : > { %p7441_p10 = pneg %p7440_p9 }
  0x69   : > { %p7446_p12 = pnand %p7444_p11, %p7441_p10 }
  0x6b   : > { %7449 = shalt.err (!%p7446_p12)
}
  0x6c   : > { %s7450_s1 = scalar_lea.vmem %s868_s23, 32  ;;  %p7458_p5 = scmp.lt.s32.totalorder %s868_s23, %s868_s23 }
  0x6d   : > { %p7451_p13 = scmp.ne.s32.totalorder %s868_s23, %s7450_s1  ;;  %p7459_p4 = scmp.lt.s32.totalorder %s7450_s1, %s7450_s1 }
  0x6f   : > { %p7453_p0 = pnand %p7451_p13, %p8426_p8  ;;  %p7460_p1 = por %p7459_p4, %p7458_p5 }
  0x71   : > { %p7454_p2 = pneg %p7453_p0 }
  0x73   : > { %p7461_p3 = pnand %p7460_p1, %p7454_p2 }
  0x75   : > { %7464 = shalt.err (!%p7461_p3)
}
  0x76   : > { %7231 = dma.hbm_to_vmem [thread:$0]  (!%p8416_p6), %s9696_s21, 32, %s868_s23, [#allocation6]  }
  0x77   : > { %s7465_s7 = scalar_lea.hbm %s9697_s14, 16 }
  0x78   : > { %p7466_p7 = scmp.ne.s32.totalorder %s9697_s14, %s7465_s7  ;;  %p7472_p11 = scmp.lt.u32.totalorder %s7465_s7, %s9697_s14 }
  0x7a   : > { %p7468_p9 = pnand %p7466_p7, %p8426_p8 }
  0x7c   : > { %p7469_p10 = pneg %p7468_p9 }
  0x7e   : > { %p7474_p12 = pnand %p7472_p11, %p7469_p10 }
  0x80   : > { %7477 = shalt.err (!%p7474_p12)
}
  0x81   : > { %s7478_s22 = scalar_lea.vmem %s8412_s2, 16  ;;  %s7485_s1 = scalar_lea.vmem %s8412_s2, 32 }
  0x82   : > { %p7479_p1 = scmp.ne.s32.totalorder %s8412_s2, %s7478_s22  ;;  %p7486_p13 = scmp.lt.s32.totalorder %s8412_s2, %s8412_s2 }
  0x83   : > { %p7487_p0 = scmp.lt.s32.totalorder %s7485_s1, %s7478_s22 }
  0x84   : > { %p7481_p3 = pnand %p7479_p1, %p8426_p8 }
  0x85   : > { %p7488_p2 = por %p7487_p0, %p7486_p13 }
  0x86   : > { %p7482_p4 = pneg %p7481_p3 }
  0x88   : > { %p7489_p5 = pnand %p7488_p2, %p7482_p4 }
  0x8a   : > { %7492 = shalt.err (!%p7489_p5)
}
  0x8b   : > { %7237 = dma.hbm_to_vmem [thread:$0]  (!%p8416_p6), %s9697_s14, 16, %s8412_s2, [#allocation9]  }
  0x8c   : > { %s7493_s23 = scalar_lea.hbm %s8267_s30, 3840 }
  0x8d   : > { %p7494_p7 = scmp.ne.s32.totalorder %s8267_s30, %s7493_s23  ;;  %p7500_p11 = scmp.lt.u32.totalorder %s7493_s23, %s8267_s30 }
  0x8f   : > { %p7496_p9 = pnand %p7494_p7, %p8426_p8 }
  0x91   : > { %p7497_p10 = pneg %p7496_p9 }
  0x93   : > { %p7502_p12 = pnand %p7500_p11, %p7497_p10 }
  0x95   : > { %7505 = shalt.err (!%p7502_p12)
}
  0x96   : > { %s7506_s7 = scalar_lea.vmem %s8420_s10, 3840  ;;  %p7514_p13 = scmp.lt.s32.totalorder %s8420_s10, %s8420_s10 }
  0x97   : > { %p7507_p1 = scmp.ne.s32.totalorder %s8420_s10, %s7506_s7  ;;  %p7515_p0 = scmp.lt.s32.totalorder %s7506_s7, %s7506_s7 }
  0x99   : > { %p7509_p3 = pnand %p7507_p1, %p8426_p8  ;;  %p7516_p2 = por %p7515_p0, %p7514_p13 }
  0x9b   : > { %p7510_p4 = pneg %p7509_p3 }
  0x9d   : > { %p7517_p5 = pnand %p7516_p2, %p7510_p4 }
  0x9f   : > { %7520 = shalt.err (!%p7517_p5)
}
  0xa0   : > { %s9635_s2 = smov 128   ;;  %s8173_s22 = smov 8  }
  0xa1   : > { %7243 = dma.hbm_to_vmem [thread:$0]  (!%p8416_p6), %s8267_s30, 3840, %s8420_s10, [#allocation12], %s9635_s2, %s9635_s2, %s8173_s22  }
  0xa2   : > { %s8174_s1 = smov [#allocation14]   ;;  %s8175_s7 = smov [#allocation17]  }
  0xa3   : > { %s951_s23 = sshll.u32 %s8174_s1, 4  ;;  %s978_s14 = sshll.u32 %s8175_s7, 4  ;;  %s952_s23 = int_to_ptr.vmem [resolvable:$true] %s951_s23  ;;  %s979_s14 = int_to_ptr.vmem [resolvable:$true] %s978_s14 }
  0xa4   : > { %s7521_s21 = scalar_lea.hbm %s8282_s20, 3840 }
  0xa5   : > { %p7522_p7 = scmp.ne.s32.totalorder %s8282_s20, %s7521_s21  ;;  %p7528_p11 = scmp.lt.u32.totalorder %s7521_s21, %s8282_s20 }
  0xa7   : > { %p7524_p9 = pnand %p7522_p7, %p8426_p8 }
  0xa9   : > { %p7525_p10 = pneg %p7524_p9 }
  0xab   : > { %p7530_p12 = pnand %p7528_p11, %p7525_p10 }
  0xad   : > { %7533 = shalt.err (!%p7530_p12)
}
  0xae   : > { %s7534_s28 = scalar_lea.vmem %s952_s23, 3840  ;;  %p7542_p13 = scmp.lt.s32.totalorder %s952_s23, %s952_s23 }
  0xaf   : > { %p7535_p1 = scmp.ne.s32.totalorder %s952_s23, %s7534_s28  ;;  %p7543_p0 = scmp.lt.s32.totalorder %s7534_s28, %s7534_s28 }
  0xb1   : > { %p7537_p3 = pnand %p7535_p1, %p8426_p8  ;;  %p7544_p2 = por %p7543_p0, %p7542_p13 }
  0xb3   : > { %p7538_p4 = pneg %p7537_p3 }
  0xb5   : > { %p7545_p5 = pnand %p7544_p2, %p7538_p4 }
  0xb7   : > { %7548 = shalt.err (!%p7545_p5)
}
  0xb8   : > { %7249 = dma.hbm_to_vmem [thread:$0]  (!%p8416_p6), %s8282_s20, 3840, %s952_s23, [#allocation15], %s9635_s2, %s9635_s2, %s8173_s22  }
  0xb9   : > { %s7549_s21 = scalar_lea.hbm %s9694_s4, 32 }
  0xba   : > { %p7550_p7 = scmp.ne.s32.totalorder %s9694_s4, %s7549_s21  ;;  %p7556_p11 = scmp.lt.u32.totalorder %s7549_s21, %s9694_s4 }
  0xbc   : > { %p7552_p9 = pnand %p7550_p7, %p8426_p8 }
  0xbe   : > { %p7553_p10 = pneg %p7552_p9 }
  0xc0   : > { %p7558_p12 = pnand %p7556_p11, %p7553_p10 }
  0xc2   : > { %7561 = shalt.err (!%p7558_p12)
}
  0xc3   : > { %s7562_s28 = scalar_lea.vmem %s979_s14, 32  ;;  %p7570_p13 = scmp.lt.s32.totalorder %s979_s14, %s979_s14 }
  0xc4   : > { %p7563_p1 = scmp.ne.s32.totalorder %s979_s14, %s7562_s28  ;;  %p7571_p0 = scmp.lt.s32.totalorder %s7562_s28, %s7562_s28 }
  0xc6   : > { %p7565_p3 = pnand %p7563_p1, %p8426_p8  ;;  %p7572_p2 = por %p7571_p0, %p7570_p13 }
  0xc8   : > { %p7566_p4 = pneg %p7565_p3 }
  0xca   : > { %p7573_p5 = pnand %p7572_p2, %p7566_p4 }
  0xcc   : > { %7576 = shalt.err (!%p7573_p5)
}
  0xcd   : > { %7255 = dma.hbm_to_vmem [thread:$0]  (!%p8416_p6), %s9694_s4, 32, %s979_s14, [#allocation18]  }
  0xce   : > { %s8176_s10 = smov [#allocation20]   ;;  %s8177_s23 = smov [#allocation23]  }
  0xcf   : > { %s1000_s1 = sshll.u32 %s8176_s10, 4  ;;  %s1031_s7 = sshll.u32 %s8177_s23, 4  ;;  %s1001_s1 = int_to_ptr.vmem [resolvable:$true] %s1000_s1  ;;  %s1032_s7 = int_to_ptr.vmem [resolvable:$true] %s1031_s7 }
  0xd0   : > { %s7577_s21 = scalar_lea.hbm %s9690_s9, 16 }
  0xd1   : > { %p7578_p7 = scmp.ne.s32.totalorder %s9690_s9, %s7577_s21  ;;  %p7584_p11 = scmp.lt.u32.totalorder %s7577_s21, %s9690_s9 }
  0xd3   : > { %p7580_p9 = pnand %p7578_p7, %p8426_p8 }
  0xd5   : > { %p7581_p10 = pneg %p7580_p9 }
  0xd7   : > { %p7586_p12 = pnand %p7584_p11, %p7581_p10 }
  0xd9   : > { %7589 = shalt.err (!%p7586_p12)
}
  0xda   : > { %s7590_s28 = scalar_lea.vmem %s1001_s1, 16  ;;  %s7597_s14 = scalar_lea.vmem %s1001_s1, 32 }
  0xdb   : > { %p7591_p1 = scmp.ne.s32.totalorder %s1001_s1, %s7590_s28  ;;  %p7598_p13 = scmp.lt.s32.totalorder %s1001_s1, %s1001_s1 }
  0xdc   : > { %p7599_p0 = scmp.lt.s32.totalorder %s7597_s14, %s7590_s28 }
  0xdd   : > { %p7593_p3 = pnand %p7591_p1, %p8426_p8 }
  0xde   : > { %p7600_p2 = por %p7599_p0, %p7598_p13 }
  0xdf   : > { %p7594_p4 = pneg %p7593_p3 }
  0xe1   : > { %p7601_p5 = pnand %p7600_p2, %p7594_p4 }
  0xe3   : > { %7604 = shalt.err (!%p7601_p5)
}
  0xe4   : > { %7261 = dma.hbm_to_vmem [thread:$0]  (!%p8416_p6), %s9690_s9, 16, %s1001_s1, [#allocation21]  }
  0xe5   : > { %s7605_s10 = scalar_lea.hbm %s9695_s3, 16 }
  0xe6   : > { %p7606_p7 = scmp.ne.s32.totalorder %s9695_s3, %s7605_s10  ;;  %p7612_p11 = scmp.lt.u32.totalorder %s7605_s10, %s9695_s3 }
  0xe8   : > { %p7608_p9 = pnand %p7606_p7, %p8426_p8 }
  0xea   : > { %p7609_p10 = pneg %p7608_p9 }
  0xec   : > { %p7614_p12 = pnand %p7612_p11, %p7609_p10 }
  0xee   : > { %7617 = shalt.err (!%p7614_p12)
}
  0xef   : > { %s7618_s23 = scalar_lea.vmem %s1032_s7, 16  ;;  %s7625_s21 = scalar_lea.vmem %s1032_s7, 32 }
  0xf0   : > { %p7619_p1 = scmp.ne.s32.totalorder %s1032_s7, %s7618_s23  ;;  %p7626_p13 = scmp.lt.s32.totalorder %s1032_s7, %s1032_s7 }
  0xf1   : > { %p7627_p0 = scmp.lt.s32.totalorder %s7625_s21, %s7618_s23 }
  0xf2   : > { %p7621_p3 = pnand %p7619_p1, %p8426_p8 }
  0xf3   : > { %p7628_p2 = por %p7627_p0, %p7626_p13 }
  0xf4   : > { %p7622_p4 = pneg %p7621_p3 }
  0xf6   : > { %p7629_p5 = pnand %p7628_p2, %p7622_p4 }
  0xf8   : > { %7632 = shalt.err (!%p7629_p5)
}
  0xf9   : > { %7267 = dma.hbm_to_vmem [thread:$0]  (!%p8416_p6), %s9695_s3, 16, %s1032_s7, [#allocation24]  }
  0xfa   : > { %s8178_s1 = smov [#allocation26]   ;;  %s8179_s14 = smov [#allocation29]  }
  0xfb   : > { %s1056_s28 = sshll.u32 %s8178_s1, 4  ;;  %s1081_s10 = sshll.u32 %s8179_s14, 4  ;;  %s1057_s28 = int_to_ptr.vmem [resolvable:$true] %s1056_s28  ;;  %s1082_s10 = int_to_ptr.vmem [resolvable:$true] %s1081_s10 }
  0xfc   : > { %s7633_s2 = scalar_lea.hbm %s8342_s25, 16 }
  0xfd   : > { %p7634_p7 = scmp.ne.s32.totalorder %s8342_s25, %s7633_s2  ;;  %p7640_p11 = scmp.lt.u32.totalorder %s7633_s2, %s8342_s25 }
  0xff   : > { %p7636_p9 = pnand %p7634_p7, %p8426_p8 }
 0x101   : > { %p7637_p10 = pneg %p7636_p9 }
 0x103   : > { %p7642_p12 = pnand %p7640_p11, %p7637_p10 }
 0x105   : > { %7645 = shalt.err (!%p7642_p12)
}
 0x106   : > { %s7646_s23 = scalar_lea.vmem %s1057_s28, 16  ;;  %s7653_s7 = scalar_lea.vmem %s1057_s28, 32 }
 0x107   : > { %p7647_p1 = scmp.ne.s32.totalorder %s1057_s28, %s7646_s23  ;;  %p7654_p13 = scmp.lt.s32.totalorder %s1057_s28, %s1057_s28 }
 0x108   : > { %p7655_p0 = scmp.lt.s32.totalorder %s7653_s7, %s7646_s23 }
 0x109   : > { %p7649_p3 = pnand %p7647_p1, %p8426_p8 }
 0x10a   : > { %p7656_p2 = por %p7655_p0, %p7654_p13 }
 0x10b   : > { %p7650_p4 = pneg %p7649_p3 }
 0x10d   : > { %p7657_p5 = pnand %p7656_p2, %p7650_p4 }
 0x10f   : > { %7660 = shalt.err (!%p7657_p5)
}
 0x110   : > { %7273 = dma.hbm_to_vmem [thread:$0]  (!%p8416_p6), %s8342_s25, 16, %s1057_s28, [#allocation27]  }
 0x111   : > { %s7661_s2 = scalar_lea.hbm %s9689_s12, 128 }
 0x112   : > { %p7662_p7 = scmp.ne.s32.totalorder %s9689_s12, %s7661_s2  ;;  %p7668_p11 = scmp.lt.u32.totalorder %s7661_s2, %s9689_s12 }
 0x114   : > { %p7664_p9 = pnand %p7662_p7, %p8426_p8 }
 0x116   : > { %p7665_p10 = pneg %p7664_p9 }
 0x118   : > { %p7670_p12 = pnand %p7668_p11, %p7665_p10 }
 0x11a   : > { %7673 = shalt.err (!%p7670_p12)
}
 0x11b   : > { %s7674_s21 = scalar_lea.vmem %s1082_s10, 128  ;;  %p7682_p13 = scmp.lt.s32.totalorder %s1082_s10, %s1082_s10 }
 0x11c   : > { %p7675_p1 = scmp.ne.s32.totalorder %s1082_s10, %s7674_s21  ;;  %p7683_p0 = scmp.lt.s32.totalorder %s7674_s21, %s7674_s21 }
 0x11e   : > { %p7677_p3 = pnand %p7675_p1, %p8426_p8  ;;  %p7684_p2 = por %p7683_p0, %p7682_p13 }
 0x120   : > { %p7678_p4 = pneg %p7677_p3 }
 0x122   : > { %p7685_p5 = pnand %p7684_p2, %p7678_p4 }
 0x124   : > { %7688 = shalt.err (!%p7685_p5)
}
 0x125   : > { %7279 = dma.hbm_to_vmem [thread:$0]  (!%p8416_p6), %s9689_s12, 128, %s1082_s10, [#allocation30]  }
 0x126   : > { %s8180_s1 = smov [#allocation32]   ;;  %s8181_s14 = smov [#allocation7]  }
 0x127   : > { %s1102_s28 = sshll.u32 %s8180_s1, 4  ;;  %s887_s23 = sshll.u32 %s8181_s14, 4  ;;  %s1103_s28 = int_to_ptr.vmem [resolvable:$true] %s1102_s28  ;;  %s888_s23 = int_to_ptr.vmem [resolvable:$true] %s887_s23 }
 0x128   : > { %s7689_s7 = scalar_lea.hbm %s8367_s17, 256 }
 0x129   : > { %p7690_p7 = scmp.ne.s32.totalorder %s8367_s17, %s7689_s7  ;;  %p7696_p11 = scmp.lt.u32.totalorder %s7689_s7, %s8367_s17 }
 0x12b   : > { %p7692_p9 = pnand %p7690_p7, %p8426_p8 }
 0x12d   : > { %p7693_p10 = pneg %p7692_p9 }
 0x12f   : > { %p7698_p12 = pnand %p7696_p11, %p7693_p10 }
 0x131   : > { %7701 = shalt.err (!%p7698_p12)
}
 0x132   : > { %s7702_s2 = scalar_lea.vmem %s1103_s28, 256  ;;  %p7710_p13 = scmp.lt.s32.totalorder %s1103_s28, %s1103_s28 }
 0x133   : > { %p7703_p1 = scmp.ne.s32.totalorder %s1103_s28, %s7702_s2  ;;  %p7711_p0 = scmp.lt.s32.totalorder %s7702_s2, %s7702_s2 }
 0x135   : > { %p7705_p3 = pnand %p7703_p1, %p8426_p8  ;;  %p7712_p2 = por %p7711_p0, %p7710_p13 }
 0x137   : > { %p7706_p4 = pneg %p7705_p3 }
 0x139   : > { %p7713_p5 = pnand %p7712_p2, %p7706_p4 }
 0x13b   : > { %7716 = shalt.err (!%p7713_p5)
}
 0x13c   : > { %s9702_s10 = smov 128   ;;  %s7717_s21 = scalar_lea.hbm %s9691_s8, 32 }
 0x13d   : > { %7285 = dma.hbm_to_vmem [thread:$0]  (!%p8416_p6), %s8367_s17, 256, %s1103_s28, [#allocation33], %s9702_s10, %s9702_s10, %s8173_s22  }
 0x13e   : > { %p7718_p7 = scmp.ne.s32.totalorder %s9691_s8, %s7717_s21  ;;  %p7724_p11 = scmp.lt.u32.totalorder %s7717_s21, %s9691_s8 }
 0x140   : > { %p7720_p9 = pnand %p7718_p7, %p8426_p8 }
 0x142   : > { %p7721_p10 = pneg %p7720_p9 }
 0x144   : > { %p7726_p12 = pnand %p7724_p11, %p7721_p10 }
 0x146   : > { %7729 = shalt.err (!%p7726_p12)
}
 0x147   : > { %s7730_s1 = scalar_lea.vmem %s888_s23, 32  ;;  %p7738_p13 = scmp.lt.s32.totalorder %s888_s23, %s888_s23 }
 0x148   : > { %p7731_p1 = scmp.ne.s32.totalorder %s888_s23, %s7730_s1  ;;  %p7739_p0 = scmp.lt.s32.totalorder %s7730_s1, %s7730_s1 }
 0x14a   : > { %p7733_p3 = pnand %p7731_p1, %p8426_p8  ;;  %p7740_p2 = por %p7739_p0, %p7738_p13 }
 0x14c   : > { %p7734_p4 = pneg %p7733_p3 }
 0x14e   : > { %p7741_p5 = pnand %p7740_p2, %p7734_p4 }
 0x150   : > { %7744 = shalt.err (!%p7741_p5)
}
 0x151   : > { %7234 = dma.hbm_to_vmem [thread:$0]  (!%p8416_p6), %s9691_s8, 32, %s888_s23, [#allocation6]  }
 0x152   : > { %s8182_s28 = smov [#allocation10]   ;;  %s8183_s7 = smov [#allocation13]  }
 0x153   : > { %s909_s14 = sshll.u32 %s8182_s28, 4  ;;  %s935_s2 = sshll.u32 %s8183_s7, 4  ;;  %s910_s14 = int_to_ptr.vmem [resolvable:$true] %s909_s14  ;;  %s936_s2 = int_to_ptr.vmem [resolvable:$true] %s935_s2 }
 0x154   : > { %s7745_s21 = scalar_lea.hbm %s8257_s19, 16 }
 0x155   : > { %p7746_p7 = scmp.ne.s32.totalorder %s8257_s19, %s7745_s21  ;;  %p7752_p11 = scmp.lt.u32.totalorder %s7745_s21, %s8257_s19 }
 0x157   : > { %p7748_p9 = pnand %p7746_p7, %p8426_p8 }
 0x159   : > { %p7749_p10 = pneg %p7748_p9 }
 0x15b   : > { %p7754_p12 = pnand %p7752_p11, %p7749_p10 }
 0x15d   : > { %7757 = shalt.err (!%p7754_p12)
}
 0x15e   : > { %s7758_s1 = scalar_lea.vmem %s910_s14, 16  ;;  %s7765_s23 = scalar_lea.vmem %s910_s14, 32 }
 0x15f   : > { %p7759_p1 = scmp.ne.s32.totalorder %s910_s14, %s7758_s1  ;;  %p7766_p13 = scmp.lt.s32.totalorder %s910_s14, %s910_s14 }
 0x160   : > { %p7767_p0 = scmp.lt.s32.totalorder %s7765_s23, %s7758_s1 }
 0x161   : > { %p7761_p3 = pnand %p7759_p1, %p8426_p8 }
 0x162   : > { %p7768_p2 = por %p7767_p0, %p7766_p13 }
 0x163   : > { %p7762_p4 = pneg %p7761_p3 }
 0x165   : > { %p7769_p5 = pnand %p7768_p2, %p7762_p4 }
 0x167   : > { %7772 = shalt.err (!%p7769_p5)
}
 0x168   : > { %7240 = dma.hbm_to_vmem [thread:$0]  (!%p8416_p6), %s8257_s19, 16, %s910_s14, [#allocation9]  }
 0x169   : > { %s7773_s28 = scalar_lea.hbm %s9692_s6, 1152 }
 0x16a   : > { %p7774_p7 = scmp.ne.s32.totalorder %s9692_s6, %s7773_s28  ;;  %p7780_p11 = scmp.lt.u32.totalorder %s7773_s28, %s9692_s6 }
 0x16c   : > { %p7776_p9 = pnand %p7774_p7, %p8426_p8 }
 0x16e   : > { %p7777_p10 = pneg %p7776_p9 }
 0x170   : > { %p7782_p12 = pnand %p7780_p11, %p7777_p10 }
 0x172   : > { %7785 = shalt.err (!%p7782_p12)
}
 0x173   : > { %s7786_s7 = scalar_lea.vmem %s936_s2, 1152  ;;  %p7794_p13 = scmp.lt.s32.totalorder %s936_s2, %s936_s2 }
 0x174   : > { %p7787_p1 = scmp.ne.s32.totalorder %s936_s2, %s7786_s7  ;;  %p7795_p0 = scmp.lt.s32.totalorder %s7786_s7, %s7786_s7 }
 0x176   : > { %p7789_p3 = pnand %p7787_p1, %p8426_p8  ;;  %p7796_p2 = por %p7795_p0, %p7794_p13 }
 0x178   : > { %p7790_p4 = pneg %p7789_p3 }
 0x17a   : > { %p7797_p5 = pnand %p7796_p2, %p7790_p4 }
 0x17c   : > { %7800 = shalt.err (!%p7797_p5)
}
 0x17d   : > { %7246 = dma.hbm_to_vmem [thread:$0]  (!%p8416_p6), %s9692_s6, 1152, %s936_s2, [#allocation12], %s9702_s10, %s9702_s10, %s8173_s22  }
 0x17e   : > { %s8184_s14 = smov [#allocation16]   ;;  %s8185_s1 = smov [#allocation19]  }
 0x17f   : > { %s964_s21 = sshll.u32 %s8184_s14, 4  ;;  %s989_s23 = sshll.u32 %s8185_s1, 4  ;;  %s965_s21 = int_to_ptr.vmem [resolvable:$true] %s964_s21  ;;  %s990_s23 = int_to_ptr.vmem [resolvable:$true] %s989_s23 }
 0x180   : > { %s7801_s28 = scalar_lea.hbm %s8287_s27, 1152 }
 0x181   : > { %p7802_p7 = scmp.ne.s32.totalorder %s8287_s27, %s7801_s28  ;;  %p7808_p11 = scmp.lt.u32.totalorder %s7801_s28, %s8287_s27 }
 0x183   : > { %p7804_p9 = pnand %p7802_p7, %p8426_p8 }
 0x185   : > { %p7805_p10 = pneg %p7804_p9 }
 0x187   : > { %p7810_p12 = pnand %p7808_p11, %p7805_p10 }
 0x189   : > { %7813 = shalt.err (!%p7810_p12)
}
 0x18a   : > { %s7814_s7 = scalar_lea.vmem %s965_s21, 1152  ;;  %p7822_p13 = scmp.lt.s32.totalorder %s965_s21, %s965_s21 }
 0x18b   : > { %p7815_p1 = scmp.ne.s32.totalorder %s965_s21, %s7814_s7  ;;  %p7823_p0 = scmp.lt.s32.totalorder %s7814_s7, %s7814_s7 }
 0x18d   : > { %p7817_p3 = pnand %p7815_p1, %p8426_p8  ;;  %p7824_p2 = por %p7823_p0, %p7822_p13 }
 0x18f   : > { %p7818_p4 = pneg %p7817_p3 }
 0x191   : > { %p7825_p5 = pnand %p7824_p2, %p7818_p4 }
 0x193   : > { %7828 = shalt.err (!%p7825_p5)
}
 0x194   : > { %7252 = dma.hbm_to_vmem [thread:$0]  (!%p8416_p6), %s8287_s27, 1152, %s965_s21, [#allocation15], %s9702_s10, %s9702_s10, %s8173_s22  }
 0x195   : > { %s7829_s2 = scalar_lea.hbm %s9688_s13, 16 }
 0x196   : > { %p7830_p7 = scmp.ne.s32.totalorder %s9688_s13, %s7829_s2  ;;  %p7836_p11 = scmp.lt.u32.totalorder %s7829_s2, %s9688_s13 }
 0x198   : > { %p7832_p9 = pnand %p7830_p7, %p8426_p8 }
 0x19a   : > { %p7833_p10 = pneg %p7832_p9 }
 0x19c   : > { %p7838_p12 = pnand %p7836_p11, %p7833_p10 }
 0x19e   : > { %7841 = shalt.err (!%p7838_p12)
}
 0x19f   : > { %s7842_s14 = scalar_lea.vmem %s990_s23, 16  ;;  %s7849_s1 = scalar_lea.vmem %s990_s23, 32 }
 0x1a0   : > { %p7843_p1 = scmp.ne.s32.totalorder %s990_s23, %s7842_s14  ;;  %p7850_p13 = scmp.lt.s32.totalorder %s990_s23, %s990_s23 }
 0x1a1   : > { %p7851_p0 = scmp.lt.s32.totalorder %s7849_s1, %s7842_s14 }
 0x1a2   : > { %p7845_p3 = pnand %p7843_p1, %p8426_p8 }
 0x1a3   : > { %p7852_p2 = por %p7851_p0, %p7850_p13 }
 0x1a4   : > { %p7846_p4 = pneg %p7845_p3 }
 0x1a6   : > { %p7853_p5 = pnand %p7852_p2, %p7846_p4 }
 0x1a8   : > { %7856 = shalt.err (!%p7853_p5)
}
 0x1a9   : > { %s9703_s22 = sld [smem:[#allocation67_spill]]  ;;  %s8186_s10 = smov [#allocation22]  }
 0x1aa   : > { %7258 = dma.hbm_to_vmem [thread:$0]  (!%p8416_p6), %s9688_s13, 16, %s990_s23, [#allocation18]  }
 0x1ab   : > { %s1020_s21 = sshll.u32 %s8186_s10, 4  ;;  %s8187_s28 = smov [#allocation25]   ;;  %s1021_s21 = int_to_ptr.vmem [resolvable:$true] %s1020_s21 }
 0x1ac   : > { %s1042_s7 = sshll.u32 %s8187_s28, 4  ;;  %s1043_s7 = int_to_ptr.vmem [resolvable:$true] %s1042_s7 }
 0x1af   : > { %s7857_s2 = scalar_lea.hbm %s9703_s22, 16 }
 0x1b0   : > { %p7858_p7 = scmp.ne.s32.totalorder %s9703_s22, %s7857_s2  ;;  %p7864_p11 = scmp.lt.u32.totalorder %s7857_s2, %s9703_s22 }
 0x1b2   : > { %p7860_p9 = pnand %p7858_p7, %p8426_p8 }
 0x1b4   : > { %p7861_p10 = pneg %p7860_p9 }
 0x1b6   : > { %p7866_p12 = pnand %p7864_p11, %p7861_p10 }
 0x1b8   : > { %7869 = shalt.err (!%p7866_p12)
}
 0x1b9   : > { %s7870_s14 = scalar_lea.vmem %s1021_s21, 16  ;;  %s7877_s23 = scalar_lea.vmem %s1021_s21, 32 }
 0x1ba   : > { %p7871_p1 = scmp.ne.s32.totalorder %s1021_s21, %s7870_s14  ;;  %p7878_p13 = scmp.lt.s32.totalorder %s1021_s21, %s1021_s21 }
 0x1bb   : > { %p7879_p0 = scmp.lt.s32.totalorder %s7877_s23, %s7870_s14 }
 0x1bc   : > { %p7873_p3 = pnand %p7871_p1, %p8426_p8 }
 0x1bd   : > { %p7880_p2 = por %p7879_p0, %p7878_p13 }
 0x1be   : > { %p7874_p4 = pneg %p7873_p3 }
 0x1c0   : > { %p7881_p5 = pnand %p7880_p2, %p7874_p4 }
 0x1c2   : > { %7884 = shalt.err (!%p7881_p5)
}
 0x1c3   : > { %s9704_s1 = sld [smem:[#allocation69_spill]] }
 0x1c4   : > { %7264 = dma.hbm_to_vmem [thread:$0]  (!%p8416_p6), %s9703_s22, 16, %s1021_s21, [#allocation21]  }
 0x1c9   : > { %s7885_s10 = scalar_lea.hbm %s9704_s1, 16 }
 0x1ca   : > { %p7886_p7 = scmp.ne.s32.totalorder %s9704_s1, %s7885_s10  ;;  %p7892_p11 = scmp.lt.u32.totalorder %s7885_s10, %s9704_s1 }
 0x1cc   : > { %p7888_p9 = pnand %p7886_p7, %p8426_p8 }
 0x1ce   : > { %p7889_p10 = pneg %p7888_p9 }
 0x1d0   : > { %p7894_p12 = pnand %p7892_p11, %p7889_p10 }
 0x1d2   : > { %7897 = shalt.err (!%p7894_p12)
}
 0x1d3   : > { %s7898_s28 = scalar_lea.vmem %s1043_s7, 16  ;;  %s7905_s2 = scalar_lea.vmem %s1043_s7, 32 }
 0x1d4   : > { %p7899_p1 = scmp.ne.s32.totalorder %s1043_s7, %s7898_s28  ;;  %p7906_p13 = scmp.lt.s32.totalorder %s1043_s7, %s1043_s7 }
 0x1d5   : > { %p7907_p0 = scmp.lt.s32.totalorder %s7905_s2, %s7898_s28 }
 0x1d6   : > { %p7901_p3 = pnand %p7899_p1, %p8426_p8 }
 0x1d7   : > { %p7908_p2 = por %p7907_p0, %p7906_p13 }
 0x1d8   : > { %p7902_p4 = pneg %p7901_p3 }
 0x1da   : > { %p7909_p5 = pnand %p7908_p2, %p7902_p4 }
 0x1dc   : > { %7912 = shalt.err (!%p7909_p5)
}
 0x1dd   : > { %s9705_s21 = sld [smem:[#allocation72_spill]]  ;;  %s8188_s14 = smov [#allocation28]  }
 0x1de   : > { %7270 = dma.hbm_to_vmem [thread:$0]  (!%p8416_p6), %s9704_s1, 16, %s1043_s7, [#allocation24]  }
 0x1df   : > { %s1070_s23 = sshll.u32 %s8188_s14, 4  ;;  %s8189_s10 = smov [#allocation31]   ;;  %s1071_s23 = int_to_ptr.vmem [resolvable:$true] %s1070_s23 }
 0x1e0   : > { %s1092_s3 = sshll.u32 %s8189_s10, 4  ;;  %s1093_s3 = int_to_ptr.vmem [resolvable:$true] %s1092_s3 }
 0x1e3   : > { %s7913_s4 = scalar_lea.hbm %s9705_s21, 64 }
 0x1e4   : > { %p7914_p7 = scmp.ne.s32.totalorder %s9705_s21, %s7913_s4  ;;  %p7920_p11 = scmp.lt.u32.totalorder %s7913_s4, %s9705_s21 }
 0x1e6   : > { %p7916_p9 = pnand %p7914_p7, %p8426_p8 }
 0x1e8   : > { %p7917_p10 = pneg %p7916_p9 }
 0x1ea   : > { %p7922_p12 = pnand %p7920_p11, %p7917_p10 }
 0x1ec   : > { %7925 = shalt.err (!%p7922_p12)
}
 0x1ed   : > { %s7926_s28 = scalar_lea.vmem %s1071_s23, 64  ;;  %p7934_p13 = scmp.lt.s32.totalorder %s1071_s23, %s1071_s23 }
 0x1ee   : > { %p7927_p1 = scmp.ne.s32.totalorder %s1071_s23, %s7926_s28  ;;  %p7935_p0 = scmp.lt.s32.totalorder %s7926_s28, %s7926_s28 }
 0x1f0   : > { %p7929_p3 = pnand %p7927_p1, %p8426_p8  ;;  %p7936_p2 = por %p7935_p0, %p7934_p13 }
 0x1f2   : > { %p7930_p4 = pneg %p7929_p3 }
 0x1f4   : > { %p7937_p5 = pnand %p7936_p2, %p7930_p4 }
 0x1f6   : > { %7940 = shalt.err (!%p7937_p5)
}
 0x1f7   : > { %7276 = dma.hbm_to_vmem [thread:$0]  (!%p8416_p6), %s9705_s21, 64, %s1071_s23, [#allocation27]  }
 0x1f8   : > { %s7941_s4 = scalar_lea.hbm %s8362_s24, 16 }
 0x1f9   : > { %p7942_p7 = scmp.ne.s32.totalorder %s8362_s24, %s7941_s4  ;;  %p7948_p11 = scmp.lt.u32.totalorder %s7941_s4, %s8362_s24 }
 0x1fb   : > { %p7944_p9 = pnand %p7942_p7, %p8426_p8 }
 0x1fd   : > { %p7945_p10 = pneg %p7944_p9 }
 0x1ff   : > { %p7950_p12 = pnand %p7948_p11, %p7945_p10 }
 0x201   : > { %7953 = shalt.err (!%p7950_p12)
}
 0x202   : > { %s7954_s7 = scalar_lea.vmem %s1093_s3, 16  ;;  %s7961_s2 = scalar_lea.vmem %s1093_s3, 32 }
 0x203   : > { %p7955_p1 = scmp.ne.s32.totalorder %s1093_s3, %s7954_s7  ;;  %p7962_p13 = scmp.lt.s32.totalorder %s1093_s3, %s1093_s3 }
 0x204   : > { %p7963_p0 = scmp.lt.s32.totalorder %s7961_s2, %s7954_s7 }
 0x205   : > { %p7957_p3 = pnand %p7955_p1, %p8426_p8 }
 0x206   : > { %p7964_p2 = por %p7963_p0, %p7962_p13 }
 0x207   : > { %p7958_p4 = pneg %p7957_p3 }
 0x209   : > { %p7965_p5 = pnand %p7964_p2, %p7958_p4 }
 0x20b   : > { %7968 = shalt.err (!%p7965_p5)
}
 0x20c   : > { %7282 = dma.hbm_to_vmem [thread:$0]  (!%p8416_p6), %s8362_s24, 16, %s1093_s3, [#allocation30]  }
 0x20d   : > { %s8190_s14 = smov [#allocation34]   ;;  %s7969_s10 = scalar_lea.hbm %s9693_s5, 16 }
 0x20e   : > { %s1116_s23 = sshll.u32 %s8190_s14, 4  ;;  %p7970_p7 = scmp.ne.s32.totalorder %s9693_s5, %s7969_s10  ;;  %s1117_s23 = int_to_ptr.vmem [resolvable:$true] %s1116_s23 }
 0x20f   : > { %p7976_p11 = scmp.lt.u32.totalorder %s7969_s10, %s9693_s5 }
 0x210   : > { %p7972_p9 = pnand %p7970_p7, %p8426_p8 }
 0x212   : > { %p7973_p10 = pneg %p7972_p9 }
 0x214   : > { %p7978_p12 = pnand %p7976_p11, %p7973_p10 }
 0x216   : > { %7981 = shalt.err (!%p7978_p12)
}
 0x217   : > { %s7982_s28 = scalar_lea.vmem %s1117_s23, 16  ;;  %s7989_s4 = scalar_lea.vmem %s1117_s23, 32 }
 0x218   : > { %p7983_p1 = scmp.ne.s32.totalorder %s1117_s23, %s7982_s28  ;;  %p7990_p13 = scmp.lt.s32.totalorder %s1117_s23, %s1117_s23 }
 0x219   : > { %p7991_p0 = scmp.lt.s32.totalorder %s7989_s4, %s7982_s28 }
 0x21a   : > { %p7985_p3 = pnand %p7983_p1, %p8426_p8 }
 0x21b   : > { %p7992_p2 = por %p7991_p0, %p7990_p13 }
 0x21c   : > { %p7986_p4 = pneg %p7985_p3 }
 0x21e   : > { %p7993_p5 = pnand %p7992_p2, %p7986_p4 }
 0x220   : > { %7996 = shalt.err (!%p7993_p5)
}
 0x221   : > { %7288 = dma.hbm_to_vmem [thread:$0]  (!%p8416_p6), %s9693_s5, 16, %s1117_s23, [#allocation33]  }
 0x222   : > { %s5701_s29 = sadd.s32 4294967294, %s8133_s18   ;;  %s8656_s3 = sadd.s32 1, %s8133_s18  }
 0x223   : > { %s99_s11 = ssub.s32 %s8133_s18, %s8656_s3  ;;  %s102_s7 = sadd.s32 1, %s8129_s0 }
 0x224   : > { %s9706_s2 = sld [smem:[#allocation48_spill]]  ;;  %p100_p8 = scmp.eq.s32.totalorder %s99_s11, 0 }
 0x225   : > { %p109_p7 = scmp.ne.s32.totalorder %s8129_s0, %s8125_s16  ;;  %p110_p9 = scmp.eq.s32.totalorder %s8133_s18, 0 }
 0x226   : > { %p115_p10 = scmp.ne.s32.totalorder %s8125_s16, %s8121_s15  ;;  %p9708_p12 = scmp.eq.s32.totalorder %s8400_s26, 0 }
 0x227   : > { %s8667_s14 = scalar_select %p100_p8, %s8129_s0, %s102_s7  }
 0x228   : > { %p8669_p11 = por %p110_p9, %p109_p7  ;;  %p8675_p6 = por %p9708_p12, %p115_p10 }
 0x229   : > { %p832_p1 = scmp.eq.s32.totalorder %s8400_s26, 1  ;;  %p838_p3 = scmp.eq.s32.totalorder %s5701_s29, 1 }
 0x22a   : > { %s9709_s23 = scalar_select %p8675_p6, 1, 0 }
 0x22b   : > { %p7317_p4 = scmp.lt.s32.totalorder %s8133_s18, 2  ;;  %s1127_s28 = sand.u32 1, %s8129_s0  }
 0x22c   : > { %p8682_p13 = por %p832_p1, %p109_p7  ;;  %p8686_p0 = por %p838_p3, %p115_p10 }
 0x22d   : > { %s5724_s7 = sshll.u32 %s1127_s28, 3  ;;  %s5725_s1 = sshll.u32 %s8133_s18, 7 }
 0x22e   : > { %s9710_s4 = scalar_select %p8682_p13, 1, 0 }
 0x22f   : > { %s9711_s11 = scalar_select %p8686_p0, 1, 0 }
 0x230   : > { %s8692_s5 = scalar_lea.hbm %s9706_s2, %s5725_s1  ;;  %s1131_s29 = scalar_lea.vmem [#allocation2], %s5724_s7 }
 0x231   : > { %s1138_s6 = sshll.u32 %s1131_s29, 4  ;;  %p8698_p2 = pnand %p7317_p4, %p8669_p11  ;;  %s8694_s6 = int_to_ptr.vmem [resolvable:$true] %s1138_s6 }
 0x232   : > { %s1128_s9 = scalar_lea.sflag [#allocation3], %s1127_s28  ;;  %s7997_s12 = scalar_lea.hbm %s8692_s5, 128 }
 0x233   : > { %p7998_p5 = scmp.ne.s32.totalorder %s8692_s5, %s7997_s12  ;;  %p7999_p8 = pneg %p8698_p2 }
 0x234   : > { %s8002_s1 = scalar_lea.hbm %s9706_s2, 256  ;;  %p8003_p10 = scmp.lt.u32.totalorder %s8692_s5, %s9706_s2 }
 0x235   : > { %p8000_p7 = pnand %p7999_p8, %p7998_p5  ;;  %p8004_p12 = scmp.lt.u32.totalorder %s8002_s1, %s7997_s12 }
 0x236   : > { %p8006_p3 = scmp.lt.u32.totalorder %s7997_s12, %s8692_s5 }
 0x237   : > { %p8001_p9 = pneg %p8000_p7  ;;  %p8005_p1 = por %p8004_p12, %p8003_p10 }
 0x239   : > { %p8007_p11 = por %p8006_p3, %p8005_p1 }
 0x23b   : > { %p8008_p4 = pnand %p8007_p11, %p8001_p9 }
 0x23d   : > { %8011 = shalt.err (!%p8008_p4)
}
 0x23e   : > { %s8012_s10 = scalar_lea.vmem %s8694_s6, 128  ;;  %s8191_s28 = smov [#allocation2]  }
 0x23f   : > { %p8013_p0 = scmp.ne.s32.totalorder %s8694_s6, %s8012_s10  ;;  %s8017_s7 = sshll.u32 %s8191_s28, 4  ;;  %s8018_s7 = int_to_ptr.vmem [resolvable:$false] %s8017_s7 }
 0x240   : > { %s8019_s29 = scalar_lea.vmem %s8018_s7, 256  ;;  %p8020_p5 = scmp.lt.s32.totalorder %s8694_s6, %s8018_s7 }
 0x241   : > { %p8015_p13 = pnand %p8013_p0, %p7999_p8  ;;  %p8021_p7 = scmp.lt.s32.totalorder %s8019_s29, %s8012_s10 }
 0x243   : > { %p8016_p6 = pneg %p8015_p13  ;;  %p8022_p10 = por %p8021_p7, %p8020_p5 }
 0x245   : > { %p8023_p12 = pnand %p8022_p10, %p8016_p6 }
 0x247   : > { %8026 = shalt.err (!%p8023_p12)
}
 0x248   : > { %7292 = dma.hbm_to_vmem [thread:$0]  (!%p8698_p2), %s8692_s5, 128, %s8694_s6, %s1128_s9  }
 0x249   : > { %s9713_s12 = sld [smem:[#allocation76_spill]] }
 0x24f   : > { %p9714_p9 = scmp.ne.s32.totalorder %s9713_s12, 0 }
 0x250   : > { %s8726_s1 = sand.u32 (!%p9714_p9), 1, %s8125_s16   ;;  %p9715_p6 = scmp.ne.s32.totalorder (!%p9714_p9), %s9709_s23, 0 }
 0x251   : > { %1147 = sbr.rel (%p9714_p9) target bundleno = 4725 (0x1275), region = 156  ;;  %s9647_s28 = sshll.u32 (!%p9714_p9), %s8726_s1, 3 }
 0x252   : > { %s1150_s10 = scalar_lea.sflag (!%p9714_p9), [#allocation3], %s8726_s1  ;;  %s8732_s7 = scalar_lea.vmem (!%p9714_p9), [#allocation2], %s9647_s28 }
 0x258   : > { %8072 = dma.done.wait (%p9715_p6), %s1150_s10, 128  }
 0x259   : > { %8074 = vsyncadd (%p9715_p6), %s1150_s10, 4294967168  ;;  %p9716_p13 = scmp.eq.s32.totalorder %s8400_s26, 0 }
 0x25b   : > { %8076 = dma.done.wait (%p9716_p13), [#allocation6], 64   ;;  %p9717_p0 = pmov %p9716_p13 }
 0x25d   : > { %8078 = vsyncadd (%p9717_p0), [#allocation6], 4294967232  ;;  %p9718_p2 = pmov %p9717_p0 }
 0x25e   : > { %p9719_p8 = pmov %p9717_p0 }
 0x25f   : > { %8080 = dma.done.wait (%p9718_p2), [#allocation9], 32  }
 0x260   : > { %8082 = vsyncadd (%p9719_p8), [#allocation9], 4294967264  ;;  %p9720_p1 = pmov %p9717_p0 }
 0x261   : > { %p9721_p3 = pmov %p9717_p0 }
 0x262   : > { %8084 = dma.done.wait (%p9720_p1), [#allocation12], 4992  }
 0x263   : > { %8086 = vsyncadd (%p9721_p3), [#allocation12], 4294962304  ;;  %p9722_p11 = pmov %p9717_p0 }
 0x264   : > { %p9723_p4 = pmov %p9717_p0 }
 0x265   : > { %8088 = dma.done.wait (%p9722_p11), [#allocation15], 4992  }
 0x266   : > { %8090 = vsyncadd (%p9723_p4), [#allocation15], 4294962304  ;;  %p9724_p5 = pmov %p9717_p0 }
 0x267   : > { %p9725_p7 = pmov %p9717_p0 }
 0x268   : > { %8092 = dma.done.wait (%p9724_p5), [#allocation18], 48  }
 0x269   : > { %8094 = vsyncadd (%p9725_p7), [#allocation18], 4294967248  ;;  %p9726_p10 = pmov %p9717_p0 }
 0x26a   : > { %p9727_p12 = pmov %p9717_p0 }
 0x26b   : > { %8096 = dma.done.wait (%p9726_p10), [#allocation21], 32  }
 0x26c   : > { %8098 = vsyncadd (%p9727_p12), [#allocation21], 4294967264  ;;  %p9728_p9 = pmov %p9717_p0 }
 0x26d   : > { %p9729_p6 = pmov %p9717_p0 }
 0x26e   : > { %8100 = dma.done.wait (%p9728_p9), [#allocation24], 32  }
 0x26f   : > { %8102 = vsyncadd (%p9729_p6), [#allocation24], 4294967264  ;;  %p9730_p13 = pmov %p9717_p0 }
 0x271   : > { %8104 = dma.done.wait (%p9730_p13), [#allocation27], 80  }
 0x272   : > { %8106 = vsyncadd (%p9717_p0), [#allocation27], 4294967216  ;;  %p9731_p2 = pmov %p9717_p0 }
 0x273   : > { %p9732_p8 = pmov %p9717_p0 }
 0x274   : > { %8108 = dma.done.wait (%p9731_p2), [#allocation30], 144  }
 0x275   : > { %8110 = vsyncadd (%p9732_p8), [#allocation30], 4294967152  ;;  %p9733_p1 = pmov %p9717_p0 }
 0x276   : > { %p9734_p3 = pmov %p9717_p0 }
 0x277   : > { %8112 = dma.done.wait (%p9733_p1), [#allocation33], 272  }
 0x278   : > { %8114 = vsyncadd (%p9734_p3), [#allocation33], 4294967024  ;;  %s9735_s5 = sld [smem:[#allocation51_spill]]  ;;  %s9736_s9 = sld [smem:[#allocation53_spill]]  ;;  %v8192_v0 = vmov 0.0   ;;  %v8798_v27 = vld [vmem:[%s8732_s7] sm:$0xff] }
 0x279   : > { %1407 = vmatprep.mubr.f32.mxu0 %v8192_v0  ;;  %vm1339_vm0 = vcmask 261120   ;;  %s9737_s8 = sld [smem:[#allocation54_spill]]  ;;  %s9739_s23 = sld [smem:[#allocation60_spill]]  ;;  %vm8194_vm1 = vmmov 0   ;;  %vm1594_vm2 = vcmask 654336   ;;  %vm2089_vm3 = vcmask 64512  }
 0x27a   : > { %s9738_s6 = sld [smem:[#allocation70_spill]]  ;;  %s9740_s29 = sld [smem:[#allocation58_spill]]  ;;  %vm3939_vm4 = vcmask 195584   ;;  %vm5118_vm5 = vcmask 1043456   ;;  %vm5114_vm6 = vcmask 31744   ;;  %vm5317_vm7 = vcmask 130048  }
 0x27b   : > { %s9741_s12 = sld [smem:[#allocation55_spill]]  ;;  %s9742_s10 = sld [smem:[#allocation49_spill]]  ;;  %vm5391_vm8 = vcmask 97280  }
 0x27c   : > { %s9743_s7 = sld [smem:[#allocation50_spill]]  ;;  %s9744_s28 = sld [smem:[#allocation64_spill]] }
 0x27d   : > { %s9745_s2 = sld [smem:[#allocation65_spill]]  ;;  %p9750_p4 = scmp.ne.s32.totalorder %s9710_s4, 0 }
 0x27e   : > { %v1320_v1 = vld [vmem:[%s9735_s5 + $0x8] sm:$0xff]  ;;  %v1322_v2 = vld [vmem:[%s9735_s5 + $0x18] sm:$0xff]  ;;  %v1319_v3 = vld [vmem:[%s9735_s5] sm:$0xff] }
 0x27f   : > { %v6508_v4 = vpack.c.bf16 %v1322_v2, %v1320_v1  ;;  %v1321_v5 = vld [vmem:[%s9735_s5 + $0x10] sm:$0xff]  ;;  %v1324_v6 = vld [vmem:[%s9735_s5 + $0x28] sm:$0xff]  ;;  %v1326_v7 = vld [vmem:[%s9735_s5 + $0x38] sm:$0xff] }
 0x280   : > { %v6510_v8 = vpack.c.bf16 %v1321_v5, %v1319_v3  ;;  %v6512_v9 = vpack.c.bf16 %v1326_v7, %v1324_v6  ;;  %v1323_v10 = vld [vmem:[%s9735_s5 + $0x20] sm:$0xff]  ;;  %v1325_v11 = vld [vmem:[%s9735_s5 + $0x30] sm:$0xff]  ;;  %v1415_v12 = vld [vmem:[%s9736_s9 + $0x8] sm:$0xff]  ;;  %s8196_s5 = smov 127  }
 0x281   : > { %6509 = vmatprep.subr.bf16.mxu0 %v6508_v4  ;;  %v1417_v13 = vld [vmem:[%s9736_s9 + $0x18] sm:$0xff]  ;;  %v1414_v14 = vld [vmem:[%s9736_s9] sm:$0xff]  ;;  %v6514_v15 = vpack.c.bf16 %v1325_v11, %v1323_v10  ;;  %v1416_v17 = vld [vmem:[%s9736_s9 + $0x10] sm:$0xff] }
 0x282   : > { %6511 = vmatpush1.bf16.msra.mxu0 %v6510_v8  ;;  %v6516_v16 = vpack.c.bf16 %v1417_v13, %v1415_v12  ;;  %v1419_v18 = vld [vmem:[%s9736_s9 + $0x28] sm:$0xff]  ;;  %v1421_v19 = vld [vmem:[%s9736_s9 + $0x38] sm:$0xff]  ;;  %v6518_v20 = vpack.c.bf16 %v1416_v17, %v1414_v14  ;;  %v1418_v22 = vld [vmem:[%s9736_s9 + $0x20] sm:$0xff] }
 0x283   : > { %6513 = vmatprep.subr.bf16.mxu0 %v6512_v9  ;;  %v6520_v21 = vpack.c.bf16 %v1421_v19, %v1419_v18  ;;  %v1420_v23 = vld [vmem:[%s9736_s9 + $0x30] sm:$0xff]  ;;  %v1423_v24 = vld [vmem:[%s9736_s9 + $0x48] sm:$0xff]  ;;  %v1425_v25 = vld [vmem:[%s9736_s9 + $0x58] sm:$0xff] }
 0x284   : > { %6517 = vmatprep.subr.bf16.mxu1 %v6516_v16  ;;  %v6522_v26 = vpack.c.bf16 %v1420_v23, %v1418_v22  ;;  %v6524_v28 = vpack.c.bf16 %v1425_v25, %v1423_v24  ;;  %v1422_v29 = vld [vmem:[%s9736_s9 + $0x40] sm:$0xff]  ;;  %v1424_v30 = vld [vmem:[%s9736_s9 + $0x50] sm:$0xff]  ;;  %v1427_v31 = vld [vmem:[%s9736_s9 + $0x68] sm:$0xff] }
 0x285   : > { %6519 = vmatpush1.bf16.msra.mxu1 %v6518_v20  ;;  %v1429_v32 = vld [vmem:[%s9736_s9 + $0x78] sm:$0xff]  ;;  %v6526_v33 = vpack.c.bf16 %v1424_v30, %v1422_v29  ;;  %v1426_v35 = vld [vmem:[%s9736_s9 + $0x60] sm:$0xff]  ;;  %v1428_v36 = vld [vmem:[%s9736_s9 + $0x70] sm:$0xff] }
 0x286   : > { %6515 = vmatpush1.bf16.msra.mxu0 %v6514_v15  ;;  %6521 = vmatprep.subr.bf16.mxu1 %v6520_v21  ;;  %v6528_v34 = vpack.c.bf16 %v1429_v32, %v1427_v31  ;;  %v1431_v37 = vld [vmem:[%s9736_s9 + $0x88] sm:$0xff]  ;;  %v1433_v38 = vld [vmem:[%s9736_s9 + $0x98] sm:$0xff]  ;;  %v6530_v39 = vpack.c.bf16 %v1428_v36, %v1426_v35  ;;  %v1430_v41 = vld [vmem:[%s9736_s9 + $0x80] sm:$0xff] }
 0x287   : > { %v6532_v40 = vpack.c.bf16 %v1433_v38, %v1431_v37  ;;  %v1432_v42 = vld [vmem:[%s9736_s9 + $0x90] sm:$0xff]  ;;  %v1435_v43 = vld [vmem:[%s9736_s9 + $0xa8] sm:$0xff]  ;;  %v1437_v44 = vld [vmem:[%s9736_s9 + $0xb8] sm:$0xff] }
 0x288   : > { %v6534_v45 = vpack.c.bf16 %v1432_v42, %v1430_v41  ;;  %v6536_v46 = vpack.c.bf16 %v1437_v44, %v1435_v43  ;;  %v1434_v47 = vld [vmem:[%s9736_s9 + $0xa0] sm:$0xff]  ;;  %v1436_v48 = vld [vmem:[%s9736_s9 + $0xb0] sm:$0xff]  ;;  %v1439_v49 = vld [vmem:[%s9736_s9 + $0xc8] sm:$0xff] }
 0x289   : > { %5749 = vmatmul.mubr.msk.f32.vlgmr.msra.gmra.mrb[0].mxu0 %vm1339_vm0, %v8798_v27  ;;  %6523 = vmatpush1.bf16.msra.mxu1 %v6522_v26  ;;  %v1441_v50 = vld [vmem:[%s9736_s9 + $0xd8] sm:$0xff]  ;;  %v6538_v51 = vpack.c.bf16 %v1436_v48, %v1434_v47  ;;  %v1438_v53 = vld [vmem:[%s9736_s9 + $0xc0] sm:$0xff]  ;;  %v1440_v54 = vld [vmem:[%s9736_s9 + $0xd0] sm:$0xff]  ;;  %v8193_v48 = vmov 0.0|0.0  }
 0x28a   : > { %6525 = vmatprep.subr.bf16.mxu1 %v6524_v28  ;;  %v6540_v52 = vpack.c.bf16 %v1441_v50, %v1439_v49  ;;  %v1443_v55 = vld [vmem:[%s9736_s9 + $0xe8] sm:$0xff]  ;;  %v1445_v56 = vld [vmem:[%s9736_s9 + $0xf8] sm:$0xff]  ;;  %v6542_v57 = vpack.c.bf16 %v1440_v54, %v1438_v53  ;;  %v1442_v59 = vld [vmem:[%s9736_s9 + $0xe0] sm:$0xff]  ;;  %6580 = vmatprep.subr.bf16.mxu0 %v8193_v48 }
 0x28b   : > { %v6544_v58 = vpack.c.bf16 %v1445_v56, %v1443_v55  ;;  %v1444_v60 = vld [vmem:[%s9736_s9 + $0xf0] sm:$0xff]  ;;  %v1447_v61 = vld [vmem:[%s9736_s9 + $0x108] sm:$0xff]  ;;  %v1449_v62 = vld [vmem:[%s9736_s9 + $0x118] sm:$0xff] }
 0x28c   : > { %v6546_v63 = vpack.c.bf16 %v1444_v60, %v1442_v59  ;;  %v6548_v1 = vpack.c.bf16 %v1449_v62, %v1447_v61  ;;  %v1446_v2 = vld [vmem:[%s9736_s9 + $0x100] sm:$0xff]  ;;  %v1448_v3 = vld [vmem:[%s9736_s9 + $0x110] sm:$0xff]  ;;  %v1451_v4 = vld [vmem:[%s9736_s9 + $0x128] sm:$0xff] }
 0x28d   : > { %6527 = vmatpush1.bf16.msra.mxu1 %v6526_v33  ;;  %v1453_v5 = vld [vmem:[%s9736_s9 + $0x138] sm:$0xff]  ;;  %v6550_v6 = vpack.c.bf16 %v1448_v3, %v1446_v2  ;;  %v1450_v8 = vld [vmem:[%s9736_s9 + $0x120] sm:$0xff]  ;;  %v1452_v9 = vld [vmem:[%s9736_s9 + $0x130] sm:$0xff] }
 0x28e   : > { %6529 = vmatprep.subr.bf16.mxu1 %v6528_v34  ;;  %v6552_v7 = vpack.c.bf16 %v1453_v5, %v1451_v4  ;;  %v1455_v10 = vld [vmem:[%s9736_s9 + $0x148] sm:$0xff]  ;;  %v1457_v11 = vld [vmem:[%s9736_s9 + $0x158] sm:$0xff]  ;;  %v6554_v12 = vpack.c.bf16 %v1452_v9, %v1450_v8  ;;  %v1454_v14 = vld [vmem:[%s9736_s9 + $0x140] sm:$0xff] }
 0x28f   : > { %v6556_v13 = vpack.c.bf16 %v1457_v11, %v1455_v10  ;;  %v1456_v15 = vld [vmem:[%s9736_s9 + $0x150] sm:$0xff]  ;;  %v1459_v16 = vld [vmem:[%s9736_s9 + $0x168] sm:$0xff]  ;;  %v1461_v17 = vld [vmem:[%s9736_s9 + $0x178] sm:$0xff] }
 0x290   : > { %v6558_v18 = vpack.c.bf16 %v1456_v15, %v1454_v14  ;;  %v6560_v19 = vpack.c.bf16 %v1461_v17, %v1459_v16  ;;  %v1458_v20 = vld [vmem:[%s9736_s9 + $0x160] sm:$0xff]  ;;  %v1460_v21 = vld [vmem:[%s9736_s9 + $0x170] sm:$0xff]  ;;  %v1463_v22 = vld [vmem:[%s9736_s9 + $0x188] sm:$0xff] }
 0x291   : > { %6531 = vmatpush1.bf16.msra.mxu1 %v6530_v39  ;;  %v1465_v23 = vld [vmem:[%s9736_s9 + $0x198] sm:$0xff]  ;;  %v6562_v24 = vpack.c.bf16 %v1460_v21, %v1458_v20  ;;  %v1462_v26 = vld [vmem:[%s9736_s9 + $0x180] sm:$0xff]  ;;  %v1464_v28 = vld [vmem:[%s9736_s9 + $0x190] sm:$0xff] }
 0x292   : > { %6533 = vmatprep.subr.bf16.mxu1 %v6532_v40  ;;  %v6564_v25 = vpack.c.bf16 %v1465_v23, %v1463_v22  ;;  %v1467_v29 = vld [vmem:[%s9736_s9 + $0x1a8] sm:$0xff]  ;;  %v1469_v30 = vld [vmem:[%s9736_s9 + $0x1b8] sm:$0xff]  ;;  %v6566_v31 = vpack.c.bf16 %v1464_v28, %v1462_v26  ;;  %v1466_v33 = vld [vmem:[%s9736_s9 + $0x1a0] sm:$0xff]  ;;  %v1329_v22 = vlaneseq }
 0x293   : > { %v6568_v32 = vpack.c.bf16 %v1469_v30, %v1467_v29  ;;  %v1468_v34 = vld [vmem:[%s9736_s9 + $0x1b0] sm:$0xff]  ;;  %v1471_v35 = vld [vmem:[%s9736_s9 + $0x1c8] sm:$0xff]  ;;  %v1473_v36 = vld [vmem:[%s9736_s9 + $0x1d8] sm:$0xff] }
 0x294   : > { %v6570_v37 = vpack.c.bf16 %v1468_v34, %v1466_v33  ;;  %v6572_v38 = vpack.c.bf16 %v1473_v36, %v1471_v35  ;;  %v1470_v39 = vld [vmem:[%s9736_s9 + $0x1c0] sm:$0xff]  ;;  %v1472_v40 = vld [vmem:[%s9736_s9 + $0x1d0] sm:$0xff]  ;;  %v1475_v42 = vld [vmem:[%s9736_s9 + $0x1e8] sm:$0xff]  ;;  %v1330_v23 = vshrl.u32 %v1329_v22, 7 }
 0x295   : > { %6535 = vmatpush1.bf16.msra.mxu1 %v6534_v45  ;;  %v6574_v41 = vpack.c.bf16 %v1472_v40, %v1470_v39  ;;  %v1477_v43 = vld [vmem:[%s9736_s9 + $0x1f8] sm:$0xff]  ;;  %v1474_v45 = vld [vmem:[%s9736_s9 + $0x1e0] sm:$0xff]  ;;  %v1562_v50 = vld [vmem:[%s9737_s8 + $0x8] sm:$0xff] }
 0x296   : > { %6537 = vmatprep.subr.bf16.mxu1 %v6536_v46  ;;  %v6576_v44 = vpack.c.bf16 %v1477_v43, %v1475_v42  ;;  %v1476_v46 = vld [vmem:[%s9736_s9 + $0x1f0] sm:$0xff]  ;;  %v1561_v49 = vld [vmem:[%s9737_s8] sm:$0xff]  ;;  %v1564_v53 = vld [vmem:[%s9737_s8 + $0x18] sm:$0xff]  ;;  %v8896_v26 = vsub.s32 0, %v1330_v23 }
 0x297   : > { %v6578_v47 = vpack.c.bf16 %v1476_v46, %v1474_v45  ;;  %v1565_v55 = vld [vmem:[%s9737_s8 + $0x20] sm:$0xff]  ;;  %v1566_v56 = vld [vmem:[%s9737_s8 + $0x28] sm:$0xff]  ;;  %v1568_v59 = vld [vmem:[%s9737_s8 + $0x38] sm:$0xff] }
 0x298   : > { %v1569_v61 = vld [vmem:[%s9737_s8 + $0x40] sm:$0xff]  ;;  %v1570_v62 = vld [vmem:[%s9737_s8 + $0x48] sm:$0xff]  ;;  %v1572_v2 = vld [vmem:[%s9737_s8 + $0x58] sm:$0xff] }
 0x299   : > { %6539 = vmatpush1.bf16.msra.mxu1 %v6538_v51  ;;  %v6581_v51 = vpack.c.bf16 %v1562_v50, %v1561_v49  ;;  %v1573_v4 = vld [vmem:[%s9737_s8 + $0x60] sm:$0xff]  ;;  %v1574_v5 = vld [vmem:[%s9737_s8 + $0x68] sm:$0xff]  ;;  %v1576_v8 = vld [vmem:[%s9737_s8 + $0x78] sm:$0xff] }
 0x29a   : > { %6541 = vmatprep.subr.bf16.mxu1 %v6540_v52  ;;  %v1563_v52 = vld [vmem:[%s9737_s8 + $0x10] sm:$0xff]  ;;  %v1577_v10 = vld [vmem:[%s9737_s8 + $0x80] sm:$0xff]  ;;  %v1578_v11 = vld [vmem:[%s9737_s8 + $0x88] sm:$0xff] }
 0x29b   : > { %6582 = vmatpush1.bf16.msra.mxu0 %v6581_v51  ;;  %v6584_v54 = vpack.c.bf16 %v1564_v53, %v1563_v52  ;;  %v1580_v14 = vld [vmem:[%s9737_s8 + $0x98] sm:$0xff]  ;;  %v1581_v16 = vld [vmem:[%s9737_s8 + $0xa0] sm:$0xff]  ;;  %v1582_v17 = vld [vmem:[%s9737_s8 + $0xa8] sm:$0xff] }
 0x29c   : > { %6583 = vmatprep.subr.bf16.mxu0 %v8193_v48  ;;  %v1584_v20 = vld [vmem:[%s9737_s8 + $0xb8] sm:$0xff]  ;;  %v1758_v30 = vld [vmem:[%s9738_s6] sm:$0xff]  ;;  %v1894_v39 = vld [vmem:[%s9739_s23 + $0x8] sm:$0xff] }
 0x29d   : > { %6543 = vmatpush1.bf16.msra.mxu1 %v6542_v57  ;;  %v6587_v57 = vpack.c.bf16 %v1566_v56, %v1565_v55  ;;  %v1896_v40 = vld [vmem:[%s9739_s23 + $0x18] sm:$0xff]  ;;  %v1893_v43 = vld [vmem:[%s9739_s23] sm:$0xff]  ;;  %v1898_v45 = vld [vmem:[%s9739_s23 + $0x28] sm:$0xff] }
 0x29e   : > { %6545 = vmatprep.subr.bf16.mxu1 %v6544_v58  ;;  %v1567_v58 = vld [vmem:[%s9737_s8 + $0x30] sm:$0xff]  ;;  %v6640_v42 = vpack.c.bf16 %v1896_v40, %v1894_v39  ;;  %v1900_v46 = vld [vmem:[%s9739_s23 + $0x38] sm:$0xff]  ;;  %v1897_v50 = vld [vmem:[%s9739_s23 + $0x20] sm:$0xff] }
 0x29f   : > { %6585 = vmatpush1.bf16.msra.mxu0 %v6584_v54  ;;  %v6590_v60 = vpack.c.bf16 %v1568_v59, %v1567_v58  ;;  %v6644_v49 = vpack.c.bf16 %v1900_v46, %v1898_v45  ;;  %v1899_v51 = vld [vmem:[%s9739_s23 + $0x30] sm:$0xff]  ;;  %v1902_v52 = vld [vmem:[%s9739_s23 + $0x48] sm:$0xff]  ;;  %v1904_v53 = vld [vmem:[%s9739_s23 + $0x58] sm:$0xff] }
 0x2a0   : > { %6586 = vmatprep.subr.bf16.mxu0 %v8193_v48  ;;  %v6646_v54 = vpack.c.bf16 %v1899_v51, %v1897_v50  ;;  %v6648_v55 = vpack.c.bf16 %v1904_v53, %v1902_v52  ;;  %v1901_v56 = vld [vmem:[%s9739_s23 + $0x40] sm:$0xff]  ;;  %v1906_v58 = vld [vmem:[%s9739_s23 + $0x68] sm:$0xff]  ;;  %v1908_v59 = vld [vmem:[%s9739_s23 + $0x78] sm:$0xff] }
 0x2a1   : > { %6547 = vmatpush1.bf16.msra.mxu1 %v6546_v63  ;;  %v6593_v63 = vpack.c.bf16 %v1570_v62, %v1569_v61  ;;  %v6652_v61 = vpack.c.bf16 %v1908_v59, %v1906_v58  ;;  %v1905_v62 = vld [vmem:[%s9739_s23 + $0x60] sm:$0xff]  ;;  %v1934_v39 = vld [vmem:[%s9739_s23 + $0x148] sm:$0xff]  ;;  %v1936_v40 = vld [vmem:[%s9739_s23 + $0x158] sm:$0xff] }
 0x2a2   : > { %6549 = vmatprep.subr.bf16.mxu1 %v6548_v1  ;;  %v1571_v1 = vld [vmem:[%s9737_s8 + $0x50] sm:$0xff]  ;;  %v1921_v22 = vld [vmem:[%s9739_s23 + $0xe0] sm:$0xff]  ;;  %v1938_v45 = vld [vmem:[%s9739_s23 + $0x168] sm:$0xff] }
 0x2a3   : > { %6588 = vmatpush1.bf16.msra.mxu0 %v6587_v57  ;;  %v6596_v3 = vpack.c.bf16 %v1572_v2, %v1571_v1  ;;  %v1903_v57 = vld [vmem:[%s9739_s23 + $0x50] sm:$0xff]  ;;  %v1912_v1 = vld [vmem:[%s9739_s23 + $0x98] sm:$0xff]  ;;  %v1937_v50 = vld [vmem:[%s9739_s23 + $0x160] sm:$0xff] }
 0x2a4   : > { %6589 = vmatprep.subr.bf16.mxu0 %v8193_v48  ;;  %v1940_v46 = vld [vmem:[%s9739_s23 + $0x178] sm:$0xff]  ;;  %v1939_v51 = vld [vmem:[%s9739_s23 + $0x170] sm:$0xff]  ;;  %v1942_v53 = vld [vmem:[%s9739_s23 + $0x188] sm:$0xff] }
 0x2a5   : > { %6551 = vmatpush1.bf16.msra.mxu1 %v6550_v6  ;;  %v6599_v6 = vpack.c.bf16 %v1574_v5, %v1573_v4  ;;  %v1909_v4 = vld [vmem:[%s9739_s23 + $0x80] sm:$0xff]  ;;  %v1911_v5 = vld [vmem:[%s9739_s23 + $0x90] sm:$0xff]  ;;  %v6686_v52 = vpack.c.bf16 %v1939_v51, %v1937_v50 }
 0x2a6   : > { %6553 = vmatprep.subr.bf16.mxu1 %v6552_v7  ;;  %v1575_v7 = vld [vmem:[%s9737_s8 + $0x70] sm:$0xff]  ;;  %v1941_v58 = vld [vmem:[%s9739_s23 + $0x180] sm:$0xff] }
 0x2a7   : > { %6591 = vmatpush1.bf16.msra.mxu0 %v6590_v60  ;;  %v6602_v9 = vpack.c.bf16 %v1576_v8, %v1575_v7  ;;  %v6650_v60 = vpack.c.bf16 %v1903_v57, %v1901_v56  ;;  %v1916_v7 = vld [vmem:[%s9739_s23 + $0xb8] sm:$0xff]  ;;  %v6658_v8 = vpack.c.bf16 %v1911_v5, %v1909_v4  ;;  %v1585_v56 = vld [vmem:[%s9737_s8 + $0xc0] sm:$0xff]  ;;  %v1586_v57 = vld [vmem:[%s9737_s8 + $0xc8] sm:$0xff] }
 0x2a8   : > { %6592 = vmatprep.subr.bf16.mxu0 %v8193_v48  ;;  %v6617_v59 = vpack.c.bf16 %v1586_v57, %v1585_v56  ;;  %v1669_v5 = vld [vmem:[%s9741_s12 + $0x8] sm:$0xff]  ;;  %v1857_v50 = vld [vmem:[%s9740_s29 + $0x80] sm:$0xff]  ;;  %v1859_v51 = vld [vmem:[%s9740_s29 + $0x90] sm:$0xff] }
 0x2a9   : > { %6555 = vmatpush1.bf16.msra.mxu1 %v6554_v12  ;;  %v6605_v12 = vpack.c.bf16 %v1578_v11, %v1577_v10  ;;  %v1913_v10 = vld [vmem:[%s9739_s23 + $0xa0] sm:$0xff]  ;;  %v1915_v11 = vld [vmem:[%s9739_s23 + $0xb0] sm:$0xff] }
 0x2aa   : > { %6557 = vmatprep.subr.bf16.mxu1 %v6556_v13  ;;  %v1579_v13 = vld [vmem:[%s9737_s8 + $0x90] sm:$0xff]  ;;  %v1861_v57 = vld [vmem:[%s9740_s29 + $0xa0] sm:$0xff] }
 0x2ab   : > { %6594 = vmatpush1.bf16.msra.mxu0 %v6593_v63  ;;  %v6608_v15 = vpack.c.bf16 %v1580_v14, %v1579_v13  ;;  %v1910_v63 = vld [vmem:[%s9739_s23 + $0x88] sm:$0xff]  ;;  %v1920_v13 = vld [vmem:[%s9739_s23 + $0xd8] sm:$0xff]  ;;  %v6662_v14 = vpack.c.bf16 %v1915_v11, %v1913_v10 }
 0x2ac   : > { %6595 = vmatprep.subr.bf16.mxu0 %v8193_v48  ;;  %v1846_v10 = vld [vmem:[%s9740_s29 + $0x28] sm:$0xff]  ;;  %v1848_v11 = vld [vmem:[%s9740_s29 + $0x38] sm:$0xff] }
 0x2ad   : > { %6559 = vmatpush1.bf16.msra.mxu1 %v6558_v18  ;;  %v6611_v18 = vpack.c.bf16 %v1582_v17, %v1581_v16  ;;  %v1917_v16 = vld [vmem:[%s9739_s23 + $0xc0] sm:$0xff]  ;;  %v1919_v17 = vld [vmem:[%s9739_s23 + $0xd0] sm:$0xff] }
 0x2ae   : > { %6561 = vmatprep.subr.bf16.mxu1 %v6560_v19  ;;  %v1583_v19 = vld [vmem:[%s9737_s8 + $0xb0] sm:$0xff] }
 0x2af   : > { %6597 = vmatpush1.bf16.msra.mxu0 %v6596_v3  ;;  %v6614_v21 = vpack.c.bf16 %v1584_v20, %v1583_v19  ;;  %v6656_v3 = vpack.c.bf16 %v1912_v1, %v1910_v63  ;;  %v1924_v19 = vld [vmem:[%s9739_s23 + $0xf8] sm:$0xff]  ;;  %v6666_v20 = vpack.c.bf16 %v1919_v17, %v1917_v16  ;;  %v1478_v1 = vld [vmem:[#allocation7] sm:$0x3] }
 0x2b0   : > { %6598 = vmatprep.subr.bf16.mxu0 %v8193_v48  ;;  %v1483_v4 = vrot.slane %v1478_v1, %v8896_v26  ;;  %v1671_v17 = vld [vmem:[%s9741_s12 + $0x18] sm:$0xff] }
 0x2b1   : > { %6563 = vmatpush1.bf16.msra.mxu1 %v6562_v24  ;;  %v8894_v24 = vsub.s32 1, %v1330_v23  ;;  %v1923_v23 = vld [vmem:[%s9739_s23 + $0xf0] sm:$0xff] }
 0x2b2   : > { %6565 = vmatprep.subr.bf16.mxu1 %v6564_v25  ;;  %v1327_v25 = vld [vmem:[#allocation5] sm:$0x3] }
 0x2b3   : > { %6600 = vmatpush1.bf16.msra.mxu0 %v6599_v6  ;;  %v1336_v28 = vrot.slane %v1327_v25, %v8894_v24  ;;  %v1332_v29 = vrot.slane %v1327_v25, %v8896_v26  ;;  %v1914_v6 = vld [vmem:[%s9739_s23 + $0xa8] sm:$0xff] }
 0x2b4   : > { %6601 = vmatprep.subr.bf16.mxu0 %v8193_v48  ;;  %v1926_v25 = vld [vmem:[%s9739_s23 + $0x108] sm:$0xff] }
 0x2b5   : > { %6567 = vmatpush1.bf16.msra.mxu1 %v6566_v31  ;;  %v1759_v31 = vld [vmem:[%s9738_s6 + $0x8] sm:$0xff] }
 0x2b6   : > { %6569 = vmatprep.subr.bf16.mxu1 %v6568_v32  ;;  %v6635_v35 = vpack.c.bf16 %v1759_v31, %v1758_v30  ;;  %v1925_v31 = vld [vmem:[%s9739_s23 + $0x100] sm:$0xff] }
 0x2b7   : > { %6603 = vmatpush1.bf16.msra.mxu0 %v6602_v9  ;;  %v6660_v9 = vpack.c.bf16 %v1916_v7, %v1914_v6  ;;  %v1841_v6 = vld [vmem:[%s9740_s29] sm:$0xff]  ;;  %v1843_v7 = vld [vmem:[%s9740_s29 + $0x10] sm:$0xff] }
 0x2b8   : > { %6604 = vmatprep.subr.bf16.mxu0 %v8193_v48 }
 0x2b9   : > { %6571 = vmatpush1.bf16.msra.mxu1 %v6570_v37  ;;  %v1760_v37 = vld [vmem:[%s9738_s6 + $0x10] sm:$0xff] }
 0x2ba   : > { %6573 = vmatprep.subr.bf16.mxu1 %v6572_v38  ;;  %v1761_v38 = vld [vmem:[%s9738_s6 + $0x18] sm:$0xff]  ;;  %s8197_s6 = smov 126  }
 0x2bb   : > { %6606 = vmatpush1.bf16.msra.mxu0 %v6605_v12  ;;  %v1918_v12 = vld [vmem:[%s9739_s23 + $0xc8] sm:$0xff] }
 0x2bc   : > { %6607 = vmatprep.subr.bf16.mxu0 %v8193_v48 }
 0x2bd   : > { %6575 = vmatpush1.bf16.msra.mxu1 %v6574_v41  ;;  %v6638_v41 = vpack.c.bf16 %v1761_v38, %v1760_v37  ;;  %v1929_v37 = vld [vmem:[%s9739_s23 + $0x120] sm:$0xff]  ;;  %v1931_v38 = vld [vmem:[%s9739_s23 + $0x130] sm:$0xff] }
 0x2be   : > { %6577 = vmatprep.subr.bf16.mxu1 %v6576_v44  ;;  %v1895_v44 = vld [vmem:[%s9739_s23 + $0x10] sm:$0xff] }
 0x2bf   : > { %6609 = vmatpush1.bf16.msra.mxu0 %v6608_v15  ;;  %v6664_v15 = vpack.c.bf16 %v1920_v13, %v1918_v12 }
 0x2c0   : > { %6610 = vmatprep.subr.bf16.mxu0 %v8193_v48 }
 0x2c1   : > { %6579 = vmatpush1.bf16.msra.mxu1 %v6578_v47  ;;  %v6642_v47 = vpack.c.bf16 %v1895_v44, %v1893_v43  ;;  %v1933_v43 = vld [vmem:[%s9739_s23 + $0x140] sm:$0xff]  ;;  %v1935_v44 = vld [vmem:[%s9739_s23 + $0x150] sm:$0xff] }
 0x2c2   : > { %6634 = vmatprep.subr.bf16.mxu1 %v8193_v48 }
 0x2c3   : > { %6612 = vmatpush1.bf16.msra.mxu0 %v6611_v18  ;;  %v1922_v18 = vld [vmem:[%s9739_s23 + $0xe8] sm:$0xff] }
 0x2c4   : > { %6613 = vmatprep.subr.bf16.mxu0 %v8193_v48 }
 0x2c7   : > { %6615 = vmatpush1.bf16.msra.mxu0 %v6614_v21  ;;  %v6668_v21 = vpack.c.bf16 %v1924_v19, %v1922_v18  ;;  %v1845_v18 = vld [vmem:[%s9740_s29 + $0x20] sm:$0xff]  ;;  %v1847_v19 = vld [vmem:[%s9740_s29 + $0x30] sm:$0xff] }
 0x2c8   : > { %6616 = vmatprep.subr.bf16.mxu0 %v8193_v48 }
 0x2cb   : > { %6618 = vmatpush1.bf16.msra.mxu0 %v6617_v59  ;;  %v1866_v59 = vld [vmem:[%s9740_s29 + $0xc8] sm:$0xff] }
 0x2cc   : > { %6619 = vmatprep.subr.bf16.mxu0 %v8193_v48 }
 0x35c   : > { %v1409_v32 = vpop.f32.mrb[0].mxu0 }
 0x35d   : > { %v1411_v33 = vpop.f32.mrb[1].mxu0  ;;  %v1410_v36 = vadd.f32 %v1409_v32, %v1332_v29  ;;  %v6670_v29 = vpack.c.bf16 %v1923_v23, %v1921_v22  ;;  %v1927_v32 = vld [vmem:[%s9739_s23 + $0x110] sm:$0xff]  ;;  %v1852_v22 = vld [vmem:[%s9740_s29 + $0x58] sm:$0xff] }
 0x35e   : > { %v1412_v34 = vadd.f32 %v1411_v33, %v1336_v28  ;;  %v1928_v28 = vld [vmem:[%s9739_s23 + $0x118] sm:$0xff]  ;;  %v1930_v33 = vld [vmem:[%s9739_s23 + $0x128] sm:$0xff] }
 0x35f   : > { %v6672_v30 = vpack.c.bf16 %v1928_v28, %v1926_v25  ;;  %v6698_v25 = vpack.c.bf16 %v1847_v19, %v1845_v18  ;;  %v1672_v28 = vld [vmem:[%s9741_s12 + $0x20] sm:$0xff] }
 0x360   : > { %1554 = vmatprep.mubr.f32.mxu1 %v1412_v34  ;;  %v1932_v34 = vld [vmem:[%s9739_s23 + $0x138] sm:$0xff]  ;;  %v1877_v19 = vld [vmem:[%s9740_s29 + $0x120] sm:$0xff] }
 0x361   : > { %1555 = vmatmul.mubr.f32.vlgmr.msra.gmra.mrb[0].mxu1 %v1410_v36  ;;  %v6676_v36 = vpack.c.bf16 %v1932_v34, %v1930_v33  ;;  %v1854_v33 = vld [vmem:[%s9740_s29 + $0x68] sm:$0xff]  ;;  %v1856_v34 = vld [vmem:[%s9740_s29 + $0x78] sm:$0xff] }
 0x362   : > { %6636 = vmatpush3.bf16.msra.mxu1 %v6635_v35  ;;  %6204 = vmatprep.mubr.msk.f32.mxu1 %vm8194_vm1, %v8192_v0  ;;  %v6674_v35 = vpack.c.bf16 %v1927_v32, %v1925_v31  ;;  %v1849_v31 = vld [vmem:[%s9740_s29 + $0x40] sm:$0xff]  ;;  %v1851_v32 = vld [vmem:[%s9740_s29 + $0x50] sm:$0xff] }
 0x363   : > { %6637 = vmatprep.subr.bf16.mxu1 %v8193_v48 }
 0x366   : > { %6639 = vmatpush3.bf16.msra.mxu1 %v6638_v41  ;;  %v6678_v41 = vpack.c.bf16 %v1931_v38, %v1929_v37  ;;  %v1674_v37 = vld [vmem:[%s9741_s12 + $0x30] sm:$0xff]  ;;  %v6704_v38 = vpack.c.bf16 %v1856_v34, %v1854_v33  ;;  %v1885_v34 = vld [vmem:[%s9740_s29 + $0x160] sm:$0xff] }
 0x367   : > { %6641 = vmatprep.subr.bf16.mxu1 %v6640_v42  ;;  %v6680_v42 = vpack.c.bf16 %v1936_v40, %v1934_v39  ;;  %v1675_v39 = vld [vmem:[%s9741_s12 + $0x38] sm:$0xff]  ;;  %v1853_v40 = vld [vmem:[%s9740_s29 + $0x60] sm:$0xff] }
 0x369   : > { %6205 = vmatmul.mubr.msk.f32.vlgmr.msra.gmra.mrb[2].mxu1 %vm1339_vm0, %v8798_v27  ;;  %v1907_v27 = vld [vmem:[%s9739_s23 + $0x70] sm:$0xff] }
 0x36a   : > { %6643 = vmatpush1.bf16.msra.mxu1 %v6642_v47  ;;  %v6654_v2 = vpack.c.bf16 %v1907_v27, %v1905_v62  ;;  %v6682_v47 = vpack.c.bf16 %v1935_v44, %v1933_v43  ;;  %v1842_v62 = vld [vmem:[%s9740_s29 + $0x8] sm:$0xff]  ;;  %v1844_v27 = vld [vmem:[%s9740_s29 + $0x18] sm:$0xff]  ;;  %v6629_v44 = vpack.c.bf16 %v1675_v39, %v1674_v37 }
 0x36b   : > { %6645 = vmatprep.subr.bf16.mxu1 %v6644_v49  ;;  %v6684_v49 = vpack.c.bf16 %v1940_v46, %v1938_v45  ;;  %v6692_v63 = vpack.c.bf16 %v1844_v27, %v1842_v62  ;;  %v1860_v43 = vld [vmem:[%s9740_s29 + $0x98] sm:$0xff]  ;;  %v1676_v46 = vld [vmem:[%s9741_s12 + $0x40] sm:$0xff] }
 0x36c   : > { %v1865_v27 = vld [vmem:[%s9740_s29 + $0xc0] sm:$0xff]  ;;  %v1892_v37 = vld [vmem:[%s9740_s29 + $0x198] sm:$0xff] }
 0x36e   : > { %6647 = vmatpush1.bf16.msra.mxu1 %v6646_v54  ;;  %v1944_v54 = vld [vmem:[%s9739_s23 + $0x198] sm:$0xff] }
 0x36f   : > { %6649 = vmatprep.subr.bf16.mxu1 %v6648_v55  ;;  %v6688_v55 = vpack.c.bf16 %v1944_v54, %v1942_v53  ;;  %v1864_v53 = vld [vmem:[%s9740_s29 + $0xb8] sm:$0xff] }
 0x372   : > { %6651 = vmatpush1.bf16.msra.mxu1 %v6650_v60  ;;  %v1943_v60 = vld [vmem:[%s9739_s23 + $0x190] sm:$0xff] }
 0x373   : > { %6653 = vmatprep.subr.bf16.mxu1 %v6652_v61  ;;  %v6690_v61 = vpack.c.bf16 %v1943_v60, %v1941_v58  ;;  %v1863_v58 = vld [vmem:[%s9740_s29 + $0xb0] sm:$0xff]  ;;  %v1868_v60 = vld [vmem:[%s9740_s29 + $0xd8] sm:$0xff] }
 0x374   : > { %v6716_v62 = vpack.c.bf16 %v1868_v60, %v1866_v59  ;;  %v5768_v59 = vld [vmem:[%s9740_s29 + $0x1e0] sm:$0xff]  ;;  %v5770_v60 = vld [vmem:[%s9740_s29 + $0x1f0] sm:$0xff] }
 0x376   : > { %6655 = vmatpush1.bf16.msra.mxu1 %v6654_v2  ;;  %v1487_v2 = vrot.slane %v1478_v1, %v8894_v24  ;;  %v1870_v1 = vld [vmem:[%s9740_s29 + $0xe8] sm:$0xff] }
 0x377   : > { %6657 = vmatprep.subr.bf16.mxu1 %v6656_v3  ;;  %v1668_v3 = vld [vmem:[%s9741_s12] sm:$0xff] }
 0x378   : > { %v6620_v13 = vpack.c.bf16 %v1669_v5, %v1668_v3  ;;  %v1869_v5 = vld [vmem:[%s9740_s29 + $0xe0] sm:$0xff] }
 0x37a   : > { %6659 = vmatpush1.bf16.msra.mxu1 %v6658_v8 }
 0x37b   : > { %6661 = vmatprep.subr.bf16.mxu1 %v6660_v9 }
 0x37e   : > { %6663 = vmatpush1.bf16.msra.mxu1 %v6662_v14  ;;  %v6694_v14 = vpack.c.bf16 %v1843_v7, %v1841_v6  ;;  %v1871_v6 = vld [vmem:[%s9740_s29 + $0xf0] sm:$0xff]  ;;  %v1874_v7 = vld [vmem:[%s9740_s29 + $0x108] sm:$0xff] }
 0x37f   : > { %6665 = vmatprep.subr.bf16.mxu1 %v6664_v15  ;;  %v1670_v15 = vld [vmem:[%s9741_s12 + $0x10] sm:$0xff] }
 0x380   : > { %v6623_v23 = vpack.c.bf16 %v1671_v17, %v1670_v15  ;;  %v1880_v15 = vld [vmem:[%s9740_s29 + $0x138] sm:$0xff] }
 0x382   : > { %6667 = vmatpush1.bf16.msra.mxu1 %v6666_v20  ;;  %v6696_v20 = vpack.c.bf16 %v1848_v11, %v1846_v10  ;;  %v1873_v11 = vld [vmem:[%s9740_s29 + $0x100] sm:$0xff] }
 0x383   : > { %6669 = vmatprep.subr.bf16.mxu1 %v6668_v21  ;;  %v1850_v21 = vld [vmem:[%s9740_s29 + $0x48] sm:$0xff] }
 0x386   : > { %6671 = vmatpush1.bf16.msra.mxu1 %v6670_v29  ;;  %v6700_v29 = vpack.c.bf16 %v1852_v22, %v1850_v21  ;;  %v1882_v21 = vld [vmem:[%s9740_s29 + $0x148] sm:$0xff]  ;;  %v1884_v22 = vld [vmem:[%s9740_s29 + $0x158] sm:$0xff] }
 0x387   : > { %6673 = vmatprep.subr.bf16.mxu1 %v6672_v30  ;;  %v1673_v30 = vld [vmem:[%s9741_s12 + $0x28] sm:$0xff] }
 0x38a   : > { %6675 = vmatpush1.bf16.msra.mxu1 %v6674_v35  ;;  %v6626_v35 = vpack.c.bf16 %v1673_v30, %v1672_v28  ;;  %v1881_v28 = vld [vmem:[%s9740_s29 + $0x140] sm:$0xff]  ;;  %v1886_v30 = vld [vmem:[%s9740_s29 + $0x168] sm:$0xff] }
 0x38b   : > { %6677 = vmatprep.subr.bf16.mxu1 %v6676_v36  ;;  %v6702_v36 = vpack.c.bf16 %v1851_v32, %v1849_v31  ;;  %v1888_v31 = vld [vmem:[%s9740_s29 + $0x178] sm:$0xff] }
 0x38c   : > { %v6736_v33 = vpack.c.bf16 %v1888_v31, %v1886_v30  ;;  %v5788_v30 = vld [vmem:[%s9740_s29 + $0x280] sm:$0xff]  ;;  %v5790_v31 = vld [vmem:[%s9740_s29 + $0x290] sm:$0xff] }
 0x38e   : > { %6679 = vmatpush1.bf16.msra.mxu1 %v6678_v41  ;;  %v1855_v41 = vld [vmem:[%s9740_s29 + $0x70] sm:$0xff] }
 0x38f   : > { %6681 = vmatprep.subr.bf16.mxu1 %v6680_v42  ;;  %v1858_v42 = vld [vmem:[%s9740_s29 + $0x88] sm:$0xff]  ;;  %v6706_v45 = vpack.c.bf16 %v1855_v41, %v1853_v40  ;;  %v1889_v40 = vld [vmem:[%s9740_s29 + $0x180] sm:$0xff]  ;;  %v1891_v41 = vld [vmem:[%s9740_s29 + $0x190] sm:$0xff] }
 0x392   : > { %6683 = vmatpush1.bf16.msra.mxu1 %v6682_v47  ;;  %v6708_v47 = vpack.c.bf16 %v1860_v43, %v1858_v42  ;;  %v6742_v42 = vpack.c.bf16 %v1891_v41, %v1889_v40  ;;  %v5761_v43 = vld [vmem:[%s9740_s29 + $0x1a8] sm:$0xff] }
 0x393   : > { %6685 = vmatprep.subr.bf16.mxu1 %v6684_v49  ;;  %v1677_v49 = vld [vmem:[%s9741_s12 + $0x48] sm:$0xff] }
 0x394   : > { %v6632_v54 = vpack.c.bf16 %v1677_v49, %v1676_v46  ;;  %v5765_v49 = vld [vmem:[%s9740_s29 + $0x1c8] sm:$0xff] }
 0x396   : > { %6687 = vmatpush1.bf16.msra.mxu1 %v6686_v52  ;;  %v1862_v52 = vld [vmem:[%s9740_s29 + $0xa8] sm:$0xff] }
 0x397   : > { %6689 = vmatprep.subr.bf16.mxu1 %v6688_v55  ;;  %v6710_v55 = vpack.c.bf16 %v1859_v51, %v1857_v50  ;;  %v6712_v56 = vpack.c.bf16 %v1864_v53, %v1862_v52  ;;  %v5767_v50 = vld [vmem:[%s9740_s29 + $0x1d8] sm:$0xff]  ;;  %v5764_v53 = vld [vmem:[%s9740_s29 + $0x1c0] sm:$0xff] }
 0x398   : > { %v6748_v52 = vpack.c.bf16 %v5767_v50, %v5765_v49  ;;  %v5800_v49 = vld [vmem:[%s9740_s29 + $0x2e0] sm:$0xff]  ;;  %v5802_v50 = vld [vmem:[%s9740_s29 + $0x2f0] sm:$0xff] }
 0x39a   : > { %6691 = vmatpush1.bf16.msra.mxu1 %v6690_v61  ;;  %v6714_v61 = vpack.c.bf16 %v1863_v58, %v1861_v57 }
 0x39b   : > { %6693 = vmatprep.subr.bf16.mxu1 %v6692_v63  ;;  %v1867_v63 = vld [vmem:[%s9740_s29 + $0xd0] sm:$0xff] }
 0x39c   : > { %v6718_v3 = vpack.c.bf16 %v1867_v63, %v1865_v27  ;;  %v6754_v27 = vpack.c.bf16 %v5770_v60, %v5768_v59  ;;  %v5807_v59 = vld [vmem:[%s9740_s29 + $0x318] sm:$0xff] }
 0x434   : > { %v1556_v8 = vpop.f32.mrb[0].mxu1 }
 0x435   : > { %v1558_v9 = vpop.f32.mrb[1].mxu1  ;;  %v8977_v16 = vadd.f32 %v1556_v8, %v1483_v4  ;;  %v1876_v8 = vld [vmem:[%s9740_s29 + $0x118] sm:$0xff] }
 0x436   : > { %v8974_v12 = vadd.f32 %v1558_v9, %v1487_v2  ;;  %v1872_v2 = vld [vmem:[%s9740_s29 + $0xf8] sm:$0xff]  ;;  %v6722_v9 = vpack.c.bf16 %v1871_v6, %v1869_v5  ;;  %v6724_v10 = vpack.c.bf16 %v1876_v8, %v1874_v7  ;;  %v5776_v7 = vld [vmem:[%s9740_s29 + $0x220] sm:$0xff]  ;;  %v5778_v8 = vld [vmem:[%s9740_s29 + $0x230] sm:$0xff] }
 0x437   : > { %v6720_v4 = vpack.c.bf16 %v1872_v2, %v1870_v1  ;;  %v5772_v1 = vld [vmem:[%s9740_s29 + $0x200] sm:$0xff]  ;;  %v5774_v2 = vld [vmem:[%s9740_s29 + $0x210] sm:$0xff] }
 0x438   : > { %5751 = vmatprep.mubr.msk.f32.mxu0 %vm1594_vm2, %v8974_v12  ;;  %5756 = vmatprep.mubr.msk.f32.mxu1 %vm1594_vm2, %v8974_v12  ;;  %v6758_v5 = vpack.c.bf16 %v5774_v2, %v5772_v1  ;;  %v5811_v1 = vld [vmem:[%s9740_s29 + $0x338] sm:$0xff] }
 0x439   : > { %1663 = vmatmul.mubr.f32.vlgmr.msra.gmra.mrb[2].mxu0 %v8977_v16  ;;  %2010 = vmatmul.mubr.f32.vlgmr.msra.gmra.mrb[4].mxu1 %v8977_v16 }
 0x43a   : > { %6621 = vmatpush3.bf16.msra.mxu0 %v6620_v13  ;;  %6695 = vmatpush1.bf16.msra.mxu1 %v6694_v14  ;;  %v1875_v13 = vld [vmem:[%s9740_s29 + $0x110] sm:$0xff]  ;;  %v1878_v14 = vld [vmem:[%s9740_s29 + $0x128] sm:$0xff] }
 0x43b   : > { %5757 = vmatprep.mubr.msk.f32.mxu1 %vm1594_vm2, %v8974_v12  ;;  %6622 = vmatprep.subr.bf16.mxu0 %v8193_v48  ;;  %v6726_v17 = vpack.c.bf16 %v1875_v13, %v1873_v11  ;;  %v6728_v18 = vpack.c.bf16 %v1880_v15, %v1878_v14  ;;  %v6762_v11 = vpack.c.bf16 %v5778_v8, %v5776_v7  ;;  %v5780_v14 = vld [vmem:[%s9740_s29 + $0x240] sm:$0xff]  ;;  %v5782_v15 = vld [vmem:[%s9740_s29 + $0x250] sm:$0xff]  ;;  %v5816_v7 = vld [vmem:[%s9739_s23 + $0x1b8] sm:$0xff] }
 0x43c   : > { %6697 = vmatprep.subr.bf16.mxu1 %v6696_v20  ;;  %6193 = vmatprep.mubr.msk.f32.mxu0 %vm8194_vm1, %v8192_v0  ;;  %v1879_v20 = vld [vmem:[%s9740_s29 + $0x130] sm:$0xff] }
 0x43e   : > { %6624 = vmatpush3.bf16.msra.mxu0 %v6623_v23  ;;  %6699 = vmatpush1.bf16.msra.mxu1 %v6698_v25  ;;  %v6730_v23 = vpack.c.bf16 %v1879_v20, %v1877_v19  ;;  %v6732_v25 = vpack.c.bf16 %v1884_v22, %v1882_v21  ;;  %v6766_v19 = vpack.c.bf16 %v5782_v15, %v5780_v14  ;;  %v5784_v21 = vld [vmem:[%s9740_s29 + $0x260] sm:$0xff]  ;;  %v5786_v22 = vld [vmem:[%s9740_s29 + $0x270] sm:$0xff] }
 0x43f   : > { %6625 = vmatprep.subr.bf16.mxu0 %v8193_v48  ;;  %6701 = vmatprep.subr.bf16.mxu1 %v6700_v29  ;;  %v1883_v29 = vld [vmem:[%s9740_s29 + $0x150] sm:$0xff] }
 0x440   : > { %v6734_v32 = vpack.c.bf16 %v1883_v29, %v1881_v28  ;;  %v6770_v28 = vpack.c.bf16 %v5786_v22, %v5784_v21  ;;  %v5818_v22 = vld [vmem:[%s9739_s23 + $0x1c8] sm:$0xff] }
 0x442   : > { %6627 = vmatpush3.bf16.msra.mxu0 %v6626_v35  ;;  %6703 = vmatpush1.bf16.msra.mxu1 %v6702_v36  ;;  %v1887_v35 = vld [vmem:[%s9740_s29 + $0x170] sm:$0xff]  ;;  %v1890_v36 = vld [vmem:[%s9740_s29 + $0x188] sm:$0xff] }
 0x443   : > { %6628 = vmatprep.subr.bf16.mxu0 %v8193_v48  ;;  %6705 = vmatprep.subr.bf16.mxu1 %v6704_v38  ;;  %v6738_v38 = vpack.c.bf16 %v1887_v35, %v1885_v34  ;;  %v6740_v39 = vpack.c.bf16 %v1892_v37, %v1890_v36  ;;  %v6774_v34 = vpack.c.bf16 %v5790_v31, %v5788_v30  ;;  %v5792_v36 = vld [vmem:[%s9740_s29 + $0x2a0] sm:$0xff]  ;;  %v5794_v37 = vld [vmem:[%s9740_s29 + $0x2b0] sm:$0xff] }
 0x444   : > { %v6778_v40 = vpack.c.bf16 %v5794_v37, %v5792_v36  ;;  %v5822_v37 = vld [vmem:[%s9739_s23 + $0x1e8] sm:$0xff] }
 0x446   : > { %6630 = vmatpush3.bf16.msra.mxu0 %v6629_v44  ;;  %6707 = vmatpush1.bf16.msra.mxu1 %v6706_v45  ;;  %v5763_v44 = vld [vmem:[%s9740_s29 + $0x1b8] sm:$0xff]  ;;  %v5760_v45 = vld [vmem:[%s9740_s29 + $0x1a0] sm:$0xff] }
 0x447   : > { %6631 = vmatprep.subr.bf16.mxu0 %v8193_v48  ;;  %6709 = vmatprep.subr.bf16.mxu1 %v6708_v47  ;;  %v6744_v46 = vpack.c.bf16 %v5763_v44, %v5761_v43  ;;  %v5762_v47 = vld [vmem:[%s9740_s29 + $0x1b0] sm:$0xff]  ;;  %v5801_v44 = vld [vmem:[%s9740_s29 + $0x2e8] sm:$0xff] }
 0x448   : > { %v6746_v51 = vpack.c.bf16 %v5762_v47, %v5760_v45  ;;  %v5798_v43 = vld [vmem:[%s9740_s29 + $0x2d0] sm:$0xff]  ;;  %v5803_v45 = vld [vmem:[%s9740_s29 + $0x2f8] sm:$0xff] }
 0x449   : > { %v6784_v47 = vpack.c.bf16 %v5803_v45, %v5801_v44  ;;  %v5826_v44 = vld [vmem:[%s9739_s23 + $0x208] sm:$0xff]  ;;  %v5828_v45 = vld [vmem:[%s9739_s23 + $0x218] sm:$0xff] }
 0x44a   : > { %6633 = vmatpush3.bf16.msra.mxu0 %v6632_v54  ;;  %6711 = vmatpush1.bf16.msra.mxu1 %v6710_v55  ;;  %v5766_v54 = vld [vmem:[%s9740_s29 + $0x1d0] sm:$0xff]  ;;  %v5769_v55 = vld [vmem:[%s9740_s29 + $0x1e8] sm:$0xff] }
 0x44b   : > { %2093 = vmatprep.subr.mxu0 %v8974_v12  ;;  %6713 = vmatprep.subr.bf16.mxu1 %v6712_v56  ;;  %v5771_v56 = vld [vmem:[%s9740_s29 + $0x1f8] sm:$0xff]  ;;  %v6750_v57 = vpack.c.bf16 %v5766_v54, %v5764_v53 }
 0x44c   : > { %v6752_v58 = vpack.c.bf16 %v5771_v56, %v5769_v55  ;;  %v1839_v56 = vld [vmem:[%s9742_s10] sm:$0xff] }
 0x44e   : > { %6715 = vmatpush1.bf16.msra.mxu1 %v6714_v61  ;;  %v5773_v61 = vld [vmem:[%s9740_s29 + $0x208] sm:$0xff] }
 0x44f   : > { %6717 = vmatprep.subr.bf16.mxu1 %v6716_v62  ;;  %v5775_v62 = vld [vmem:[%s9740_s29 + $0x218] sm:$0xff] }
 0x450   : > { %v6756_v63 = vpack.c.bf16 %v5775_v62, %v5773_v61  ;;  %v5804_v61 = vld [vmem:[%s9740_s29 + $0x300] sm:$0xff]  ;;  %v5806_v62 = vld [vmem:[%s9740_s29 + $0x310] sm:$0xff] }
 0x452   : > { %6719 = vmatpush1.bf16.msra.mxu1 %v6718_v3  ;;  %v5777_v3 = vld [vmem:[%s9740_s29 + $0x228] sm:$0xff] }
 0x453   : > { %6721 = vmatprep.subr.bf16.mxu1 %v6720_v4  ;;  %v5779_v4 = vld [vmem:[%s9740_s29 + $0x238] sm:$0xff] }
 0x454   : > { %v6760_v6 = vpack.c.bf16 %v5779_v4, %v5777_v3  ;;  %v5808_v3 = vld [vmem:[%s9740_s29 + $0x320] sm:$0xff]  ;;  %v5810_v4 = vld [vmem:[%s9740_s29 + $0x330] sm:$0xff] }
 0x456   : > { %6723 = vmatpush1.bf16.msra.mxu1 %v6722_v9  ;;  %v5781_v9 = vld [vmem:[%s9740_s29 + $0x248] sm:$0xff] }
 0x457   : > { %6725 = vmatprep.subr.bf16.mxu1 %v6724_v10  ;;  %v5783_v10 = vld [vmem:[%s9740_s29 + $0x258] sm:$0xff] }
 0x458   : > { %v6764_v13 = vpack.c.bf16 %v5783_v10, %v5781_v9  ;;  %v9119_v9 = vpop.f32.mrb[2].mxu1 }
 0x459   : > { %v6206_v10 = vpop.f32.mrb[3].mxu1 }
 0x45a   : > { %6727 = vmatpush1.bf16.msra.mxu1 %v6726_v17  ;;  %v5785_v17 = vld [vmem:[%s9740_s29 + $0x268] sm:$0xff] }
 0x45b   : > { %6729 = vmatprep.subr.bf16.mxu1 %v6728_v18  ;;  %v5787_v18 = vld [vmem:[%s9740_s29 + $0x278] sm:$0xff] }
 0x45c   : > { %v6768_v20 = vpack.c.bf16 %v5787_v18, %v5785_v17  ;;  %v5813_v18 = vld [vmem:[%s9739_s23 + $0x1a0] sm:$0xff] }
 0x45e   : > { %6731 = vmatpush1.bf16.msra.mxu1 %v6730_v23  ;;  %v5789_v23 = vld [vmem:[%s9740_s29 + $0x288] sm:$0xff] }
 0x45f   : > { %6733 = vmatprep.subr.bf16.mxu1 %v6732_v25  ;;  %v5791_v25 = vld [vmem:[%s9740_s29 + $0x298] sm:$0xff] }
 0x460   : > { %v6772_v29 = vpack.c.bf16 %v5791_v25, %v5789_v23  ;;  %v5820_v23 = vld [vmem:[%s9739_s23 + $0x1d8] sm:$0xff]  ;;  %v9131_v25 = vmul.f32 0.05, %v8977_v16 }
 0x462   : > { %6735 = vmatpush1.bf16.msra.mxu1 %v6734_v32  ;;  %v5793_v32 = vld [vmem:[%s9740_s29 + $0x2a8] sm:$0xff] }
 0x463   : > { %6737 = vmatprep.subr.bf16.mxu1 %v6736_v33  ;;  %v5795_v33 = vld [vmem:[%s9740_s29 + $0x2b8] sm:$0xff] }
 0x464   : > { %v6776_v35 = vpack.c.bf16 %v5795_v33, %v5793_v32 }
 0x466   : > { %6739 = vmatpush1.bf16.msra.mxu1 %v6738_v38  ;;  %v5797_v38 = vld [vmem:[%s9740_s29 + $0x2c8] sm:$0xff] }
 0x467   : > { %6741 = vmatprep.subr.bf16.mxu1 %v6740_v39  ;;  %v5799_v39 = vld [vmem:[%s9740_s29 + $0x2d8] sm:$0xff] }
 0x468   : > { %v6780_v41 = vpack.c.bf16 %v5799_v39, %v5797_v38 }
 0x46a   : > { %6743 = vmatpush1.bf16.msra.mxu1 %v6742_v42  ;;  %v5796_v42 = vld [vmem:[%s9740_s29 + $0x2c0] sm:$0xff] }
 0x46b   : > { %6745 = vmatprep.subr.bf16.mxu1 %v6744_v46  ;;  %v6782_v46 = vpack.c.bf16 %v5798_v43, %v5796_v42  ;;  %v5821_v42 = vld [vmem:[%s9739_s23 + $0x1e0] sm:$0xff]  ;;  %v5823_v43 = vld [vmem:[%s9739_s23 + $0x1f0] sm:$0xff] }
 0x46d   : > { %2081 = vmatmul.mubr.f32.vlgmr.msra.gmra.mrb[4].mxu1 %v8977_v16 }
 0x46e   : > { %6747 = vmatpush1.bf16.msra.mxu1 %v6746_v51  ;;  %v6786_v51 = vpack.c.bf16 %v5802_v50, %v5800_v49  ;;  %v5825_v49 = vld [vmem:[%s9739_s23 + $0x200] sm:$0xff]  ;;  %v5827_v50 = vld [vmem:[%s9739_s23 + $0x210] sm:$0xff] }
 0x46f   : > { %6749 = vmatprep.subr.bf16.mxu1 %v6748_v52  ;;  %v5750_v52 = vld [vmem:[#allocation8] ss:$0 sm:$0xff] }
 0x472   : > { %6751 = vmatpush1.bf16.msra.mxu1 %v6750_v57  ;;  %v9104_v57 = vld [vmem:[%s9743_s7] sm:$0xff] }
 0x473   : > { %6753 = vmatprep.subr.bf16.mxu1 %v6752_v58  ;;  %v5805_v58 = vld [vmem:[%s9740_s29 + $0x308] sm:$0xff] }
 0x474   : > { %v6788_v60 = vpack.c.bf16 %v5807_v59, %v5805_v58  ;;  %v5834_v58 = vld [vmem:[%s9739_s23 + $0x248] sm:$0xff]  ;;  %v5836_v59 = vld [vmem:[%s9739_s23 + $0x258] sm:$0xff] }
 0x476   : > { %6755 = vmatpush1.bf16.msra.mxu1 %v6754_v27  ;;  %v6790_v27 = vpack.c.bf16 %v5806_v62, %v5804_v61  ;;  %v6816_v61 = vpack.c.bf16 %v5836_v59, %v5834_v58  ;;  %v5833_v62 = vld [vmem:[%s9739_s23 + $0x240] sm:$0xff]  ;;  %v5873_v58 = vld [vmem:[%s9740_s29 + $0x368] sm:$0xff]  ;;  %v5875_v59 = vld [vmem:[%s9740_s29 + $0x378] sm:$0xff] }
 0x477   : > { %6757 = vmatprep.subr.bf16.mxu1 %v6756_v63  ;;  %v5809_v63 = vld [vmem:[%s9740_s29 + $0x328] sm:$0xff] }
 0x478   : > { %v6792_v2 = vpack.c.bf16 %v5811_v1, %v5809_v63  ;;  %v5838_v63 = vld [vmem:[%s9739_s23 + $0x268] sm:$0xff]  ;;  %v5840_v1 = vld [vmem:[%s9739_s23 + $0x278] sm:$0xff] }
 0x47a   : > { %6759 = vmatpush1.bf16.msra.mxu1 %v6758_v5  ;;  %v6794_v5 = vpack.c.bf16 %v5810_v4, %v5808_v3  ;;  %v6820_v3 = vpack.c.bf16 %v5840_v1, %v5838_v63  ;;  %v5837_v4 = vld [vmem:[%s9739_s23 + $0x260] sm:$0xff]  ;;  %v5877_v63 = vld [vmem:[%s9740_s29 + $0x388] sm:$0xff]  ;;  %v5879_v1 = vld [vmem:[%s9740_s29 + $0x398] sm:$0xff] }
 0x47b   : > { %6761 = vmatprep.subr.bf16.mxu1 %v6760_v6  ;;  %v5814_v6 = vld [vmem:[%s9739_s23 + $0x1a8] sm:$0xff] }
 0x47c   : > { %v6796_v8 = vpack.c.bf16 %v5816_v7, %v5814_v6  ;;  %v5842_v6 = vld [vmem:[%s9739_s23 + $0x288] sm:$0xff]  ;;  %v5844_v7 = vld [vmem:[%s9739_s23 + $0x298] sm:$0xff] }
 0x47d   : > { %v6824_v10 = vpack.c.bf16 %v5844_v7, %v5842_v6  ;;  %v5881_v6 = vld [vmem:[%s9740_s29 + $0x3a8] sm:$0xff]  ;;  %v5883_v7 = vld [vmem:[%s9740_s29 + $0x3b8] sm:$0xff] }
 0x47e   : > { %6763 = vmatpush1.bf16.msra.mxu1 %v6762_v11 }
 0x47f   : > { %6765 = vmatprep.subr.bf16.mxu1 %v6764_v13 }
 0x482   : > { %6767 = vmatpush1.bf16.msra.mxu1 %v6766_v19  ;;  %v5815_v19 = vld [vmem:[%s9739_s23 + $0x1b0] sm:$0xff] }
 0x483   : > { %6769 = vmatprep.subr.bf16.mxu1 %v6768_v20  ;;  %v9126_v20 = vmul.f32 0.05, %v8974_v12  ;;  %v6798_v30 = vpack.c.bf16 %v5815_v19, %v5813_v18 }
 0x486   : > { %6771 = vmatpush1.bf16.msra.mxu1 %v6770_v28 }
 0x487   : > { %6773 = vmatprep.subr.bf16.mxu1 %v6772_v29 }
 0x48a   : > { %6775 = vmatpush1.bf16.msra.mxu1 %v6774_v34  ;;  %v6800_v34 = vpack.c.bf16 %v5820_v23, %v5818_v22  ;;  %v5847_v22 = vld [vmem:[%s9739_s23 + $0x2b0] sm:$0xff]  ;;  %v5850_v23 = vld [vmem:[%s9739_s23 + $0x2c8] sm:$0xff] }
 0x48b   : > { %6777 = vmatprep.subr.bf16.mxu1 %v6776_v35  ;;  %v5817_v35 = vld [vmem:[%s9739_s23 + $0x1c0] sm:$0xff] }
 0x48e   : > { %6779 = vmatpush1.bf16.msra.mxu1 %v6778_v40 }
 0x48f   : > { %6781 = vmatprep.subr.bf16.mxu1 %v6780_v41 }
 0x492   : > { %6783 = vmatpush1.bf16.msra.mxu1 %v6782_v46  ;;  %v6806_v46 = vpack.c.bf16 %v5823_v43, %v5821_v42  ;;  %v5857_v42 = vld [vmem:[%s9739_s23 + $0x300] sm:$0xff]  ;;  %v5859_v43 = vld [vmem:[%s9739_s23 + $0x310] sm:$0xff] }
 0x493   : > { %6785 = vmatprep.subr.bf16.mxu1 %v6784_v47  ;;  %v6808_v47 = vpack.c.bf16 %v5828_v45, %v5826_v44  ;;  %v5862_v44 = vld [vmem:[%s9739_s23 + $0x328] sm:$0xff]  ;;  %v5864_v45 = vld [vmem:[%s9739_s23 + $0x338] sm:$0xff] }
 0x496   : > { %6787 = vmatpush1.bf16.msra.mxu1 %v6786_v51  ;;  %v5830_v51 = vld [vmem:[%s9739_s23 + $0x228] sm:$0xff] }
 0x497   : > { %6789 = vmatprep.subr.bf16.mxu1 %v6788_v60 }
 0x49a   : > { %6791 = vmatpush1.bf16.msra.mxu1 %v6790_v27  ;;  %v5835_v27 = vld [vmem:[%s9739_s23 + $0x250] sm:$0xff] }
 0x49b   : > { %6793 = vmatprep.subr.bf16.mxu1 %v6792_v2  ;;  %v6818_v2 = vpack.c.bf16 %v5835_v27, %v5833_v62  ;;  %v5872_v62 = vld [vmem:[%s9740_s29 + $0x360] sm:$0xff]  ;;  %v5874_v27 = vld [vmem:[%s9740_s29 + $0x370] sm:$0xff] }
 0x49e   : > { %6795 = vmatpush1.bf16.msra.mxu1 %v6794_v5  ;;  %v5839_v5 = vld [vmem:[%s9739_s23 + $0x270] sm:$0xff] }
 0x49f   : > { %6797 = vmatprep.subr.bf16.mxu1 %v6796_v8  ;;  %v6822_v8 = vpack.c.bf16 %v5839_v5, %v5837_v4  ;;  %v5876_v4 = vld [vmem:[%s9740_s29 + $0x380] sm:$0xff]  ;;  %v5878_v5 = vld [vmem:[%s9740_s29 + $0x390] sm:$0xff] }
 0x50c   : > { %v1664_v53 = vpop.f32.mrb[2].mxu0 }
 0x50d   : > { %v9092_v54 = vadd.f32 %v5750_v52, %v1664_v53  ;;  %v1666_v55 = vpop.f32.mrb[3].mxu0  ;;  %v5832_v52 = vld [vmem:[%s9739_s23 + $0x238] sm:$0xff]  ;;  %v6810_v53 = vpack.c.bf16 %v5827_v50, %v5825_v49  ;;  %v5861_v49 = vld [vmem:[%s9739_s23 + $0x320] sm:$0xff]  ;;  %v5863_v50 = vld [vmem:[%s9739_s23 + $0x330] sm:$0xff] }
 0x50e   : > { %v6812_v55 = vpack.c.bf16 %v5832_v52, %v5830_v51  ;;  %v5869_v51 = vld [vmem:[%s9740_s29 + $0x348] sm:$0xff]  ;;  %v5871_v52 = vld [vmem:[%s9740_s29 + $0x358] sm:$0xff] }
 0x50f   : > { %6194 = vmatmul.mubr.msk.f32.vlgmr.msra.gmra.mrb[4].mxu0 %vm1594_vm2, %v9092_v54 }
 0x510   : > { %2094 = vmatpush1.msra.mxu0 %v8977_v16  ;;  %2157 = vmatprep.mubr.f32.mxu0 %v8192_v0 }
 0x511   : > { %2171 = vmatprep.subr.mxu0 %v8974_v12  ;;  %v5819_v12 = vld [vmem:[%s9739_s23 + $0x1d0] sm:$0xff] }
 0x512   : > { %v6802_v39 = vpack.c.bf16 %v5819_v12, %v5817_v35 }
 0x513   : > { %5758 = vmatmul.mubr.msk.f32.vlgmr.msra.gmra.mrb[6].mxu0 %vm2089_vm3, %v1839_v56 }
 0x514   : > { %2172 = vmatpush1.msra.mxu0 %v8977_v16  ;;  %2235 = vmatprep.mubr.f32.mxu0 %v8192_v0  ;;  %v5824_v16 = vld [vmem:[%s9739_s23 + $0x1f8] sm:$0xff] }
 0x515   : > { %v6804_v41 = vpack.c.bf16 %v5824_v16, %v5822_v37  ;;  %v5855_v37 = vld [vmem:[%s9739_s23 + $0x2f0] sm:$0xff]  ;;  %v5858_v16 = vld [vmem:[%s9739_s23 + $0x308] sm:$0xff] }
 0x517   : > { %5759 = vmatmul.mubr.msk.f32.vlgmr.msra.gmra.mrb[8].mxu0 %vm2089_vm3, %v9104_v57 }
 0x518   : > { %2568 = vmatprep.mubr.f32.mxu0 %v8192_v0 }
 0x5e2   : > { %v9121_v11 = vpop.f32.mrb[4].mxu0 }
 0x5e3   : > { %v6195_v13 = vpop.f32.mrb[5].mxu0 }
 0x5e4   : > { %v5841_v13 = vld [vmem:[%s9739_s23 + $0x280] sm:$0xff] }
 0x5e6   : > { %v2159_v14 = vpop.f32.mrb[6].mxu0 }
 0x5e7   : > { %v2164_v15 = vmul.f32 0.95, %v2159_v14  ;;  %v2161_v17 = vpop.f32.mrb[7].mxu0  ;;  %v5843_v14 = vld [vmem:[%s9739_s23 + $0x290] sm:$0xff] }
 0x5e8   : > { %v2165_v21 = vmul.f32 0.95, %v2161_v17  ;;  %v5848_v17 = vld [vmem:[%s9739_s23 + $0x2b8] sm:$0xff]  ;;  %v6826_v18 = vpack.c.bf16 %v5843_v14, %v5841_v13  ;;  %v5880_v13 = vld [vmem:[%s9740_s29 + $0x3a0] sm:$0xff]  ;;  %v5885_v14 = vld [vmem:[%s9740_s29 + $0x3c8] sm:$0xff] }
 0x5e9   : > { %v2166_v31 = vadd.f32 %v2164_v15, %v9131_v25  ;;  %v5846_v15 = vld [vmem:[%s9739_s23 + $0x2a8] sm:$0xff] }
 0x5ea   : > { %v2167_v28 = vadd.f32 %v2165_v21, %v9126_v20  ;;  %v2237_v29 = vpop.f32.mrb[8].mxu0  ;;  %v6828_v19 = vpack.c.bf16 %v5848_v17, %v5846_v15  ;;  %v5845_v21 = vld [vmem:[%s9739_s23 + $0x2a0] sm:$0xff]  ;;  %v5887_v15 = vld [vmem:[%s9740_s29 + $0x3d8] sm:$0xff] }
 0x5eb   : > { %v2242_v32 = vmul.f32 0.95, %v2237_v29  ;;  %v2239_v33 = vpop.f32.mrb[9].mxu0  ;;  %v6830_v29 = vpack.c.bf16 %v5847_v22, %v5845_v21  ;;  %v5886_v21 = vld [vmem:[%s9740_s29 + $0x3d0] sm:$0xff]  ;;  %v5889_v22 = vld [vmem:[%s9740_s29 + $0x3e8] sm:$0xff] }
 0x5ec   : > { %v2243_v36 = vmul.f32 0.95, %v2239_v33  ;;  %5812 = vmatprep.mubr.msk.f32.mxu1 %vm1594_vm2, %v2167_v28  ;;  %2504 = vmatprep.subr.mxu0 %v2167_v28  ;;  %v5852_v28 = vld [vmem:[%s9739_s23 + $0x2d8] sm:$0xff]  ;;  %v5854_v33 = vld [vmem:[%s9739_s23 + $0x2e8] sm:$0xff] }
 0x5ed   : > { %2367 = vmatmul.mubr.f32.vlgmr.msra.gmra.mrb[4].mxu1 %v2166_v31  ;;  %2505 = vmatpush1.msra.mxu0 %v2166_v31  ;;  %v9143_v40 = vadd.f32 %v2242_v32, %v9131_v25  ;;  %v5849_v31 = vld [vmem:[%s9739_s23 + $0x2c0] sm:$0xff]  ;;  %v5851_v32 = vld [vmem:[%s9739_s23 + $0x2d0] sm:$0xff] }
 0x5ee   : > { %v2245_v38 = vadd.f32 %v2243_v36, %v9126_v20  ;;  %6799 = vmatpush1.bf16.msra.mxu1 %v6798_v30  ;;  %5866 = vmatmul.mubr.msk.f32.vlgmr.msra.gmra.mrb[10].mxu0 %vm2089_vm3, %v1839_v56  ;;  %v5829_v56 = vld [vmem:[%s9739_s23 + $0x220] sm:$0xff]  ;;  %v6832_v30 = vpack.c.bf16 %v5852_v28, %v5850_v23  ;;  %v6834_v35 = vpack.c.bf16 %v5851_v32, %v5849_v31  ;;  %v5891_v23 = vld [vmem:[%s9740_s29 + $0x3f8] sm:$0xff]  ;;  %v5890_v31 = vld [vmem:[%s9740_s29 + $0x3f0] sm:$0xff] }
 0x5ef   : > { %6801 = vmatprep.subr.bf16.mxu1 %v6800_v34  ;;  %2643 = vmatprep.mubr.f32.mxu0 %v8192_v0  ;;  %v5856_v34 = vld [vmem:[%s9739_s23 + $0x2f8] sm:$0xff]  ;;  %v5853_v36 = vld [vmem:[%s9739_s23 + $0x2e0] sm:$0xff]  ;;  %v5893_v32 = vld [vmem:[%s9740_s29 + $0x408] sm:$0xff] }
 0x5f0   : > { %5865 = vmatprep.mubr.msk.f32.mxu1 %vm1594_vm2, %v2245_v38  ;;  %2579 = vmatprep.subr.mxu0 %v2245_v38  ;;  %v6836_v12 = vpack.c.bf16 %v5856_v34, %v5854_v33  ;;  %v5860_v38 = vld [vmem:[%s9739_s23 + $0x318] sm:$0xff] }
 0x5f1   : > { %2580 = vmatpush1.msra.mxu0 %v9143_v40  ;;  %v5895_v33 = vld [vmem:[%s9740_s29 + $0x418] sm:$0xff] }
 0x5f2   : > { %6803 = vmatpush1.bf16.msra.mxu1 %v6802_v39  ;;  %5867 = vmatmul.mubr.msk.f32.vlgmr.msra.gmra.mrb[12].mxu0 %vm2089_vm3, %v9104_v57  ;;  %v5831_v57 = vld [vmem:[%s9739_s23 + $0x230] sm:$0xff]  ;;  %v6838_v39 = vpack.c.bf16 %v5855_v37, %v5853_v36  ;;  %v5897_v37 = vld [vmem:[%s9740_s29 + $0x428] sm:$0xff] }
 0x5f3   : > { %6805 = vmatprep.subr.bf16.mxu1 %v6804_v41  ;;  %6952 = vmatprep.subr.bf16.mxu0 %v8193_v48  ;;  %v6814_v60 = vpack.c.bf16 %v5831_v57, %v5829_v56  ;;  %v6840_v41 = vpack.c.bf16 %v5860_v38, %v5858_v16  ;;  %v5868_v56 = vld [vmem:[%s9740_s29 + $0x340] sm:$0xff]  ;;  %v5870_v57 = vld [vmem:[%s9740_s29 + $0x350] sm:$0xff]  ;;  %v5899_v16 = vld [vmem:[%s9740_s29 + $0x438] sm:$0xff] }
 0x5f4   : > { %v5894_v36 = vld [vmem:[%s9740_s29 + $0x410] sm:$0xff] }
 0x5f6   : > { %6807 = vmatpush1.bf16.msra.mxu1 %v6806_v46  ;;  %v6842_v46 = vpack.c.bf16 %v5859_v43, %v5857_v42  ;;  %v5898_v42 = vld [vmem:[%s9740_s29 + $0x430] sm:$0xff]  ;;  %v5901_v43 = vld [vmem:[%s9740_s29 + $0x448] sm:$0xff] }
 0x5f7   : > { %6809 = vmatprep.subr.bf16.mxu1 %v6808_v47  ;;  %v6844_v47 = vpack.c.bf16 %v5864_v45, %v5862_v44  ;;  %v5903_v44 = vld [vmem:[%s9740_s29 + $0x458] sm:$0xff] }
 0x5fa   : > { %6811 = vmatpush1.bf16.msra.mxu1 %v6810_v53  ;;  %v6846_v53 = vpack.c.bf16 %v5863_v50, %v5861_v49  ;;  %v5902_v49 = vld [vmem:[%s9740_s29 + $0x450] sm:$0xff]  ;;  %v5905_v50 = vld [vmem:[%s9740_s29 + $0x468] sm:$0xff] }
 0x5fb   : > { %6813 = vmatprep.subr.bf16.mxu1 %v6812_v55  ;;  %v6848_v55 = vpack.c.bf16 %v5871_v52, %v5869_v51  ;;  %v5907_v51 = vld [vmem:[%s9740_s29 + $0x478] sm:$0xff] }
 0x5fe   : > { %6815 = vmatpush1.bf16.msra.mxu1 %v6814_v60  ;;  %v6850_v60 = vpack.c.bf16 %v5870_v57, %v5868_v56  ;;  %v5906_v56 = vld [vmem:[%s9740_s29 + $0x470] sm:$0xff]  ;;  %v5909_v57 = vld [vmem:[%s9740_s29 + $0x488] sm:$0xff] }
 0x5ff   : > { %6817 = vmatprep.subr.bf16.mxu1 %v6816_v61  ;;  %v6852_v61 = vpack.c.bf16 %v5875_v59, %v5873_v58  ;;  %v5911_v58 = vld [vmem:[%s9740_s29 + $0x498] sm:$0xff] }
 0x602   : > { %6819 = vmatpush1.bf16.msra.mxu1 %v6818_v2  ;;  %v6854_v2 = vpack.c.bf16 %v5874_v27, %v5872_v62  ;;  %v5910_v62 = vld [vmem:[%s9740_s29 + $0x490] sm:$0xff]  ;;  %v5913_v27 = vld [vmem:[%s9740_s29 + $0x4a8] sm:$0xff] }
 0x603   : > { %6821 = vmatprep.subr.bf16.mxu1 %v6820_v3  ;;  %v6856_v3 = vpack.c.bf16 %v5879_v1, %v5877_v63  ;;  %v5915_v63 = vld [vmem:[%s9740_s29 + $0x4b8] sm:$0xff] }
 0x606   : > { %6823 = vmatpush1.bf16.msra.mxu1 %v6822_v8  ;;  %v6858_v8 = vpack.c.bf16 %v5878_v5, %v5876_v4  ;;  %v5914_v4 = vld [vmem:[%s9740_s29 + $0x4b0] sm:$0xff]  ;;  %v5917_v5 = vld [vmem:[%s9740_s29 + $0x4c8] sm:$0xff] }
 0x607   : > { %6825 = vmatprep.subr.bf16.mxu1 %v6824_v10  ;;  %v6860_v10 = vpack.c.bf16 %v5883_v7, %v5881_v6  ;;  %v5919_v6 = vld [vmem:[%s9740_s29 + $0x4d8] sm:$0xff] }
 0x60a   : > { %6827 = vmatpush1.bf16.msra.mxu1 %v6826_v18  ;;  %v6864_v18 = vpack.c.bf16 %v5887_v15, %v5885_v14  ;;  %v5924_v14 = vld [vmem:[%s9739_s23 + $0x358] sm:$0xff] }
 0x60b   : > { %6829 = vmatprep.subr.bf16.mxu1 %v6828_v19  ;;  %v5884_v19 = vld [vmem:[%s9740_s29 + $0x3c0] sm:$0xff] }
 0x60c   : > { %v6866_v28 = vpack.c.bf16 %v5886_v21, %v5884_v19  ;;  %v2927_v19 = vld [vmem:[%s9744_s28 + $0x8] sm:$0xff]  ;;  %v2928_v21 = vld [vmem:[%s9744_s28 + $0x10] sm:$0xff] }
 0x60e   : > { %6831 = vmatpush1.bf16.msra.mxu1 %v6830_v29  ;;  %v6868_v29 = vpack.c.bf16 %v5891_v23, %v5889_v22  ;;  %v2929_v23 = vld [vmem:[%s9744_s28 + $0x18] sm:$0xff] }
 0x60f   : > { %6833 = vmatprep.subr.bf16.mxu1 %v6832_v30  ;;  %v5888_v30 = vld [vmem:[%s9740_s29 + $0x3e0] sm:$0xff] }
 0x610   : > { %v6870_v34 = vpack.c.bf16 %v5890_v31, %v5888_v30  ;;  %v2931_v30 = vld [vmem:[%s9744_s28 + $0x28] sm:$0xff] }
 0x612   : > { %6835 = vmatpush1.bf16.msra.mxu1 %v6834_v35  ;;  %v6872_v35 = vpack.c.bf16 %v5895_v33, %v5893_v32  ;;  %v2932_v32 = vld [vmem:[%s9744_s28 + $0x30] sm:$0xff]  ;;  %v2933_v33 = vld [vmem:[%s9744_s28 + $0x38] sm:$0xff] }
 0x613   : > { %6837 = vmatprep.subr.bf16.mxu1 %v6836_v12  ;;  %v5892_v12 = vld [vmem:[%s9740_s29 + $0x400] sm:$0xff] }
 0x614   : > { %v6874_v38 = vpack.c.bf16 %v5894_v36, %v5892_v12  ;;  %v2935_v12 = vld [vmem:[%s9744_s28 + $0x48] sm:$0xff] }
 0x616   : > { %6839 = vmatpush1.bf16.msra.mxu1 %v6838_v39  ;;  %v6876_v39 = vpack.c.bf16 %v5899_v16, %v5897_v37  ;;  %v2936_v37 = vld [vmem:[%s9744_s28 + $0x50] sm:$0xff]  ;;  %v2937_v16 = vld [vmem:[%s9744_s28 + $0x58] sm:$0xff] }
 0x617   : > { %6841 = vmatprep.subr.bf16.mxu1 %v6840_v41  ;;  %v5896_v41 = vld [vmem:[%s9740_s29 + $0x420] sm:$0xff] }
 0x618   : > { %v6878_v45 = vpack.c.bf16 %v5898_v42, %v5896_v41  ;;  %v2939_v41 = vld [vmem:[%s9744_s28 + $0x68] sm:$0xff] }
 0x61a   : > { %6843 = vmatpush1.bf16.msra.mxu1 %v6842_v46  ;;  %v6880_v46 = vpack.c.bf16 %v5903_v44, %v5901_v43  ;;  %v2940_v43 = vld [vmem:[%s9744_s28 + $0x70] sm:$0xff]  ;;  %v2941_v44 = vld [vmem:[%s9744_s28 + $0x78] sm:$0xff] }
 0x61b   : > { %6845 = vmatprep.subr.bf16.mxu1 %v6844_v47  ;;  %v5900_v47 = vld [vmem:[%s9740_s29 + $0x440] sm:$0xff] }
 0x61c   : > { %v6882_v52 = vpack.c.bf16 %v5902_v49, %v5900_v47  ;;  %v2943_v47 = vld [vmem:[%s9744_s28 + $0x88] sm:$0xff] }
 0x61e   : > { %6847 = vmatpush1.bf16.msra.mxu1 %v6846_v53  ;;  %v6884_v53 = vpack.c.bf16 %v5907_v51, %v5905_v50  ;;  %v2944_v50 = vld [vmem:[%s9744_s28 + $0x90] sm:$0xff]  ;;  %v2945_v51 = vld [vmem:[%s9744_s28 + $0x98] sm:$0xff] }
 0x61f   : > { %6849 = vmatprep.subr.bf16.mxu1 %v6848_v55  ;;  %v5904_v55 = vld [vmem:[%s9740_s29 + $0x460] sm:$0xff] }
 0x620   : > { %v6886_v59 = vpack.c.bf16 %v5906_v56, %v5904_v55  ;;  %v2947_v55 = vld [vmem:[%s9744_s28 + $0xa8] sm:$0xff] }
 0x621   : > { %2496 = vmatmul.mubr.f32.vlgmr.msra.gmra.mrb[4].mxu1 %v9143_v40  ;;  %v5882_v40 = vld [vmem:[%s9740_s29 + $0x3b0] sm:$0xff] }
 0x622   : > { %6851 = vmatpush1.bf16.msra.mxu1 %v6850_v60  ;;  %v6862_v17 = vpack.c.bf16 %v5882_v40, %v5880_v13  ;;  %v6888_v60 = vpack.c.bf16 %v5911_v58, %v5909_v57  ;;  %v5918_v13 = vld [vmem:[%s9740_s29 + $0x4d0] sm:$0xff]  ;;  %v5922_v40 = vld [vmem:[%s9739_s23 + $0x348] sm:$0xff]  ;;  %v2949_v58 = vld [vmem:[%s9744_s28 + $0xb8] sm:$0xff] }
 0x623   : > { %6853 = vmatprep.subr.bf16.mxu1 %v6852_v61  ;;  %v5908_v61 = vld [vmem:[%s9740_s29 + $0x480] sm:$0xff]  ;;  %v2948_v57 = vld [vmem:[%s9744_s28 + $0xb0] sm:$0xff] }
 0x624   : > { %v6890_v1 = vpack.c.bf16 %v5910_v62, %v5908_v61 }
 0x626   : > { %6855 = vmatpush1.bf16.msra.mxu1 %v6854_v2  ;;  %v6892_v2 = vpack.c.bf16 %v5915_v63, %v5913_v27  ;;  %v5921_v27 = vld [vmem:[%s9739_s23 + $0x340] sm:$0xff]  ;;  %v5923_v63 = vld [vmem:[%s9739_s23 + $0x350] sm:$0xff] }
 0x627   : > { %6857 = vmatprep.subr.bf16.mxu1 %v6856_v3  ;;  %v5912_v3 = vld [vmem:[%s9740_s29 + $0x4a0] sm:$0xff] }
 0x628   : > { %v6894_v7 = vpack.c.bf16 %v5914_v4, %v5912_v3  ;;  %v5928_v3 = vld [vmem:[%s9739_s23 + $0x378] sm:$0xff] }
 0x62a   : > { %6859 = vmatpush1.bf16.msra.mxu1 %v6858_v8  ;;  %v6896_v8 = vpack.c.bf16 %v5919_v6, %v5917_v5  ;;  %v6902_v6 = vpack.c.bf16 %v5923_v63, %v5921_v27  ;;  %v5955_v27 = vld [vmem:[%s9739_s23 + $0x450] sm:$0xff]  ;;  %v5958_v63 = vld [vmem:[%s9739_s23 + $0x468] sm:$0xff] }
 0x62b   : > { %6861 = vmatprep.subr.bf16.mxu1 %v6860_v10  ;;  %v5916_v10 = vld [vmem:[%s9740_s29 + $0x4c0] sm:$0xff] }
 0x62c   : > { %v6898_v15 = vpack.c.bf16 %v5918_v13, %v5916_v10  ;;  %v5925_v13 = vld [vmem:[%s9739_s23 + $0x360] sm:$0xff] }
 0x62e   : > { %6863 = vmatpush1.bf16.msra.mxu1 %v6862_v17  ;;  %v6900_v17 = vpack.c.bf16 %v5924_v14, %v5922_v40  ;;  %v5927_v40 = vld [vmem:[%s9739_s23 + $0x370] sm:$0xff] }
 0x62f   : > { %6865 = vmatprep.subr.bf16.mxu1 %v6864_v18  ;;  %v2926_v18 = vld [vmem:[%s9744_s28] sm:$0xff] }
 0x630   : > { %v6953_v22 = vpack.c.bf16 %v2927_v19, %v2926_v18  ;;  %v6906_v19 = vpack.c.bf16 %v5927_v40, %v5925_v13  ;;  %v5961_v40 = vld [vmem:[%s9739_s23 + $0x480] sm:$0xff] }
 0x632   : > { %6867 = vmatpush1.bf16.msra.mxu1 %v6866_v28  ;;  %6954 = vmatpush1.bf16.msra.mxu0 %v6953_v22  ;;  %v6956_v28 = vpack.c.bf16 %v2929_v23, %v2928_v21  ;;  %v5929_v22 = vld [vmem:[%s9739_s23 + $0x380] sm:$0xff]  ;;  %v5931_v23 = vld [vmem:[%s9739_s23 + $0x390] sm:$0xff] }
 0x633   : > { %6869 = vmatprep.subr.bf16.mxu1 %v6868_v29  ;;  %6955 = vmatprep.subr.bf16.mxu0 %v8193_v48  ;;  %v2930_v29 = vld [vmem:[%s9744_s28 + $0x20] sm:$0xff] }
 0x634   : > { %v6959_v31 = vpack.c.bf16 %v2931_v30, %v2930_v29  ;;  %v5936_v29 = vld [vmem:[%s9739_s23 + $0x3b8] sm:$0xff]  ;;  %v6910_v30 = vpack.c.bf16 %v5931_v23, %v5929_v22  ;;  %v5967_v22 = vld [vmem:[%s9739_s23 + $0x4b0] sm:$0xff]  ;;  %v5970_v23 = vld [vmem:[%s9739_s23 + $0x4c8] sm:$0xff] }
 0x636   : > { %6871 = vmatpush1.bf16.msra.mxu1 %v6870_v34  ;;  %6957 = vmatpush1.bf16.msra.mxu0 %v6956_v28  ;;  %v6962_v34 = vpack.c.bf16 %v2933_v33, %v2932_v32  ;;  %v5934_v28 = vld [vmem:[%s9739_s23 + $0x3a8] sm:$0xff]  ;;  %v5935_v32 = vld [vmem:[%s9739_s23 + $0x3b0] sm:$0xff] }
 0x637   : > { %6873 = vmatprep.subr.bf16.mxu1 %v6872_v35  ;;  %6958 = vmatprep.subr.bf16.mxu0 %v8193_v48  ;;  %v2934_v35 = vld [vmem:[%s9744_s28 + $0x40] sm:$0xff]  ;;  %v5938_v33 = vld [vmem:[%s9739_s23 + $0x3c8] sm:$0xff] }
 0x638   : > { %v6965_v36 = vpack.c.bf16 %v2935_v12, %v2934_v35 }
 0x63a   : > { %6875 = vmatpush1.bf16.msra.mxu1 %v6874_v38  ;;  %6960 = vmatpush1.bf16.msra.mxu0 %v6959_v31  ;;  %v6968_v38 = vpack.c.bf16 %v2937_v16, %v2936_v37  ;;  %v5933_v31 = vld [vmem:[%s9739_s23 + $0x3a0] sm:$0xff]  ;;  %v5939_v37 = vld [vmem:[%s9739_s23 + $0x3d0] sm:$0xff]  ;;  %v5942_v16 = vld [vmem:[%s9739_s23 + $0x3e8] sm:$0xff] }
 0x63b   : > { %6877 = vmatprep.subr.bf16.mxu1 %v6876_v39  ;;  %6961 = vmatprep.subr.bf16.mxu0 %v8193_v48  ;;  %v2938_v39 = vld [vmem:[%s9744_s28 + $0x60] sm:$0xff]  ;;  %v6914_v35 = vpack.c.bf16 %v5935_v32, %v5933_v31  ;;  %v5971_v31 = vld [vmem:[%s9739_s23 + $0x4d0] sm:$0xff] }
 0x63c   : > { %v6971_v42 = vpack.c.bf16 %v2939_v41, %v2938_v39 }
 0x63e   : > { %6879 = vmatpush1.bf16.msra.mxu1 %v6878_v45  ;;  %6963 = vmatpush1.bf16.msra.mxu0 %v6962_v34  ;;  %v6974_v45 = vpack.c.bf16 %v2941_v44, %v2940_v43  ;;  %v5940_v34 = vld [vmem:[%s9739_s23 + $0x3d8] sm:$0xff]  ;;  %v5943_v43 = vld [vmem:[%s9739_s23 + $0x3f0] sm:$0xff]  ;;  %v5946_v44 = vld [vmem:[%s9739_s23 + $0x408] sm:$0xff] }
 0x63f   : > { %6881 = vmatprep.subr.bf16.mxu1 %v6880_v46  ;;  %6964 = vmatprep.subr.bf16.mxu0 %v8193_v48  ;;  %v2942_v46 = vld [vmem:[%s9744_s28 + $0x80] sm:$0xff]  ;;  %v6916_v12 = vpack.c.bf16 %v5940_v34, %v5938_v33 }
 0x640   : > { %v6977_v49 = vpack.c.bf16 %v2943_v47, %v2942_v46 }
 0x642   : > { %6883 = vmatpush1.bf16.msra.mxu1 %v6882_v52  ;;  %6966 = vmatpush1.bf16.msra.mxu0 %v6965_v36  ;;  %v6980_v52 = vpack.c.bf16 %v2945_v51, %v2944_v50  ;;  %v5937_v36 = vld [vmem:[%s9739_s23 + $0x3c0] sm:$0xff]  ;;  %v5947_v50 = vld [vmem:[%s9739_s23 + $0x410] sm:$0xff]  ;;  %v5950_v51 = vld [vmem:[%s9739_s23 + $0x428] sm:$0xff] }
 0x643   : > { %6885 = vmatprep.subr.bf16.mxu1 %v6884_v53  ;;  %6967 = vmatprep.subr.bf16.mxu0 %v8193_v48  ;;  %v2946_v53 = vld [vmem:[%s9744_s28 + $0xa0] sm:$0xff]  ;;  %v6918_v39 = vpack.c.bf16 %v5939_v37, %v5937_v36  ;;  %v2912_v37 = vld [vmem:[#allocation17] sm:$0x3] }
 0x644   : > { %v6983_v56 = vpack.c.bf16 %v2947_v55, %v2946_v53 }
 0x646   : > { %6887 = vmatpush1.bf16.msra.mxu1 %v6886_v59  ;;  %6969 = vmatpush1.bf16.msra.mxu0 %v6968_v38  ;;  %v6986_v59 = vpack.c.bf16 %v2949_v58, %v2948_v57  ;;  %v5944_v38 = vld [vmem:[%s9739_s23 + $0x3f8] sm:$0xff]  ;;  %v5951_v57 = vld [vmem:[%s9739_s23 + $0x430] sm:$0xff]  ;;  %v5954_v58 = vld [vmem:[%s9739_s23 + $0x448] sm:$0xff] }
 0x647   : > { %6889 = vmatprep.subr.bf16.mxu1 %v6888_v60  ;;  %6970 = vmatprep.subr.bf16.mxu0 %v8193_v48  ;;  %v6920_v41 = vpack.c.bf16 %v5944_v38, %v5942_v16  ;;  %v2921_v16 = vrot.slane %v2912_v37, %v8894_v24  ;;  %v3046_v38 = vld [vmem:[#allocation14] sm:$0xff] }
 0x648   : > { %v3050_v24 = vld [vmem:[#allocation14 + $0x20] sm:$0xff] }
 0x64a   : > { %6891 = vmatpush1.bf16.msra.mxu1 %v6890_v1  ;;  %6972 = vmatpush1.bf16.msra.mxu0 %v6971_v42  ;;  %v5941_v42 = vld [vmem:[%s9739_s23 + $0x3e0] sm:$0xff] }
 0x64b   : > { %6893 = vmatprep.subr.bf16.mxu1 %v6892_v2  ;;  %6973 = vmatprep.subr.bf16.mxu0 %v8193_v48  ;;  %v5926_v2 = vld [vmem:[%s9739_s23 + $0x368] sm:$0xff]  ;;  %v6922_v46 = vpack.c.bf16 %v5943_v43, %v5941_v42 }
 0x64c   : > { %v6904_v10 = vpack.c.bf16 %v5928_v3, %v5926_v2 }
 0x64e   : > { %6895 = vmatpush1.bf16.msra.mxu1 %v6894_v7  ;;  %6975 = vmatpush1.bf16.msra.mxu0 %v6974_v45  ;;  %v5948_v45 = vld [vmem:[%s9739_s23 + $0x418] sm:$0xff] }
 0x64f   : > { %6897 = vmatprep.subr.bf16.mxu1 %v6896_v8  ;;  %6976 = vmatprep.subr.bf16.mxu0 %v8193_v48  ;;  %v6924_v47 = vpack.c.bf16 %v5948_v45, %v5946_v44  ;;  %v3048_v45 = vld [vmem:[#allocation14 + $0x10] sm:$0xff] }
 0x652   : > { %6899 = vmatpush1.bf16.msra.mxu1 %v6898_v15  ;;  %6978 = vmatpush1.bf16.msra.mxu0 %v6977_v49  ;;  %v5930_v15 = vld [vmem:[%s9739_s23 + $0x388] sm:$0xff]  ;;  %v5945_v49 = vld [vmem:[%s9739_s23 + $0x400] sm:$0xff] }
 0x653   : > { %6901 = vmatprep.subr.bf16.mxu1 %v6900_v17  ;;  %6979 = vmatprep.subr.bf16.mxu0 %v8193_v48  ;;  %v5932_v17 = vld [vmem:[%s9739_s23 + $0x398] sm:$0xff]  ;;  %v6926_v53 = vpack.c.bf16 %v5947_v50, %v5945_v49  ;;  %v3052_v50 = vld [vmem:[#allocation14 + $0x30] sm:$0xff] }
 0x654   : > { %v6908_v21 = vpack.c.bf16 %v5932_v17, %v5930_v15  ;;  %v5966_v15 = vld [vmem:[%s9739_s23 + $0x4a8] sm:$0xff]  ;;  %v5968_v17 = vld [vmem:[%s9739_s23 + $0x4b8] sm:$0xff] }
 0x656   : > { %6981 = vmatpush1.bf16.msra.mxu0 %v6980_v52  ;;  %v5952_v52 = vld [vmem:[%s9739_s23 + $0x438] sm:$0xff] }
 0x657   : > { %6982 = vmatprep.subr.bf16.mxu0 %v8193_v48  ;;  %v6928_v55 = vpack.c.bf16 %v5952_v52, %v5950_v51  ;;  %v3053_v51 = vld [vmem:[#allocation14 + $0x38] sm:$0xff] }
 0x658   : > { %v7001_v52 = vpack.c.bf16 %v3053_v51, %v3052_v50  ;;  %v3439_v51 = vld [vmem:[#allocation14 + $0x80] sm:$0xff] }
 0x65a   : > { %6984 = vmatpush1.bf16.msra.mxu0 %v6983_v56  ;;  %v5949_v56 = vld [vmem:[%s9739_s23 + $0x420] sm:$0xff] }
 0x65b   : > { %6985 = vmatprep.subr.bf16.mxu0 %v8193_v48 }
 0x65e   : > { %6987 = vmatpush1.bf16.msra.mxu0 %v6986_v59  ;;  %v5956_v59 = vld [vmem:[%s9739_s23 + $0x458] sm:$0xff] }
 0x65f   : > { %6988 = vmatprep.subr.bf16.mxu0 %v8193_v48 }
 0x6c1   : > { %v2570_v60 = vpop.f32.mrb[10].mxu0 }
 0x6c2   : > { %v2575_v61 = vmul.f32 0.95, %v2570_v60  ;;  %v2572_v62 = vpop.f32.mrb[11].mxu0  ;;  %v6930_v60 = vpack.c.bf16 %v5951_v57, %v5949_v56  ;;  %v3036_v57 = vld [vmem:[#allocation11] sm:$0xff] }
 0x6c3   : > { %v2576_v1 = vmul.f32 0.95, %v2572_v62  ;;  %v5953_v62 = vld [vmem:[%s9739_s23 + $0x440] sm:$0xff] }
 0x6c4   : > { %v2577_v7 = vadd.f32 %v2575_v61, %v9131_v25  ;;  %v6932_v61 = vpack.c.bf16 %v5956_v59, %v5954_v58  ;;  %v6934_v2 = vpack.c.bf16 %v5955_v27, %v5953_v62  ;;  %v3037_v58 = vld [vmem:[#allocation11 + $0x8] sm:$0xff]  ;;  %v3040_v27 = vld [vmem:[#allocation11 + $0x20] sm:$0xff] }
 0x6c5   : > { %v2578_v4 = vadd.f32 %v2576_v1, %v9126_v20  ;;  %v9289_v5 = vpop.f32.mrb[12].mxu0  ;;  %v5960_v1 = vld [vmem:[%s9739_s23 + $0x478] sm:$0xff]  ;;  %v7007_v59 = vpack.c.bf16 %v3037_v58, %v3036_v57 }
 0x6c6   : > { %v2647_v8 = vpop.f32.mrb[13].mxu0  ;;  %v6936_v3 = vpack.c.bf16 %v5960_v1, %v5958_v63  ;;  %v2650_v33 = vmul.f32 0.95, %v9289_v5  ;;  %v2917_v5 = vrot.slane %v2912_v37, %v8896_v26  ;;  %v3051_v26 = vld [vmem:[#allocation14 + $0x28] sm:$0xff]  ;;  %v3041_v63 = vld [vmem:[#allocation11 + $0x28] sm:$0xff] }
 0x6c7   : > { %v2651_v14 = vmul.f32 0.95, %v2647_v8  ;;  %5920 = vmatprep.mubr.msk.f32.mxu1 %vm1594_vm2, %v2578_v4  ;;  %v5957_v4 = vld [vmem:[%s9739_s23 + $0x460] sm:$0xff]  ;;  %v5964_v8 = vld [vmem:[%s9739_s23 + $0x498] sm:$0xff]  ;;  %v6998_v49 = vpack.c.bf16 %v3051_v26, %v3050_v24  ;;  %v7013_v1 = vpack.c.bf16 %v3041_v63, %v3040_v27  ;;  %v3665_v63 = vld [vmem:[#allocation11 + $0xb8] sm:$0xff] }
 0x6c8   : > { %2775 = vmatmul.mubr.f32.vlgmr.msra.gmra.mrb[4].mxu1 %v2577_v7  ;;  %v5962_v7 = vld [vmem:[%s9739_s23 + $0x488] sm:$0xff]  ;;  %v2652_v34 = vadd.f32 %v2650_v33, %v9131_v25 }
 0x6c9   : > { %v2653_v18 = vadd.f32 %v2651_v14, %v9126_v20  ;;  %6903 = vmatpush1.bf16.msra.mxu1 %v6902_v6  ;;  %v6912_v20 = vpack.c.bf16 %v5936_v29, %v5934_v28  ;;  %v5959_v6 = vld [vmem:[%s9739_s23 + $0x470] sm:$0xff]  ;;  %v6940_v13 = vpack.c.bf16 %v5964_v8, %v5962_v7  ;;  %v5972_v28 = vld [vmem:[%s9739_s23 + $0x4d8] sm:$0xff]  ;;  %v3045_v7 = vld [vmem:[#allocation11 + $0x48] sm:$0xff] }
 0x6ca   : > { %6905 = vmatprep.subr.bf16.mxu1 %v6904_v10  ;;  %v6938_v10 = vpack.c.bf16 %v5959_v6, %v5957_v4  ;;  %v5963_v14 = vld [vmem:[%s9739_s23 + $0x490] sm:$0xff]  ;;  %v3044_v6 = vld [vmem:[#allocation11 + $0x40] sm:$0xff] }
 0x6cb   : > { %5973 = vmatprep.mubr.msk.f32.mxu1 %vm1594_vm2, %v2653_v18  ;;  %v6942_v18 = vpack.c.bf16 %v5963_v14, %v5961_v40  ;;  %v7019_v8 = vpack.c.bf16 %v3045_v7, %v3044_v6  ;;  %v3348_v40 = vld [vmem:[#allocation11 + $0x50] sm:$0xff]  ;;  %v3349_v14 = vld [vmem:[#allocation11 + $0x58] sm:$0xff] }
 0x6cc   : > { %v3668_v6 = vld [vmem:[#allocation11 + $0xd0] sm:$0xff]  ;;  %v3669_v7 = vld [vmem:[#allocation11 + $0xd8] sm:$0xff] }
 0x6cd   : > { %6907 = vmatpush1.bf16.msra.mxu1 %v6906_v19  ;;  %v6944_v19 = vpack.c.bf16 %v5968_v17, %v5966_v15  ;;  %v3350_v15 = vld [vmem:[#allocation11 + $0x60] sm:$0xff]  ;;  %v7022_v17 = vpack.c.bf16 %v3349_v14, %v3348_v40 }
 0x6ce   : > { %6909 = vmatprep.subr.bf16.mxu1 %v6908_v21  ;;  %v5965_v21 = vld [vmem:[%s9739_s23 + $0x4a0] sm:$0xff] }
 0x6cf   : > { %v6946_v29 = vpack.c.bf16 %v5967_v22, %v5965_v21  ;;  %v3352_v21 = vld [vmem:[#allocation11 + $0x70] sm:$0xff]  ;;  %v3353_v22 = vld [vmem:[#allocation11 + $0x78] sm:$0xff] }
 0x6d1   : > { %6911 = vmatpush1.bf16.msra.mxu1 %v6910_v30  ;;  %v6948_v30 = vpack.c.bf16 %v5972_v28, %v5970_v23  ;;  %v7028_v23 = vpack.c.bf16 %v3353_v22, %v3352_v21  ;;  %v3354_v28 = vld [vmem:[#allocation11 + $0x80] sm:$0xff]  ;;  %v3747_v22 = vld [vmem:[#allocation14 + $0xa0] sm:$0xff] }
 0x6d2   : > { %6913 = vmatprep.subr.bf16.mxu1 %v6912_v20  ;;  %v5969_v20 = vld [vmem:[%s9739_s23 + $0x4c0] sm:$0xff] }
 0x6d3   : > { %v6950_v32 = vpack.c.bf16 %v5971_v31, %v5969_v20  ;;  %v3356_v20 = vld [vmem:[#allocation11 + $0x90] sm:$0xff]  ;;  %v3357_v31 = vld [vmem:[#allocation11 + $0x98] sm:$0xff] }
 0x6d5   : > { %6915 = vmatpush1.bf16.msra.mxu1 %v6914_v35  ;;  %v2950_v35 = vld [vmem:[%s9744_s28 + $0xc0] sm:$0xff] }
 0x6d6   : > { %6917 = vmatprep.subr.bf16.mxu1 %v6916_v12  ;;  %v2951_v12 = vld [vmem:[%s9744_s28 + $0xc8] sm:$0xff] }
 0x6d7   : > { %v6989_v36 = vpack.c.bf16 %v2951_v12, %v2950_v35 }
 0x6d9   : > { %6919 = vmatpush1.bf16.msra.mxu1 %v6918_v39  ;;  %6990 = vmatpush1.bf16.msra.mxu0 %v6989_v36  ;;  %v3047_v39 = vld [vmem:[#allocation14 + $0x8] sm:$0xff] }
 0x6da   : > { %6921 = vmatprep.subr.bf16.mxu1 %v6920_v41  ;;  %6991 = vmatprep.subr.bf16.mxu0 %v8193_v48  ;;  %v6992_v43 = vpack.c.bf16 %v3047_v39, %v3046_v38  ;;  %v3434_v38 = vld [vmem:[#allocation14 + $0x58] sm:$0xff] }
 0x6dd   : > { %6923 = vmatpush1.bf16.msra.mxu1 %v6922_v46  ;;  %v3049_v46 = vld [vmem:[#allocation14 + $0x18] sm:$0xff] }
 0x6de   : > { %6925 = vmatprep.subr.bf16.mxu1 %v6924_v47  ;;  %v6995_v47 = vpack.c.bf16 %v3049_v46, %v3048_v45  ;;  %v3435_v45 = vld [vmem:[#allocation14 + $0x60] sm:$0xff]  ;;  %v3436_v46 = vld [vmem:[#allocation14 + $0x68] sm:$0xff] }
 0x6df   : > { %v7040_v26 = vpack.c.bf16 %v3436_v46, %v3435_v45 }
 0x6e1   : > { %6927 = vmatpush1.bf16.msra.mxu1 %v6926_v53  ;;  %v3054_v53 = vld [vmem:[#allocation14 + $0x40] sm:$0xff] }
 0x6e2   : > { %6929 = vmatprep.subr.bf16.mxu1 %v6928_v55  ;;  %v3055_v55 = vld [vmem:[#allocation14 + $0x48] sm:$0xff] }
 0x6e3   : > { %v7004_v56 = vpack.c.bf16 %v3055_v55, %v3054_v53  ;;  %v3441_v55 = vld [vmem:[#allocation14 + $0x90] sm:$0xff] }
 0x6e5   : > { %6931 = vmatpush1.bf16.msra.mxu1 %v6930_v60  ;;  %v3038_v60 = vld [vmem:[#allocation11 + $0x10] sm:$0xff] }
 0x6e6   : > { %6933 = vmatprep.subr.bf16.mxu1 %v6932_v61  ;;  %v3039_v61 = vld [vmem:[#allocation11 + $0x18] sm:$0xff] }
 0x6e7   : > { %v7010_v62 = vpack.c.bf16 %v3039_v61, %v3038_v60  ;;  %v3662_v60 = vld [vmem:[#allocation11 + $0xa0] sm:$0xff]  ;;  %v3663_v61 = vld [vmem:[#allocation11 + $0xa8] sm:$0xff] }
 0x6e8   : > { %v7052_v27 = vpack.c.bf16 %v3663_v61, %v3662_v60 }
 0x6e9   : > { %6935 = vmatpush1.bf16.msra.mxu1 %v6934_v2  ;;  %v3042_v2 = vld [vmem:[#allocation11 + $0x30] sm:$0xff] }
 0x6ea   : > { %6937 = vmatprep.subr.bf16.mxu1 %v6936_v3  ;;  %v3043_v3 = vld [vmem:[#allocation11 + $0x38] sm:$0xff] }
 0x6eb   : > { %v7016_v4 = vpack.c.bf16 %v3043_v3, %v3042_v2  ;;  %v3666_v2 = vld [vmem:[#allocation11 + $0xc0] sm:$0xff]  ;;  %v3667_v3 = vld [vmem:[#allocation11 + $0xc8] sm:$0xff] }
 0x6ed   : > { %6939 = vmatpush1.bf16.msra.mxu1 %v6938_v10  ;;  %v9374_v10 = vld [vmem:[%s9742_s10 + $0x8] sm:$0xff] }
 0x6ee   : > { %6941 = vmatprep.subr.bf16.mxu1 %v6940_v13  ;;  %v9383_v13 = vld [vmem:[%s9743_s7 + $0x8] sm:$0xff] }
 0x6f1   : > { %6943 = vmatpush1.bf16.msra.mxu1 %v6942_v18  ;;  %v3351_v18 = vld [vmem:[#allocation11 + $0x68] sm:$0xff] }
 0x6f2   : > { %6945 = vmatprep.subr.bf16.mxu1 %v6944_v19  ;;  %v7025_v19 = vpack.c.bf16 %v3351_v18, %v3350_v15 }
 0x6f5   : > { %6947 = vmatpush1.bf16.msra.mxu1 %v6946_v29  ;;  %v3355_v29 = vld [vmem:[#allocation11 + $0x88] sm:$0xff] }
 0x6f6   : > { %6949 = vmatprep.subr.bf16.mxu1 %v6948_v30  ;;  %v7031_v30 = vpack.c.bf16 %v3355_v29, %v3354_v28 }
 0x6f9   : > { %6951 = vmatpush1.bf16.msra.mxu1 %v6950_v32  ;;  %v7034_v32 = vpack.c.bf16 %v3357_v31, %v3356_v20 }
 0x6fa   : > { %7117 = vmatprep.subr.bf16.mxu1 %v8193_v48 }
 0x6fc   : > { %2904 = vmatmul.mubr.f32.vlgmr.msra.gmra.mrb[4].mxu1 %v2652_v34 }
 0x6fd   : > { %6505 = vmatprep.mubr.msk.f32.mxu1 %vm8194_vm1, %v8192_v0 }
 0x7cf   : > { %v2905_v25 = vpop.f32.mrb[4].mxu1 }
 0x7d0   : > { %v2907_v41 = vpop.f32.mrb[5].mxu1  ;;  %v2924_v44 = vadd.f32 %v2917_v5, %v2905_v25  ;;  %v3433_v5 = vld [vmem:[#allocation14 + $0x50] sm:$0xff]  ;;  %v9400_v25 = vmul.f32 0.05, %v9092_v54 }
 0x7d1   : > { %v2925_v42 = vadd.f32 %v2921_v16, %v2907_v41 }
 0x7d3   : > { %5975 = vmatprep.mubr.msk.f32.mxu0 %vm1594_vm2, %v2925_v42 }
 0x7d4   : > { %3027 = vmatmul.mubr.f32.vlgmr.msra.gmra.mrb[14].mxu0 %v2924_v44 }
 0x7d5   : > { %6993 = vmatpush3.bf16.msra.mxu0 %v6992_v43  ;;  %6227 = vmatprep.mubr.msk.f32.mxu0 %vm8194_vm1, %v8192_v0  ;;  %v7037_v43 = vpack.c.bf16 %v3434_v38, %v3433_v5  ;;  %v3753_v38 = vld [vmem:[#allocation14 + $0xd0] sm:$0xff] }
 0x7d6   : > { %6994 = vmatprep.subr.bf16.mxu0 %v8193_v48 }
 0x7d9   : > { %6996 = vmatpush3.bf16.msra.mxu0 %v6995_v47 }
 0x7da   : > { %6997 = vmatprep.subr.bf16.mxu0 %v8193_v48 }
 0x7dd   : > { %6999 = vmatpush3.bf16.msra.mxu0 %v6998_v49  ;;  %v3438_v49 = vld [vmem:[#allocation14 + $0x78] sm:$0xff] }
 0x7de   : > { %7000 = vmatprep.subr.bf16.mxu0 %v8193_v48 }
 0x7e1   : > { %7002 = vmatpush3.bf16.msra.mxu0 %v7001_v52  ;;  %v3440_v52 = vld [vmem:[#allocation14 + $0x88] sm:$0xff] }
 0x7e2   : > { %7003 = vmatprep.subr.bf16.mxu0 %v8193_v48  ;;  %v7046_v53 = vpack.c.bf16 %v3440_v52, %v3439_v51  ;;  %v3844_v51 = vld [vmem:[%s9745_s2 + $0x28] sm:$0xff] }
 0x7e5   : > { %7005 = vmatpush3.bf16.msra.mxu0 %v7004_v56  ;;  %v3442_v56 = vld [vmem:[#allocation14 + $0x98] sm:$0xff] }
 0x7e6   : > { %7006 = vmatprep.subr.bf16.mxu0 %v8193_v48  ;;  %v7049_v57 = vpack.c.bf16 %v3442_v56, %v3441_v55  ;;  %v3846_v55 = vld [vmem:[%s9745_s2 + $0x38] sm:$0xff] }
 0x7e8   : > { %6228 = vmatmul.mubr.msk.f32.vlgmr.msra.gmra.mrb[16].mxu0 %vm1594_vm2, %v9092_v54 }
 0x7e9   : > { %7008 = vmatpush3.bf16.msra.mxu0 %v7007_v59  ;;  %6250 = vmatprep.mubr.msk.f32.mxu0 %vm8194_vm1, %v8192_v0 }
 0x7ea   : > { %7009 = vmatprep.subr.bf16.mxu0 %v8193_v48 }
 0x7ed   : > { %7011 = vmatpush3.bf16.msra.mxu0 %v7010_v62  ;;  %v3664_v62 = vld [vmem:[#allocation11 + $0xb0] sm:$0xff] }
 0x7ee   : > { %7012 = vmatprep.subr.bf16.mxu0 %v8193_v48 }
 0x7f1   : > { %7014 = vmatpush3.bf16.msra.mxu0 %v7013_v1  ;;  %v7055_v1 = vpack.c.bf16 %v3665_v63, %v3664_v62  ;;  %v3937_v63 = vld [vmem:[#allocation16 + $0x8] sm:$0xff] }
 0x7f2   : > { %7015 = vmatprep.subr.bf16.mxu0 %v8193_v48 }
 0x7f5   : > { %7017 = vmatpush3.bf16.msra.mxu0 %v7016_v4  ;;  %v7058_v4 = vpack.c.bf16 %v3667_v3, %v3666_v2  ;;  %v5988_v2 = vld [vmem:[#allocation19] ss:$0 sm:$0xff] }
 0x7f6   : > { %7018 = vmatprep.subr.bf16.mxu0 %v8193_v48 }
 0x7f9   : > { %7020 = vmatpush3.bf16.msra.mxu0 %v7019_v8  ;;  %v7061_v8 = vpack.c.bf16 %v3669_v7, %v3668_v6 }
 0x7fa   : > { %6253 = vmatprep.subr.mxu0 %v8192_v0 }
 0x7fc   : > { %6251 = vmatmul.mubr.msk.f32.vlgmr.msra.gmra.mrb[18].mxu0 %vm1594_vm2, %v9092_v54 }
 0x7fd   : > { %6254 = vmatpush3.msra.mxu0 %v9092_v54  ;;  %6255 = vmatprep.mubr.msk.f32.mxu0 %vm8194_vm1, %v8192_v0 }
 0x7fe   : > { %6258 = vmatprep.subr.mxu0 %v8192_v0 }
 0x800   : > { %6256 = vmatmul.mubr.msk.f32.vlgmr.msra.gmra.mrb[20].mxu0 %vm2089_vm3, %v9374_v10 }
 0x801   : > { %6259 = vmatpush3.msra.mxu0 %v9092_v54  ;;  %6260 = vmatprep.mubr.msk.f32.mxu0 %vm8194_vm1, %v8192_v0  ;;  %v3437_v54 = vld [vmem:[#allocation14 + $0x70] sm:$0xff] }
 0x802   : > { %7021 = vmatprep.subr.bf16.mxu0 %v8193_v48  ;;  %v7043_v50 = vpack.c.bf16 %v3438_v49, %v3437_v54  ;;  %v3842_v49 = vld [vmem:[%s9745_s2 + $0x18] sm:$0xff] }
 0x804   : > { %6261 = vmatmul.mubr.msk.f32.vlgmr.msra.gmra.mrb[22].mxu0 %vm2089_vm3, %v9383_v13 }
 0x805   : > { %6283 = vmatprep.mubr.msk.f32.mxu0 %vm8194_vm1, %v8192_v0  ;;  %7023 = vmatpush3.bf16.msra.mxu0 %v7022_v17 }
 0x806   : > { %7024 = vmatprep.subr.bf16.mxu0 %v8193_v48 }
 0x809   : > { %7026 = vmatpush3.bf16.msra.mxu0 %v7025_v19 }
 0x80a   : > { %7027 = vmatprep.subr.bf16.mxu0 %v8193_v48 }
 0x80d   : > { %7029 = vmatpush3.bf16.msra.mxu0 %v7028_v23  ;;  %v3748_v23 = vld [vmem:[#allocation14 + $0xa8] sm:$0xff] }
 0x80e   : > { %7030 = vmatprep.subr.bf16.mxu0 %v8193_v48  ;;  %v7067_v20 = vpack.c.bf16 %v3748_v23, %v3747_v22  ;;  %v4237_v23 = vld [vmem:[#allocation13 + $0x28] sm:$0xff] }
 0x811   : > { %7032 = vmatpush3.bf16.msra.mxu0 %v7031_v30 }
 0x812   : > { %7033 = vmatprep.subr.bf16.mxu0 %v8193_v48 }
 0x815   : > { %7035 = vmatpush3.bf16.msra.mxu0 %v7034_v32  ;;  %v3749_v32 = vld [vmem:[#allocation14 + $0xb0] sm:$0xff] }
 0x816   : > { %7036 = vmatprep.subr.bf16.mxu0 %v8193_v48 }
 0x8a7   : > { %v9395_v33 = vpop.f32.mrb[14].mxu0 }
 0x8a8   : > { %v3030_v34 = vpop.f32.mrb[15].mxu0 }
 0x8a9   : > { %v3750_v34 = vld [vmem:[#allocation14 + $0xb8] sm:$0xff] }
 0x8bb   : > { %v3122_v35 = vpop.f32.mrb[16].mxu0 }
 0x8bc   : > { %v6229_v12 = vpop.f32.mrb[17].mxu0 }
 0x8cf   : > { %v3192_v36 = vpop.f32.mrb[18].mxu0 }
 0x8d0   : > { %v9397_v37 = vadd.f32 %v3192_v36, %v3122_v35  ;;  %v6252_v16 = vpop.f32.mrb[19].mxu0  ;;  %v7070_v36 = vpack.c.bf16 %v3750_v34, %v3749_v32 }
 0x8d1   : > { %v3752_v16 = vld [vmem:[#allocation14 + $0xc8] sm:$0xff] }
 0x8d3   : > { %v3266_v39 = vpop.f32.mrb[20].mxu0 }
 0x8d4   : > { %v3270_v41 = vmul.f32 0.95, %v3266_v39  ;;  %v6257_v42 = vpop.f32.mrb[21].mxu0  ;;  %v3754_v39 = vld [vmem:[#allocation14 + $0xd8] sm:$0xff] }
 0x8d5   : > { %v3755_v42 = vld [vmem:[#allocation14 + $0xe0] sm:$0xff] }
 0x8d6   : > { %v3271_v44 = vadd.f32 %v3270_v41, %v9400_v25  ;;  %v7076_v41 = vpack.c.bf16 %v3754_v39, %v3753_v38 }
 0x8d7   : > { %v3341_v47 = vpop.f32.mrb[22].mxu0 }
 0x8d8   : > { %6284 = vmatmul.mubr.msk.f32.vlgmr.msra.gmra.mrb[24].mxu0 %vm1594_vm2, %v3271_v44  ;;  %v6262_v24 = vpop.f32.mrb[23].mxu0  ;;  %v3345_v58 = vmul.f32 0.95, %v3341_v47  ;;  %v3839_v47 = vld [vmem:[%s9745_s2] sm:$0xff] }
 0x8d9   : > { %7038 = vmatpush3.bf16.msra.mxu0 %v7037_v43  ;;  %6306 = vmatprep.mubr.msk.f32.mxu0 %vm8194_vm1, %v8192_v0  ;;  %v3756_v43 = vld [vmem:[#allocation14 + $0xe8] sm:$0xff]  ;;  %v3840_v24 = vld [vmem:[%s9745_s2 + $0x8] sm:$0xff] }
 0x8da   : > { %7039 = vmatprep.subr.bf16.mxu0 %v8193_v48  ;;  %v3346_v59 = vadd.f32 %v3345_v58, %v9400_v25  ;;  %v7082_v54 = vpack.c.bf16 %v3840_v24, %v3839_v47  ;;  %v3848_v58 = vld [vmem:[%s9745_s2 + $0x48] sm:$0xff]  ;;  %v4536_v47 = vld [vmem:[#allocation13 + $0x38] sm:$0xff] }
 0x8dd   : > { %7041 = vmatpush3.bf16.msra.mxu0 %v7040_v26  ;;  %v3841_v26 = vld [vmem:[%s9745_s2 + $0x10] sm:$0xff] }
 0x8de   : > { %7042 = vmatprep.subr.bf16.mxu0 %v8193_v48 }
 0x8e1   : > { %7044 = vmatpush3.bf16.msra.mxu0 %v7043_v50  ;;  %v7085_v50 = vpack.c.bf16 %v3842_v49, %v3841_v26  ;;  %v4537_v26 = vld [vmem:[#allocation13 + $0x40] sm:$0xff] }
 0x8e2   : > { %7045 = vmatprep.subr.bf16.mxu0 %v8193_v48 }
 0x8e5   : > { %7047 = vmatpush3.bf16.msra.mxu0 %v7046_v53  ;;  %v3845_v53 = vld [vmem:[%s9745_s2 + $0x30] sm:$0xff] }
 0x8e6   : > { %7048 = vmatprep.subr.bf16.mxu0 %v8193_v48  ;;  %v7091_v56 = vpack.c.bf16 %v3846_v55, %v3845_v53  ;;  %v4613_v53 = vld [vmem:[#allocation16 + $0x30] sm:$0xff]  ;;  %v4614_v55 = vld [vmem:[#allocation16 + $0x38] sm:$0xff] }
 0x8e9   : > { %7050 = vmatpush3.bf16.msra.mxu0 %v7049_v57  ;;  %v3847_v57 = vld [vmem:[%s9745_s2 + $0x40] sm:$0xff] }
 0x8ea   : > { %6309 = vmatprep.subr.mxu0 %v8192_v0 }
 0x8ec   : > { %6307 = vmatmul.mubr.msk.f32.vlgmr.msra.gmra.mrb[26].mxu0 %vm1594_vm2, %v3346_v59 }
 0x8ed   : > { %6310 = vmatpush3.msra.mxu0 %v3271_v44  ;;  %6311 = vmatprep.mubr.msk.f32.mxu0 %vm8194_vm1, %v8192_v0  ;;  %v7079_v44 = vpack.c.bf16 %v3756_v43, %v3755_v42 }
 0x8ee   : > { %6314 = vmatprep.subr.mxu0 %v8192_v0 }
 0x8f0   : > { %6312 = vmatmul.mubr.msk.f32.vlgmr.msra.gmra.mrb[28].mxu0 %vm2089_vm3, %v9374_v10  ;;  %v3670_v10 = vld [vmem:[#allocation11 + $0xe0] sm:$0xff] }
 0x8f1   : > { %6315 = vmatpush3.msra.mxu0 %v3346_v59  ;;  %6316 = vmatprep.mubr.msk.f32.mxu0 %vm8194_vm1, %v8192_v0  ;;  %v7094_v59 = vpack.c.bf16 %v3848_v58, %v3847_v57 }
 0x8f2   : > { %7051 = vmatprep.subr.bf16.mxu0 %v8193_v48 }
 0x8f4   : > { %6317 = vmatmul.mubr.msk.f32.vlgmr.msra.gmra.mrb[30].mxu0 %vm2089_vm3, %v9383_v13  ;;  %v3671_v13 = vld [vmem:[#allocation11 + $0xe8] sm:$0xff] }
 0x8f5   : > { %6339 = vmatprep.mubr.msk.f32.mxu0 %vm8194_vm1, %v8192_v0  ;;  %7053 = vmatpush3.bf16.msra.mxu0 %v7052_v27  ;;  %v7064_v40 = vpack.c.bf16 %v3671_v13, %v3670_v10  ;;  %v3936_v27 = vld [vmem:[#allocation16] sm:$0xff]  ;;  %v3934_v10 = vld [vmem:[#allocation13 + $0x8] sm:$0xff] }
 0x8f6   : > { %7054 = vmatprep.subr.bf16.mxu0 %v8193_v48  ;;  %v7097_v6 = vpack.c.bf16 %v3937_v63, %v3936_v27  ;;  %v5752_v13 = vld [vmem:[#allocation10] ss:$0 sm:$0xff] }
 0x8f9   : > { %7056 = vmatpush3.bf16.msra.mxu0 %v7055_v1 }
 0x8fa   : > { %7057 = vmatprep.subr.bf16.mxu0 %v8193_v48 }
 0x8fd   : > { %7059 = vmatpush3.bf16.msra.mxu0 %v7058_v4 }
 0x8fe   : > { %7060 = vmatprep.subr.bf16.mxu0 %v8193_v48 }
 0x901   : > { %7062 = vmatpush3.bf16.msra.mxu0 %v7061_v8  ;;  %v3933_v8 = vld [vmem:[#allocation13] sm:$0xff] }
 0x902   : > { %7063 = vmatprep.subr.bf16.mxu0 %v8193_v48 }
 0x905   : > { %7065 = vmatpush3.bf16.msra.mxu0 %v7064_v40  ;;  %v3938_v40 = vld [vmem:[#allocation16 + $0x10] sm:$0xff] }
 0x906   : > { %7066 = vmatprep.subr.bf16.mxu0 %v8193_v48 }
 0x9ab   : > { %v3427_v14 = vpop.f32.mrb[24].mxu0 }
 0x9ac   : > { %v3431_v15 = vadd.f32 %v3427_v14, %v9397_v37  ;;  %v6285_v17 = vpop.f32.mrb[25].mxu0  ;;  %v3751_v37 = vld [vmem:[#allocation14 + $0xc0] sm:$0xff]  ;;  %v7100_v14 = vpack.c.bf16 %v3934_v10, %v3933_v8 }
 0x9ad   : > { %v7073_v5 = vpack.c.bf16 %v3752_v16, %v3751_v37  ;;  %v3935_v17 = vld [vmem:[#allocation13 + $0x10] sm:$0xff]  ;;  %v5754_v10 = vld [vmem:[#allocation26] ss:$0 sm:$0xff] }
 0x9bf   : > { %v3512_v18 = vpop.f32.mrb[26].mxu0 }
 0x9c0   : > { %v9431_v19 = vadd.f32 %v3512_v18, %v3431_v15  ;;  %v6308_v21 = vpop.f32.mrb[27].mxu0  ;;  %v1755_v15 = vadd.f32 %v5752_v13, %v9121_v11  ;;  %v5991_v11 = vld [vmem:[%s9742_s10 + $0x10] sm:$0xff]  ;;  %s5394_s10 = scalar_lea.sflag [#allocation4], %s8726_s1 }
 0x9c1   : > { %v5992_v18 = vld [vmem:[%s9743_s7 + $0x10] sm:$0xff]  ;;  %v4236_v21 = vld [vmem:[#allocation13 + $0x20] sm:$0xff] }
 0x9c2   : > { %v4083_v37 = vmul.f32 0.05, %v1755_v15 }
 0x9c3   : > { %v3583_v28 = vpop.f32.mrb[28].mxu0 }
 0x9c4   : > { %v3587_v29 = vmul.f32 0.95, %v3583_v28  ;;  %v6313_v30 = vpop.f32.mrb[29].mxu0 }
 0x9c6   : > { %v3588_v31 = vadd.f32 %v3587_v29, %v9400_v25 }
 0x9c7   : > { %v3655_v35 = vpop.f32.mrb[30].mxu0 }
 0x9c8   : > { %6340 = vmatmul.mubr.msk.f32.vlgmr.msra.gmra.mrb[32].mxu0 %vm1594_vm2, %v3588_v31  ;;  %v6318_v12 = vpop.f32.mrb[31].mxu0  ;;  %v3659_v45 = vmul.f32 0.95, %v3655_v35  ;;  %v4313_v35 = vld [vmem:[#allocation16 + $0x18] sm:$0xff] }
 0x9c9   : > { %7068 = vmatpush3.bf16.msra.mxu0 %v7067_v20  ;;  %6362 = vmatprep.mubr.msk.f32.mxu0 %vm8194_vm1, %v8192_v0  ;;  %v4314_v12 = vld [vmem:[#allocation16 + $0x20] sm:$0xff] }
 0x9ca   : > { %7069 = vmatprep.subr.bf16.mxu0 %v8193_v48  ;;  %v3660_v46 = vadd.f32 %v3659_v45, %v9400_v25  ;;  %v3843_v25 = vld [vmem:[%s9745_s2 + $0x20] sm:$0xff]  ;;  %v7106_v38 = vpack.c.bf16 %v4314_v12, %v4313_v35  ;;  %v4315_v45 = vld [vmem:[#allocation16 + $0x28] sm:$0xff]  ;;  %s9746_s2 = sld [smem:[#allocation66_spill]] }
 0x9cb   : > { %v7088_v52 = vpack.c.bf16 %v3844_v51, %v3843_v25 }
 0x9cd   : > { %7071 = vmatpush3.bf16.msra.mxu0 %v7070_v36 }
 0x9ce   : > { %7072 = vmatprep.subr.bf16.mxu0 %v8193_v48 }
 0x9d1   : > { %7074 = vmatpush3.bf16.msra.mxu0 %v7073_v5 }
 0x9d2   : > { %7075 = vmatprep.subr.bf16.mxu0 %v8193_v48 }
 0x9d5   : > { %7077 = vmatpush3.bf16.msra.mxu0 %v7076_v41 }
 0x9d6   : > { %7078 = vmatprep.subr.bf16.mxu0 %v8193_v48 }
 0x9d9   : > { %7080 = vmatpush3.bf16.msra.mxu0 %v7079_v44 }
 0x9da   : > { %7081 = vmatprep.subr.bf16.mxu0 %v8193_v48 }
 0x9dc   : > { %6363 = vmatmul.mubr.msk.f32.vlgmr.msra.gmra.mrb[34].mxu0 %vm1594_vm2, %v3660_v46  ;;  %v4535_v46 = vld [vmem:[#allocation13 + $0x30] sm:$0xff] }
 0x9dd   : > { %6385 = vmatprep.mubr.msk.f32.mxu0 %vm8194_vm1, %v8192_v0  ;;  %7083 = vmatpush3.bf16.msra.mxu0 %v7082_v54  ;;  %v7109_v24 = vpack.c.bf16 %v4536_v47, %v4535_v46 }
 0x9de   : > { %7084 = vmatprep.subr.bf16.mxu0 %v8193_v48 }
 0x9e1   : > { %7086 = vmatpush3.bf16.msra.mxu0 %v7085_v50 }
 0x9e2   : > { %7087 = vmatprep.subr.bf16.mxu0 %v8193_v48 }
 0x9e5   : > { %7089 = vmatpush3.bf16.msra.mxu0 %v7088_v52 }
 0x9e6   : > { %7090 = vmatprep.subr.bf16.mxu0 %v8193_v48 }
 0x9e9   : > { %7092 = vmatpush3.bf16.msra.mxu0 %v7091_v56 }
 0x9ea   : > { %7093 = vmatprep.subr.bf16.mxu0 %v8193_v48 }
 0x9ed   : > { %7095 = vmatpush3.bf16.msra.mxu0 %v7094_v59  ;;  %v7112_v59 = vpack.c.bf16 %v4614_v55, %v4613_v53 }
 0x9ee   : > { %7096 = vmatprep.subr.bf16.mxu0 %v8193_v48 }
 0xa9b   : > { %v3741_v60 = vpop.f32.mrb[32].mxu0 }
 0xa9c   : > { %v3745_v61 = vadd.f32 %v3741_v60, %v9431_v19  ;;  %v6341_v62 = vpop.f32.mrb[33].mxu0  ;;  %v4235_v19 = vld [vmem:[#allocation13 + $0x18] sm:$0xff] }
 0xa9d   : > { %v7103_v22 = vpack.c.bf16 %v4236_v21, %v4235_v19 }
 0xaaf   : > { %v3826_v1 = vpop.f32.mrb[34].mxu0 }
 0xab0   : > { %v3830_v3 = vadd.f32 %v3826_v1, %v3745_v61  ;;  %v6364_v4 = vpop.f32.mrb[35].mxu0  ;;  %v4615_v1 = vld [vmem:[#allocation16 + $0x40] sm:$0xff] }
 0xab2   : > { %v3838_v7 = vadd.f32 %v5988_v2, %v3830_v3  ;;  %v4698_v2 = vld [vmem:[%s9746_s2] sm:$0xff]  ;;  %v4699_v3 = vld [vmem:[%s9746_s2 + $0x8] sm:$0xff] }
 0xab3   : > { %v7115_v4 = vpack.c.bf16 %v4699_v3, %v4698_v2 }
 0xab4   : > { %6386 = vmatmul.mubr.msk.f32.vlgmr.msra.gmra.mrb[36].mxu0 %vm1594_vm2, %v3838_v7  ;;  %v5974_v7 = vld [vmem:[#allocation22] ss:$0 sm:$0xff] }
 0xab5   : > { %7098 = vmatpush3.bf16.msra.mxu0 %v7097_v6  ;;  %6394 = vmatprep.mubr.msk.f32.mxu0 %vm8194_vm1, %v8192_v0  ;;  %v4700_v6 = vld [vmem:[%s9746_s2 + $0x10] sm:$0xff]  ;;  %v9522_v8 = vadd.f32 %v5974_v7, %v9395_v33  ;;  %s9747_s2 = sld [smem:[#allocation71_spill]] }
 0xab6   : > { %6392 = vmatprep.subr.mxu0 %v8192_v0 }
 0xab9   : > { %6393 = vmatpush3.msra.mxu0 %v3938_v40  ;;  %v9527_v40 = vadd.f32 %v5754_v10, %v9119_v9 }
 0xaba   : > { %6395 = vmatmul.mubr.msk.f32.vlgmr.msra.gmra.mrb[38].mxu0 %vm3939_vm4, %v1755_v15  ;;  %7099 = vmatprep.subr.bf16.mxu0 %v8193_v48 }
 0xabb   : > { %7101 = vmatpush3.bf16.msra.mxu0 %v7100_v14  ;;  %6403 = vmatprep.mubr.msk.f32.mxu0 %vm8194_vm1, %v8192_v0  ;;  %v4783_v47 = vld [vmem:[%s9747_s2 + $0x10] sm:$0xff] }
 0xabc   : > { %6401 = vmatprep.subr.mxu0 %v8192_v0 }
 0xabf   : > { %6402 = vmatpush3.msra.mxu0 %v3935_v17  ;;  %v5989_v17 = vld [vmem:[#allocation23] ss:$0 sm:$0xff] }
 0xac0   : > { %6404 = vmatmul.mubr.msk.f32.vlgmr.msra.gmra.mrb[40].mxu0 %vm3939_vm4, %v1755_v15  ;;  %6406 = vmatprep.subr.mxu0 %v8192_v0 }
 0xac1   : > { %6407 = vmatpush3.msra.mxu0 %v1755_v15  ;;  %6408 = vmatprep.mubr.msk.f32.mxu0 %vm8194_vm1, %v8192_v0 }
 0xac2   : > { %6411 = vmatprep.subr.mxu0 %v8192_v0 }
 0xac4   : > { %6409 = vmatmul.mubr.msk.f32.vlgmr.msra.gmra.mrb[42].mxu0 %vm2089_vm3, %v5991_v11 }
 0xac5   : > { %6412 = vmatpush3.msra.mxu0 %v1755_v15  ;;  %6413 = vmatprep.mubr.msk.f32.mxu0 %vm8194_vm1, %v8192_v0  ;;  %v4785_v15 = vsel %vm2089_vm3, %v9527_v40, 0.0 }
 0xac6   : > { %7102 = vmatprep.subr.bf16.mxu0 %v8193_v48 }
 0xac8   : > { %6414 = vmatmul.mubr.msk.f32.vlgmr.msra.gmra.mrb[44].mxu0 %vm2089_vm3, %v5992_v18 }
 0xac9   : > { %6422 = vmatprep.mubr.msk.f32.mxu0 %vm8194_vm1, %v8192_v0  ;;  %7104 = vmatpush3.bf16.msra.mxu0 %v7103_v22 }
 0xaca   : > { %6420 = vmatprep.subr.mxu0 %v8192_v0 }
 0xacd   : > { %6421 = vmatpush3.msra.mxu0 %v4237_v23 }
 0xace   : > { %7105 = vmatprep.subr.bf16.mxu0 %v8193_v48 }
 0xb87   : > { %v9488_v28 = vpop.f32.mrb[36].mxu0 }
 0xb88   : > { %v6387_v29 = vpop.f32.mrb[37].mxu0  ;;  %v9532_v19 = vadd.f32 %v5989_v17, %v9488_v28 }
 0xb8a   : > { %v4948_v9 = vsel %vm2089_vm3, %v9532_v19, 0.0 }
 0xb8d   : > { %v4009_v30 = vpop.f32.mrb[38].mxu0 }
 0xb8e   : > { %v6396_v20 = vpop.f32.mrb[39].mxu0 }
 0xb93   : > { %v4079_v31 = vpop.f32.mrb[40].mxu0 }
 0xb94   : > { %v4080_v32 = vadd.f32 %v4079_v31, %v4009_v30  ;;  %v6405_v34 = vpop.f32.mrb[41].mxu0  ;;  %v4949_v31 = vrot.slane %v4948_v9, 4 }
 0xb95   : > { %v6003_v34 = vld [vmem:[#allocation20] ss:$0 sm:$0xff] }
 0xb97   : > { %v4153_v36 = vpop.f32.mrb[42].mxu0 }
 0xb98   : > { %v4157_v16 = vmul.f32 0.95, %v4153_v36  ;;  %v6410_v5 = vpop.f32.mrb[43].mxu0 }
 0xb99   : > { %v4782_v5 = vld [vmem:[%s9747_s2 + $0x8] sm:$0xff] }
 0xb9a   : > { %v4158_v39 = vadd.f32 %v4157_v16, %v4083_v37 }
 0xb9b   : > { %v4228_v41 = vpop.f32.mrb[44].mxu0 }
 0xb9c   : > { %v4232_v42 = vmul.f32 0.95, %v4228_v41  ;;  %6423 = vmatmul.mubr.msk.f32.vlgmr.msra.gmra.mrb[46].mxu0 %vm3939_vm4, %v4158_v39  ;;  %v6415_v43 = vpop.f32.mrb[45].mxu0 }
 0xb9d   : > { %7107 = vmatpush3.bf16.msra.mxu0 %v7106_v38  ;;  %6431 = vmatprep.mubr.msk.f32.mxu0 %vm8194_vm1, %v8192_v0 }
 0xb9e   : > { %v4233_v44 = vadd.f32 %v4232_v42, %v4083_v37  ;;  %6429 = vmatprep.subr.mxu0 %v8192_v0  ;;  %v4781_v42 = vld [vmem:[%s9747_s2] sm:$0xff] }
 0xba1   : > { %6430 = vmatpush3.msra.mxu0 %v4315_v45 }
 0xba2   : > { %6432 = vmatmul.mubr.msk.f32.vlgmr.msra.gmra.mrb[48].mxu0 %vm3939_vm4, %v4233_v44  ;;  %6434 = vmatprep.subr.mxu0 %v8192_v0 }
 0xba3   : > { %6435 = vmatpush3.msra.mxu0 %v4158_v39  ;;  %6436 = vmatprep.mubr.msk.f32.mxu0 %vm8194_vm1, %v8192_v0 }
 0xba4   : > { %6439 = vmatprep.subr.mxu0 %v8192_v0 }
 0xba6   : > { %6437 = vmatmul.mubr.msk.f32.vlgmr.msra.gmra.mrb[50].mxu0 %vm2089_vm3, %v5991_v11  ;;  %v4786_v11 = vrot.slane %v4785_v15, 4 }
 0xba7   : > { %6440 = vmatpush3.msra.mxu0 %v4233_v44  ;;  %6441 = vmatprep.mubr.msk.f32.mxu0 %vm8194_vm1, %v8192_v0 }
 0xba8   : > { %7108 = vmatprep.subr.bf16.mxu0 %v8193_v48  ;;  %v4787_v21 = vadd.f32 %v4786_v11, %v4785_v15 }
 0xbaa   : > { %6442 = vmatmul.mubr.msk.f32.vlgmr.msra.gmra.mrb[52].mxu0 %vm2089_vm3, %v5992_v18  ;;  %v4788_v30 = vrot.slane %v4787_v21, 2 }
 0xbab   : > { %6450 = vmatprep.mubr.msk.f32.mxu0 %vm8194_vm1, %v8192_v0  ;;  %7110 = vmatpush3.bf16.msra.mxu0 %v7109_v24 }
 0xbac   : > { %6448 = vmatprep.subr.mxu0 %v8192_v0  ;;  %v4789_v36 = vadd.f32 %v4788_v30, %v4787_v21 }
 0xbae   : > { %v4790_v38 = vrot.slane %v4789_v36, 1 }
 0xbaf   : > { %6449 = vmatpush3.msra.mxu0 %v4537_v26 }
 0xbb0   : > { %7111 = vmatprep.subr.bf16.mxu0 %v8193_v48  ;;  %v4791_v43 = vadd.f32 %v4790_v38, %v4789_v36  ;;  %v6015_v36 = vld [vmem:[#allocation34] ss:$0 sm:$0xff] }
 0xbb2   : > { %v4793_v45 = vmul.f32 0.125, %v4791_v43 }
 0xc6f   : > { %v4307_v54 = vpop.f32.mrb[46].mxu0 }
 0xc70   : > { %v4311_v49 = vadd.f32 %v4307_v54, %v4080_v32  ;;  %v6424_v50 = vpop.f32.mrb[47].mxu0  ;;  %v4784_v54 = vld [vmem:[%s9747_s2 + $0x18] sm:$0xff]  ;;  %s8195_s2 = smov 125  }
 0xc75   : > { %v4385_v25 = vpop.f32.mrb[48].mxu0 }
 0xc76   : > { %v4389_v51 = vadd.f32 %v4385_v25, %v4311_v49  ;;  %v6433_v52 = vpop.f32.mrb[49].mxu0  ;;  %v6004_v49 = vld [vmem:[#allocation25] ss:$0 sm:$0xff] }
 0xc79   : > { %v4456_v56 = vpop.f32.mrb[50].mxu0 }
 0xc7a   : > { %v4460_v57 = vmul.f32 0.95, %v4456_v56  ;;  %v6438_v58 = vpop.f32.mrb[51].mxu0 }
 0xc7c   : > { %v4461_v60 = vadd.f32 %v4460_v57, %v4083_v37 }
 0xc7d   : > { %v4528_v61 = vpop.f32.mrb[52].mxu0 }
 0xc7e   : > { %v4532_v62 = vmul.f32 0.95, %v4528_v61  ;;  %6451 = vmatmul.mubr.msk.f32.vlgmr.msra.gmra.mrb[54].mxu0 %vm3939_vm4, %v4461_v60  ;;  %v6443_v27 = vpop.f32.mrb[53].mxu0  ;;  %v5113_v61 = vld [vmem:[#allocation28] sm:$0xf] }
 0xc7f   : > { %7113 = vmatpush3.bf16.msra.mxu0 %v7112_v59  ;;  %6459 = vmatprep.mubr.msk.f32.mxu0 %vm8194_vm1, %v8192_v0 }
 0xc80   : > { %v4533_v63 = vadd.f32 %v4532_v62, %v4083_v37  ;;  %6457 = vmatprep.subr.mxu0 %v8192_v0  ;;  %v4950_v37 = vadd.f32 %v4949_v31, %v4948_v9  ;;  %v5308_v31 = vld [vmem:[#allocation32] sm:$0xff] }
 0xc82   : > { %v4951_v41 = vrot.slane %v4950_v37, 2 }
 0xc83   : > { %6458 = vmatpush3.msra.mxu0 %v4615_v1 }
 0xc84   : > { %6460 = vmatmul.mubr.msk.f32.vlgmr.msra.gmra.mrb[56].mxu0 %vm3939_vm4, %v4533_v63  ;;  %7114 = vmatprep.subr.bf16.mxu0 %v8193_v48  ;;  %v4794_v48 = vsel %vm2089_vm3, %v9522_v8, 0.0  ;;  %v4952_v44 = vadd.f32 %v4951_v41, %v4950_v37 }
 0xc85   : > { %6468 = vmatprep.mubr.msk.f32.mxu0 %vm8194_vm1, %v8192_v0  ;;  %7116 = vmatpush3.bf16.msra.mxu0 %v7115_v4  ;;  %v4795_v13 = vrot.slane %v4794_v48, 4 }
 0xc86   : > { %6466 = vmatprep.subr.mxu0 %v8192_v0  ;;  %v4953_v46 = vrot.slane %v4952_v44, 1 }
 0xc87   : > { %v4796_v14 = vadd.f32 %v4795_v13, %v4794_v48  ;;  %v5226_v48 = vld [vmem:[#allocation29] sm:$0xff] }
 0xc88   : > { %v4954_v24 = vadd.f32 %v4953_v46, %v4952_v44 }
 0xc89   : > { %6467 = vmatpush3.msra.mxu0 %v4700_v6  ;;  %v4797_v18 = vrot.slane %v4796_v14, 2 }
 0xc8a   : > { %6471 = vmatprep.subr.mxu0 %v8192_v0  ;;  %v4955_v26 = vmul.f32 0.125, %v4954_v24 }
 0xc8b   : > { %v4798_v22 = vadd.f32 %v4797_v18, %v4796_v14 }
 0xc8d   : > { %v4799_v20 = vrot.slane %v4798_v22, 1 }
 0xc8f   : > { %v4800_v28 = vadd.f32 %v4799_v20, %v4798_v22 }
 0xc91   : > { %v4801_v39 = vmul.f32 0.125, %v4800_v28 }
 0xd51   : > { %v4607_v33 = vpop.f32.mrb[54].mxu0 }
 0xd52   : > { %v4611_v23 = vadd.f32 %v4607_v33, %v4389_v51  ;;  %v6452_v29 = vpop.f32.mrb[55].mxu0 }
 0xd57   : > { %v4685_v32 = vpop.f32.mrb[56].mxu0 }
 0xd58   : > { %v4689_v35 = vadd.f32 %v4685_v32, %v4611_v23  ;;  %v6461_v12 = vpop.f32.mrb[57].mxu0 }
 0xd5a   : > { %v4697_v16 = vadd.f32 %v6003_v34, %v4689_v35 }
 0xd5c   : > { %6469 = vmatmul.mubr.msk.f32.vlgmr.msra.gmra.mrb[58].mxu0 %vm3939_vm4, %v4697_v16 }
 0xd5d   : > { %6472 = vmatpush3.msra.mxu0 %v4782_v5  ;;  %6473 = vmatprep.mubr.msk.f32.mxu0 %vm8194_vm1, %v8192_v0 }
 0xd5e   : > { %6476 = vmatprep.subr.mxu0 %v8192_v0 }
 0xd60   : > { %6474 = vmatmul.mubr.msk.f32.vlgmr.msra.gmra.mrb[60].mxu0 %vm2089_vm3, %v4801_v39 }
 0xd61   : > { %6477 = vmatpush3.msra.mxu0 %v4781_v42  ;;  %6478 = vmatprep.mubr.msk.f32.mxu0 %vm8194_vm1, %v8192_v0 }
 0xd62   : > { %6481 = vmatprep.subr.mxu0 %v8192_v0 }
 0xd68   : > { %6479 = vmatmul.mubr.msk.f32.vlgmr.msra.gmra.mrb[60].mxu0 %vm2089_vm3, %v4793_v45 }
 0xd69   : > { %6482 = vmatpush3.msra.mxu0 %v4783_v47  ;;  %6483 = vmatprep.mubr.msk.f32.mxu0 %vm8194_vm1, %v8192_v0 }
 0xd6a   : > { %6486 = vmatprep.subr.mxu0 %v8192_v0 }
 0xd70   : > { %6484 = vmatmul.mubr.msk.f32.vlgmr.msra.gmra.mrb[60].mxu0 %vm2089_vm3, %v4955_v26 }
 0xd71   : > { %6488 = vmatprep.mubr.msk.f32.mxu0 %vm8194_vm1, %v8192_v0  ;;  %6487 = vmatpush3.msra.mxu0 %v4784_v54 }
 0xd72   : > { %6491 = vmatprep.subr.mxu0 %v8192_v0 }
 0xe2f   : > { %v4777_v50 = vpop.f32.mrb[58].mxu0 }
 0xe30   : > { %v4778_v25 = vadd.f32 %v6004_v49, %v4777_v50  ;;  %v6470_v51 = vpop.f32.mrb[59].mxu0 }
 0xe32   : > { %v5030_v52 = vsel %vm2089_vm3, %v4778_v25, 0.0 }
 0xe33   : > { %v5031_v53 = vrot.slane %v5030_v52, 4 }
 0xe35   : > { %v5032_v55 = vadd.f32 %v5031_v53, %v5030_v52 }
 0xe37   : > { %v5033_v56 = vrot.slane %v5032_v55, 2 }
 0xe39   : > { %v5034_v57 = vadd.f32 %v5033_v56, %v5032_v55 }
 0xe3b   : > { %v5035_v58 = vrot.slane %v5034_v57, 1 }
 0xe3d   : > { %v5036_v59 = vadd.f32 %v5035_v58, %v5034_v57 }
 0xe3f   : > { %v5037_v60 = vmul.f32 0.125, %v5036_v59 }
 0xe41   : > { %6489 = vmatmul.mubr.msk.f32.vlgmr.msra.gmra.mrb[60].mxu0 %vm2089_vm3, %v5037_v60 }
 0xe42   : > { %6493 = vmatprep.mubr.msk.f32.mxu0 %vm8194_vm1, %v8192_v0  ;;  %6492 = vmatpush3.msk.msra.mxu0 %vm5118_vm5, %v5113_v61 }
 0xe43   : > { %6496 = vmatprep.subr.mxu0 %v8192_v0 }
 0xf14   : > { %v5107_v62 = vpop.f32.mrb[60].mxu0 }
 0xf15   : > { %v5112_v27 = vmax.f32 %v5107_v62, 0.0  ;;  %v6490_v63 = vpop.f32.mrb[61].mxu0 }
 0xf17   : > { %6494 = vmatmul.mubr.msk.f32.vlgmr.msra.gmra.mrb[62].mxu0 %vm5114_vm6, %v5112_v27 }
 0xf18   : > { %6498 = vmatprep.mubr.msk.f32.mxu0 %vm8194_vm1, %v8192_v0  ;;  %6497 = vmatpush3.msra.mxu0 %v5226_v48 }
 0xfea   : > { %v5188_v1 = vpop.f32.mrb[62].mxu0 }
 0xfeb   : > { %v6012_v2 = vmul.f32 -1.442695, %v5188_v1  ;;  %v6495_v3 = vpop.f32.mrb[63].mxu0 }
 0xfed   : > { %7433 = vpow2.f32 %v6012_v2 }
 0xff7   : > { %v7434_v4 = vpop.eup %7433 }
 0xff8   : > { %v5195_v6 = vadd.f32 1.0, %v7434_v4 }
 0xffa   : > { %7435 = vrcp.f32 %v5195_v6 }
0x1004   : > { %v7436_v7 = vpop.eup %7435 }
0x1005   : > { %5217 = vrot.lane.b32.xlu1 %v7436_v7, %s8195_s2  ;;  %5203 = vrot.lane.b32.xlu0 %v7436_v7, %s8196_s5  ;;  %7136 = vpush %v7436_v7 }
0x1009   : > { %5210 = vrot.lane.b32.xlu0 %v7436_v7, %s8197_s6  ;;  %s6018_s6 = sshll.u32 %s8400_s26, 7  ;;  %s8198_s26 = smov [#allocation35]  }
0x1036   : > { %s7137_s7 = spop %7136 }
0x1037   : > { %v5200_v14 = vstv %s7137_s7  ;;  %s9749_s7 = sshll.u32 %s8726_s1, 3 }
0x1038   : > { %v5202_v11 = vmul.f32 %v5200_v14, %v9527_v40  ;;  %v6013_v40 = vld [vmem:[#allocation31] ss:$0 sm:$0xff] }
0x1077   : > { %v5204_v10 = vpop.permute.xlu0 %5203  ;;  %v5218_v13 = vpop.permute.xlu1 %5217 }
0x1078   : > { %7138 = vpush %v5204_v10 }
0x107b   : > { %v5211_v0 = vpop.permute.xlu0 %5210 }
0x107c   : > { %7140 = vpush %v5211_v0 }
0x107d   : > { %7142 = vpush %v5218_v13 }
0x10a9   : > { %s7139_s8 = spop %7138 }
0x10aa   : > { %v5206_v15 = vstv %s7139_s8  ;;  %s9748_s8 = sld [smem:[#allocation75_spill]] }
0x10ab   : > { %v5208_v17 = vmul.f32 %v5206_v15, %v9522_v8  ;;  %v5309_v8 = vld [vmem:[#allocation32 + $0x8] sm:$0xff] }
0x10ac   : > { %v7118_v32 = vpack.c.bf16 %v5309_v8, %v5308_v31 }
0x10ad   : > { %s7141_s2 = spop %7140  ;;  %v5209_v33 = vadd.f32 %v5208_v17, %v5202_v11 }
0x10ae   : > { %v5213_v18 = vstv %s7141_s2  ;;  %s7143_s5 = spop %7142  ;;  %7119 = vmatpush3.bf16.msra.mxu1 %v7118_v32  ;;  %s1317_s2 = scalar_lea.vmem [#allocation35], %s9749_s7 }
0x10af   : > { %v5215_v21 = vmul.f32 %v5213_v18, %v9532_v19  ;;  %v5220_v22 = vstv %s7143_s5  ;;  %s5407_s5 = sshll.u32 %s1317_s2, 4  ;;  %s8031_s7 = sshll.u32 %s8198_s26, 4  ;;  %s9573_s5 = int_to_ptr.vmem [resolvable:$true] %s5407_s5  ;;  %s8032_s7 = int_to_ptr.vmem [resolvable:$false] %s8031_s7 }
0x10b0   : > { %v5222_v29 = vmul.f32 %v5220_v22, %v4778_v25  ;;  %s9571_s9 = scalar_lea.hbm %s9748_s8, %s6018_s6  ;;  %s8027_s12 = scalar_lea.vmem %s9573_s5, 128 }
0x10b1   : > { %v5216_v23 = vadd.f32 %v5215_v21, %v5209_v33  ;;  %p8028_p11 = scmp.ne.s32.totalorder %s9573_s5, %s8027_s12  ;;  %s8033_s13 = scalar_lea.vmem %s8032_s7, 256 }
0x10b2   : > { %p8034_p10 = scmp.lt.s32.totalorder %s9573_s5, %s8032_s7  ;;  %p8035_p12 = scmp.lt.s32.totalorder %s8033_s13, %s8027_s12 }
0x10b3   : > { %v5223_v9 = vadd.f32 %v5222_v29, %v5216_v23  ;;  %p8029_p5 = pnand %p8028_p11, %p9750_p4 }
0x10b4   : > { %p8036_p9 = por %p8035_p12, %p8034_p10 }
0x10b5   : > { %v5224_v30 = vmul.f32 0.25, %v5223_v9  ;;  %p8030_p7 = pneg %p8029_p5 }
0x10b7   : > { %v5225_v20 = vmax.f32 %v5224_v30, 0.0  ;;  %p8037_p6 = pnand %p8036_p9, %p8030_p7 }
0x10b9   : > { %6499 = vmatmul.mubr.msk.f32.vlgmr.msra.gmra.mrb[64].mxu0 %vm2089_vm3, %v5225_v20 }
0x118c   : > { %v5303_v34 = vpop.f32.mrb[64].mxu0 }
0x118d   : > { %v5304_v35 = vadd.f32 %v6013_v40, %v5303_v34  ;;  %v6500_v19 = vpop.f32.mrb[65].mxu0 }
0x118f   : > { %v5307_v12 = vmax.f32 %v5304_v35, 0.0 }
0x1191   : > { %6506 = vmatmul.mubr.msk.f32.vlgmr.msra.gmra.mrb[6].mxu1 %vm5317_vm7, %v5307_v12 }
0x1264   : > { %v5387_v28 = vpop.f32.mrb[6].mxu1 }
0x1265   : > { %v5388_v37 = vadd.f32 %v6015_v36, %v5387_v28  ;;  %v6507_v16 = vpop.f32.mrb[7].mxu1 }
0x1267   : > { %5392 = vst.msk [vmem:[%s1317_s2] sm:$0xff] %vm5391_vm8, %v5388_v37 }
0x1268   : > { %8040 = shalt.err (!%p8037_p6)
}
0x1269   : > { %s8041_s1 = scalar_lea.hbm %s9571_s9, 128  ;;  %s8045_s6 = scalar_lea.hbm %s9748_s8, 256 }
0x126a   : > { %p8042_p13 = scmp.ne.s32.totalorder %s9571_s9, %s8041_s1  ;;  %p8046_p8 = scmp.lt.u32.totalorder %s9571_s9, %s9748_s8 }
0x126b   : > { %p8047_p1 = scmp.lt.u32.totalorder %s8045_s6, %s8041_s1  ;;  %p8049_p11 = scmp.lt.u32.totalorder %s8041_s1, %s9571_s9 }
0x126c   : > { %p8043_p0 = pnand %p8042_p13, %p9750_p4 }
0x126d   : > { %p8048_p3 = por %p8047_p1, %p8046_p8 }
0x126e   : > { %p8044_p2 = pneg %p8043_p0 }
0x126f   : > { %p8050_p5 = por %p8049_p11, %p8048_p3 }
0x1271   : > { %p8051_p7 = pnand %p8050_p5, %p8044_p2 }
0x1273   : > { %8054 = shalt.err (!%p8051_p7)
}
0x1274   : > { %7226 = dma.vmem_to_hbm [thread:$0]  (%p9750_p4), %s9573_s5, 128, %s9571_s9, %s5394_s10  }
0x1275 PF: > { %s5419_s13 = sand.u32 1, %s8121_s15   ;;  %p9751_p10 = scmp.ne.s32.totalorder %s9711_s11, 0 }
0x1276   : > { %p9752_p12 = scmp.ge.s32.totalorder %s8133_s18, 2  ;;  %s5420_s12 = scalar_lea.sflag [#allocation4], %s5419_s13 }
0x1278   : > { %p7294_p9 = pnand %p9752_p12, %p9751_p10 }
0x127a   : > { %8116 = dma.done.wait (!%p7294_p9), %s5420_s12, 128  }
0x127b   : > { %8118 = vsyncadd (!%p7294_p9), %s5420_s12, 4294967168  ;;  %p92_p6 = scmp.ge.s32.totalorder %s8656_s3, 4   ;;  %s9753_s15 = smov %s8125_s16 }
0x127c   : > { %s9754_s16 = smov %s8129_s0  ;;  %s9755_s0 = smov %s8667_s14 }
0x127d   : > { %s9756_s18 = smov %s8656_s3  ;;  %94 = sbr.rel (!%p92_p6) target bundleno = 83 (0x53), region = 331 }
0x1284   :  { %5425 = vsyncpa [#allocation3], 1 }
0x1285   :  { %5427 = vsyncpa [#allocation3 + $0x1], 1 }
0x1286   :  { %5428 = vsyncpa [#allocation6], 1 }
0x1287   :  { %5429 = vsyncpa [#allocation9], 1 }
0x1288   :  { %5430 = vsyncpa [#allocation12], 1 }
0x1289   :  { %5431 = vsyncpa [#allocation15], 1 }
0x128a   :  { %5432 = vsyncpa [#allocation18], 1 }
0x128b   :  { %5433 = vsyncpa [#allocation21], 1 }
0x128c   :  { %5434 = vsyncpa [#allocation24], 1 }
0x128d   :  { %5435 = vsyncpa [#allocation27], 1 }
0x128e   :  { %5436 = vsyncpa [#allocation30], 1 }
0x128f   :  { %5437 = vsyncpa [#allocation33], 1 }
0x1290   :  { %5438 = vsyncpa [#allocation4], 1 }
0x1291   :  { %5440 = vsyncpa [#allocation4 + $0x1], 1 }

</bundles_post_ra>
